<compile_context>
chip_gen: v6e
topology: v6e:2x2x1
jax: 0.10.0
libtpu: 0.0.40
codegen_flags: <defaults>
</compile_context>

<pallas_src>
import functools

import jax
import jax.numpy as jnp
from jax.experimental import pallas as pl
from jax.experimental.pallas import tpu as pltpu


def residual_mamba_kernel(x_ref, nw_ref, inw_ref, inb_ref, cw_ref, cb_ref,
                          xpw_ref, dtb_ref, negA_ref, ow_ref, ob_ref,
                          o_ref,
                          h_ref, conv_ref, dlt_ref, du_ref, bc_ref, y_ref,
                          res_ref,
                          *, n_state, kernel_size, d_tile, scan_exp_dtype):
    chunk = pl.program_id(1)

    rows, d_model = x_ref.shape                 # rows = seq_chunk * batch_block
    _, b_blk, d_inner = h_ref.shape
    K = kernel_size
    seq_chunk = rows // b_blk
    top = (K - 1) * b_blk                       # carried conv rows (time-major)
    n_dtiles = d_inner // d_tile

    x = x_ref[...].astype(jnp.float32)          # (rows, d_model)

    # ---------------- RMSNorm (eps = 1e-5) ----------------
    ms = jnp.mean(x * x, axis=-1, keepdims=True)
    xn = x * jax.lax.rsqrt(ms + 1e-5) * nw_ref[...]

    # ---------------- in_proj (d_model -> 2*d_inner) ----------------
    xr = jnp.dot(xn.astype(inw_ref.dtype), inw_ref[...],
                 preferred_element_type=jnp.float32) + inb_ref[...]
    u0 = xr[:, :d_inner]                        # conv input
    res_ref[...] = xr[:, d_inner:]              # gate branch -> VMEM (not live over scan)

    # ---------------- init carried state on first sequence chunk ----------------
    @pl.when(chunk == 0)
    def _init():
        h_ref[...] = jnp.zeros_like(h_ref)
        conv_ref[0:top, :] = jnp.zeros((top, d_inner), jnp.float32)

    # ---------------- depthwise causal conv1d (kernel K, padding K-1) ----------------
    # conv_ref rows: [0, top) = last K-1 time steps of previous chunk,
    #                [top, top+rows) = this chunk's u0 (time-major, batch minor).
    conv_ref[top:, :] = u0
    conv = jnp.zeros((rows, d_inner), jnp.float32)
    for k in range(K):                          # K is tiny and static
        conv = conv + cw_ref[k:k + 1, :] * conv_ref[k * b_blk:k * b_blk + rows, :]
    conv = conv + cb_ref[...]
    # stash the last K-1 time steps for the next chunk
    conv_ref[0:top, :] = conv_ref[rows:rows + top, :]
    u = conv * jax.nn.sigmoid(conv)             # SiLU

    # ---------------- fused x_proj (dt_proj folded in, [B|C] lane-padded) ----------------
    xp = jnp.dot(u.astype(xpw_ref.dtype), xpw_ref[...],
                 preferred_element_type=jnp.float32)   # (rows, d_inner + bc_pad)
    delta = jax.nn.softplus(xp[:, :d_inner] + dtb_ref[...])
    dlt_ref[...] = delta
    du_ref[...] = delta * u
    bc_ref[...] = xp[:, d_inner:]               # lane-dense [B | C | 0-pad]

    # ---------------- streaming selective scan ----------------
    # h layout: (n_state, b_blk, d_inner) with d_inner on lanes; the per-step
    # body is tiled over d_inner lane-chunks to keep the working set in vregs.
    @pl.loop(0, seq_chunk)
    def _scan(t):
        r = pl.multiple_of(t * b_blk, b_blk)    # b_blk is a multiple of 8
        bc_t = bc_ref[pl.ds(r, b_blk), :]       # (b_blk, bc_pad)
        for j in range(n_dtiles):               # static lane-tiling of d_inner
            c = j * d_tile
            d_t = dlt_ref[pl.ds(r, b_blk), c:c + d_tile]
            du_t = du_ref[pl.ds(r, b_blk), c:c + d_tile]
            y_t = jnp.zeros((b_blk, d_tile), jnp.float32)
            for n in range(n_state):            # static unroll over small state dim
                a = (d_t * negA_ref[n:n + 1, c:c + d_tile]).astype(scan_exp_dtype)
                h_n = (jnp.exp(a).astype(jnp.float32) * h_ref[n, :, c:c + d_tile]
                       + bc_t[:, n:n + 1] * du_t)
                h_ref[n, :, c:c + d_tile] = h_n
                y_t = y_t + h_n * bc_t[:, n_state + n:n_state + n + 1]
            y_ref[pl.ds(r, b_blk), c:c + d_tile] = y_t

    # ---------------- gate with SiLU(res), out_proj, residual ----------------
    res = res_ref[...]
    y = y_ref[...] * (res * jax.nn.sigmoid(res))
    out = jnp.dot(y.astype(ow_ref.dtype), ow_ref[...],
                  preferred_element_type=jnp.float32) + ob_ref[...]
    # re-read x (input block is still resident in VMEM) instead of keeping it live
    o_ref[...] = (out + x_ref[...].astype(jnp.float32)).astype(o_ref.dtype)


def residual_block_forward_time_major(x_r, params, *, batch_block, seq_chunk,
                                      compute_dtype=jnp.bfloat16,
                                      scan_exp_dtype=jnp.float32,
                                      d_inner_tile=512,
                                      vmem_limit_bytes=None):
    """x_r: (nb, L*batch_block, d_model), rows time-major (row = t*batch_block + b).

    Use this directly between stacked ResidualBlocks to avoid per-layer HBM
    transposes; residual_block_forward() does the (B, L, D) boundary reshape.
    """
    nb, rows_total, D = x_r.shape
    d_inner = params["conv_w"].shape[1]
    n_state = params["A_log"].shape[1]
    dt_rank = params["dt_w"].shape[0]
    K = params["conv_w"].shape[0]
    L = rows_total // batch_block

    assert rows_total % batch_block == 0 and L % seq_chunk == 0
    assert batch_block % 8 == 0, "batch_block must be a multiple of 8 (sublane tile)"
    assert seq_chunk >= K - 1

    n_chunks = L // seq_chunk
    chunk_rows = seq_chunk * batch_block

    d_tile = min(d_inner, d_inner_tile)
    assert d_inner % d_tile == 0, "d_inner must divide into d_inner_tile lane chunks"

    # pad the [B|C] section of the fused projection so its store is lane-dense
    bc_pad = max(128, ((2 * n_state + 127) // 128) * 128)

    # fold dt_proj into x_proj: one MXU pass emits [delta_pre | B | C | 0-pad]
    xproj_fused = jnp.concatenate(
        [params["xproj_w"][:, :dt_rank] @ params["dt_w"],
         params["xproj_w"][:, dt_rank:],
         jnp.zeros((d_inner, bc_pad - 2 * n_state), jnp.float32)], axis=1)

    # precompute -exp(A_log)^T once (no per-grid-step EUP work, nothing big live in scan)
    neg_A = (-jnp.exp(params["A_log"])).T        # (n_state, d_inner), d_inner on lanes

    weights = [
        params["norm_w"],
        params["in_w"].astype(compute_dtype),
        params["in_b"],
        params["conv_w"],
        params["conv_b"],
        xproj_fused.astype(compute_dtype),
        params["dt_b"],
        neg_A,
        params["out_w"].astype(compute_dtype),
        params["out_b"],
    ]

    data_spec = pl.BlockSpec((pl.Squeezed(), chunk_rows, D), lambda b, c: (b, c, 0))

    kernel = functools.partial(residual_mamba_kernel,
                               n_state=n_state, kernel_size=K,
                               d_tile=d_tile, scan_exp_dtype=scan_exp_dtype)

    rows_all = nb * rows_total
    cost = pl.CostEstimate(
        flops=int(2 * rows_all * (D * 2 * d_inner + d_inner * (d_inner + bc_pad)
                                  + d_inner * D)
                  + 6 * rows_all * n_state * d_inner),
        transcendentals=int(rows_all * (n_state * d_inner + 4 * d_inner + 1)),
        bytes_accessed=int(4 * (2 * x_r.size + sum(int(w.size) for w in weights))),
    )

    scratch_shapes = [
        pltpu.VMEM((n_state, batch_block, d_inner), jnp.float32),              # h carry
        pltpu.VMEM(((seq_chunk + K - 1) * batch_block, d_inner), jnp.float32), # conv buf
        pltpu.VMEM((chunk_rows, d_inner), jnp.float32),                        # delta
        pltpu.VMEM((chunk_rows, d_inner), jnp.float32),                        # delta * u
        pltpu.VMEM((chunk_rows, bc_pad), jnp.float32),                         # [B|C|pad]
        pltpu.VMEM((chunk_rows, d_inner), jnp.float32),                        # y
        pltpu.VMEM((chunk_rows, d_inner), jnp.float32),                        # res spill
    ]

    out_shape = jax.ShapeDtypeStruct((nb, rows_total, D), x_r.dtype)

    def _call(single_buffer_weights):
        def _const_spec(w):
            zeros = (0,) * w.ndim
            idx = lambda b, c, _z=zeros: _z
            if single_buffer_weights:
                # constant index_map: weights are DMA'd once; don't double-buffer them
                return pl.BlockSpec(w.shape, idx, pipeline_mode=pl.Buffered(1))
            return pl.BlockSpec(w.shape, idx)

        in_specs = [data_spec] + [_const_spec(w) for w in weights]
        return pl.pallas_call(
            kernel,
            out_shape=out_shape,
            grid=(nb, n_chunks),
            in_specs=in_specs,
            out_specs=data_spec,
            scratch_shapes=scratch_shapes,
            cost_estimate=cost,
            compiler_params=pltpu.CompilerParams(
                dimension_semantics=("parallel", "arbitrary"),
                vmem_limit_bytes=vmem_limit_bytes),
        )(x_r, *weights)

    try:
        return _call(True)
    except Exception:  # fallback if this JAX build rejects Buffered(1) for pallas_call
        return _call(False)


def residual_block_forward(x, params, *, batch_block, seq_chunk, **kwargs):
    """(B, L, D) entry point; does the boundary layout transform once."""
    B, L, D = x.shape
    assert B % batch_block == 0
    nb = B // batch_block

    # time-major row layout per batch block: row = t * batch_block + b
    x_r = (x.reshape(nb, batch_block, L, D)
             .transpose(0, 2, 1, 3)
             .reshape(nb, L * batch_block, D))

    out_r = residual_block_forward_time_major(
        x_r, params, batch_block=batch_block, seq_chunk=seq_chunk, **kwargs)

    return (out_r.reshape(nb, L, batch_block, D)
                 .transpose(0, 2, 1, 3)
                 .reshape(B, L, D))


# ------------------------- pure-JAX reference ---------------------------
def _reference(x, p):
    d_inner = p["conv_w"].shape[1]
    n_state = p["A_log"].shape[1]
    dt_rank = p["dt_w"].shape[0]
    K = p["conv_w"].shape[0]

    def one(xb):
        L, _ = xb.shape
        ms = jnp.mean(xb * xb, axis=-1, keepdims=True)
        xn = xb * jax.lax.rsqrt(ms + 1e-5) * p["norm_w"]
        xr = xn @ p["in_w"] + p["in_b"]
        u0, res = xr[:, :d_inner], xr[:, d_inner:]
        pad = jnp.zeros((K - 1, d_inner), jnp.float32)
        up = jnp.concatenate([pad, u0], axis=0)
        conv = p["conv_b"] + sum(p["conv_w"][k][None, :] * up[k:k + L, :]
                                 for k in range(K))
        u = conv * jax.nn.sigmoid(conv)
        xp = u @ p["xproj_w"]
        dt_in = xp[:, :dt_rank]
        Bm = xp[:, dt_rank:dt_rank + n_state]
        Cm = xp[:, dt_rank + n_state:]
        delta = jax.nn.softplus(dt_in @ p["dt_w"] + p["dt_b"])
        A = -jnp.exp(p["A_log"])

        def step(h, inp):
            d_t, B_t, C_t, u_t = inp
            h = (jnp.exp(d_t[:, None] * A) * h
                 + (d_t * u_t)[:, None] * B_t[None, :])
            return h, jnp.sum(h * C_t[None, :], axis=-1)

        h0 = jnp.zeros((d_inner, n_state), jnp.float32)
        _, ys = jax.lax.scan(step, h0, (delta, Bm, Cm, u))
        y = ys * (res * jax.nn.sigmoid(res))
        return y @ p["out_w"] + p["out_b"] + xb

    return jax.vmap(one)(x)


if __name__ == "__main__":
    # small shapes consistent with the module (d_inner lane-aligned, batch_block=8)
    B, L, d_model = 16, 16, 64
    d_inner, n_state, dt_rank, K = 128, 16, 4, 3

    key = jax.random.PRNGKey(0)
    ks = jax.random.split(key, 12)
    s = 0.1  # keep activations in a reasonable range
    params = {
        "norm_w":  jnp.ones((1, d_model), jnp.float32),
        "in_w":    s * jax.random.normal(ks[0], (d_model, 2 * d_inner), jnp.float32),
        "in_b":    s * jax.random.normal(ks[1], (1, 2 * d_inner), jnp.float32),
        "conv_w":  s * jax.random.normal(ks[2], (K, d_inner), jnp.float32),
        "conv_b":  s * jax.random.normal(ks[3], (1, d_inner), jnp.float32),
        "xproj_w": s * jax.random.normal(ks[4], (d_inner, dt_rank + 2 * n_state), jnp.float32),
        "dt_w":    s * jax.random.normal(ks[5], (dt_rank, d_inner), jnp.float32),
        "dt_b":    s * jax.random.normal(ks[6], (1, d_inner), jnp.float32),
        "A_log":   s * jax.random.normal(ks[7], (d_inner, n_state), jnp.float32),
        "out_w":   s * jax.random.normal(ks[8], (d_inner, d_model), jnp.float32),
        "out_b":   s * jax.random.normal(ks[9], (1, d_model), jnp.float32),
        # self.D exists in the PyTorch module but is unused in forward(); kept for parity.
        "D":       s * jax.random.normal(ks[10], (d_inner,), jnp.float32),
    }

    x = jax.random.normal(ks[11], (B, L, d_model), jnp.float32)

    # 2 batch blocks (parallel grid axis, keeps both v7x TCs busy) x 2 seq chunks
    # f32 weights first: tight numerical check against the JAX reference.
    out_f32 = residual_block_forward(x, params, batch_block=8, seq_chunk=8,
                                     compute_dtype=jnp.float32)
    jax.block_until_ready(out_f32)

    ref = _reference(x, params)
    assert out_f32.shape == (B, L, d_model)
    assert jnp.allclose(out_f32, ref, atol=1e-3, rtol=1e-3), "f32 mismatch vs reference"

    # bf16 matmul weights (recommended MXU path on v6e/v7x): looser tolerance.
    out_bf16 = residual_block_forward(x, params, batch_block=8, seq_chunk=8,
                                      compute_dtype=jnp.bfloat16)
    jax.block_until_ready(out_bf16)
    assert jnp.allclose(out_bf16, ref, atol=5e-2, rtol=5e-2), "bf16 mismatch vs reference"

    print("KERNEL_OK")
</pallas_src>

<mosaic_0001>
module attributes {stable_mosaic.version = 11 : i64} {
  func.func @residual_mamba_kernel(%arg0: i32, %arg1: i32, %arg2: memref<1x64x64xf32, #tpu.memory_space<vmem>>, %arg3: memref<1x64xf32, #tpu.memory_space<vmem>>, %arg4: memref<64x256xf32, #tpu.memory_space<vmem>>, %arg5: memref<1x256xf32, #tpu.memory_space<vmem>>, %arg6: memref<3x128xf32, #tpu.memory_space<vmem>>, %arg7: memref<1x128xf32, #tpu.memory_space<vmem>>, %arg8: memref<128x256xf32, #tpu.memory_space<vmem>>, %arg9: memref<1x128xf32, #tpu.memory_space<vmem>>, %arg10: memref<16x128xf32, #tpu.memory_space<vmem>>, %arg11: memref<128x64xf32, #tpu.memory_space<vmem>>, %arg12: memref<1x64xf32, #tpu.memory_space<vmem>>, %arg13: memref<1x64x64xf32, #tpu.memory_space<vmem>>, %arg14: memref<16x8x128xf32, #tpu.memory_space<vmem>>, %arg15: memref<80x128xf32, #tpu.memory_space<vmem>>, %arg16: memref<64x128xf32, #tpu.memory_space<vmem>>, %arg17: memref<64x128xf32, #tpu.memory_space<vmem>>, %arg18: memref<64x128xf32, #tpu.memory_space<vmem>>, %arg19: memref<64x128xf32, #tpu.memory_space<vmem>>, %arg20: memref<64x128xf32, #tpu.memory_space<vmem>>) attributes {dimension_semantics = [#tpu.dimension_semantics<parallel>, #tpu.dimension_semantics<arbitrary>], iteration_bounds = array<i64: 2, 2>, scalar_prefetch = 0 : i64, scratch_operands = 7 : i64, tpu.core_type = #tpu.core_type<tc>, window_params = [{transform_indices = @transform_0, window_bounds = array<i64: 1, 64, 64>}, {pipeline_mode = #tpu.pipeline_mode<synchronous>, transform_indices = @transform_1, window_bounds = array<i64: 1, 64>}, {pipeline_mode = #tpu.pipeline_mode<synchronous>, transform_indices = @transform_2, window_bounds = array<i64: 64, 256>}, {pipeline_mode = #tpu.pipeline_mode<synchronous>, transform_indices = @transform_3, window_bounds = array<i64: 1, 256>}, {pipeline_mode = #tpu.pipeline_mode<synchronous>, transform_indices = @transform_4, window_bounds = array<i64: 3, 128>}, {pipeline_mode = #tpu.pipeline_mode<synchronous>, transform_indices = @transform_5, window_bounds = array<i64: 1, 128>}, {pipeline_mode = #tpu.pipeline_mode<synchronous>, transform_indices = @transform_6, window_bounds = array<i64: 128, 256>}, {pipeline_mode = #tpu.pipeline_mode<synchronous>, transform_indices = @transform_7, window_bounds = array<i64: 1, 128>}, {pipeline_mode = #tpu.pipeline_mode<synchronous>, transform_indices = @transform_8, window_bounds = array<i64: 16, 128>}, {pipeline_mode = #tpu.pipeline_mode<synchronous>, transform_indices = @transform_9, window_bounds = array<i64: 128, 64>}, {pipeline_mode = #tpu.pipeline_mode<synchronous>, transform_indices = @transform_10, window_bounds = array<i64: 1, 64>}, {transform_indices = @transform_11, window_bounds = array<i64: 1, 64, 64>}]} {
    %c0 = arith.constant 0 : index
    %c0_0 = arith.constant 0 : index
    %c0_1 = arith.constant 0 : index
    %0 = vector.load %arg2[%c0, %c0_0, %c0_1] : memref<1x64x64xf32, #tpu.memory_space<vmem>>, vector<1x64x64xf32>
    %1 = vector.shape_cast %0 : vector<1x64x64xf32> to vector<64x64xf32>
    %2 = arith.mulf %1, %1 : vector<64x64xf32>
    %cst = arith.constant dense<0.000000e+00> : vector<64xf32>
    %3 = vector.multi_reduction <add>, %2, %cst [1] : vector<64x64xf32> to vector<64xf32>
    %4 = vector.shape_cast %3 : vector<64xf32> to vector<64x1xf32>
    %cst_2 = arith.constant 6.400000e+01 : f32
    %5 = vector.broadcast %cst_2 : f32 to vector<64x1xf32>
    %6 = arith.divf %4, %5 : vector<64x1xf32>
    %cst_3 = arith.constant 9.99999974E-6 : f32
    %7 = vector.broadcast %cst_3 : f32 to vector<64x1xf32>
    %8 = arith.addf %6, %7 : vector<64x1xf32>
    %9 = math.rsqrt %8 : vector<64x1xf32>
    %10 = vector.broadcast %9 : vector<64x1xf32> to vector<64x64xf32>
    %11 = arith.mulf %1, %10 : vector<64x64xf32>
    %c0_4 = arith.constant 0 : index
    %c0_5 = arith.constant 0 : index
    %12 = vector.load %arg3[%c0_4, %c0_5] : memref<1x64xf32, #tpu.memory_space<vmem>>, vector<1x64xf32>
    %13 = vector.broadcast %12 : vector<1x64xf32> to vector<64x64xf32>
    %14 = arith.mulf %11, %13 : vector<64x64xf32>
    %c0_6 = arith.constant 0 : index
    %c0_7 = arith.constant 0 : index
    %15 = vector.load %arg4[%c0_6, %c0_7] : memref<64x256xf32, #tpu.memory_space<vmem>>, vector<64x256xf32>
    %cst_8 = arith.constant dense<0.000000e+00> : vector<64x256xf32>
    %16 = tpu.matmul %14, %15, %cst_8 {dimension_numbers = #tpu.dot_dimension_numbers<[1], [0], [0], [1], [0, 0, 1, 1], [], []>} : vector<64x64xf32>, vector<64x256xf32>, vector<64x256xf32> -> vector<64x256xf32>
    %c0_9 = arith.constant 0 : index
    %c0_10 = arith.constant 0 : index
    %17 = vector.load %arg5[%c0_9, %c0_10] : memref<1x256xf32, #tpu.memory_space<vmem>>, vector<1x256xf32>
    %18 = vector.broadcast %17 : vector<1x256xf32> to vector<64x256xf32>
    %19 = arith.addf %16, %18 : vector<64x256xf32>
    %20 = vector.extract_strided_slice %19 {offsets = [0, 0], sizes = [64, 128], strides = [1, 1]} : vector<64x256xf32> to vector<64x128xf32>
    %21 = vector.extract_strided_slice %19 {offsets = [0, 128], sizes = [64, 128], strides = [1, 1]} : vector<64x256xf32> to vector<64x128xf32>
    %c0_11 = arith.constant 0 : index
    %c0_12 = arith.constant 0 : index
    %22 = vector.load %arg20[%c0_11, %c0_12] : memref<64x128xf32, #tpu.memory_space<vmem>>, vector<64x128xf32>
    tpu.vector_store %arg20[%c0_11, %c0_12], %21 {strides = array<i32>} : memref<64x128xf32, #tpu.memory_space<vmem>>, vector<64x128xf32>,
    %c0_i32 = arith.constant 0 : i32
    %23 = arith.cmpi eq, %arg1, %c0_i32 : i32
    %24 = arith.extui %23 : i1 to i32
    %c0_i32_13 = arith.constant 0 : i32
    %25 = arith.cmpi ne, %24, %c0_i32_13 : i32
    scf.if %25 {
      %cst_62 = arith.constant 0.000000e+00 : f32
      %100 = vector.broadcast %cst_62 : f32 to vector<16x8x128xf32>
      %c0_63 = arith.constant 0 : index
      %c0_64 = arith.constant 0 : index
      %c0_65 = arith.constant 0 : index
      %101 = vector.load %arg14[%c0_63, %c0_64, %c0_65] : memref<16x8x128xf32, #tpu.memory_space<vmem>>, vector<16x8x128xf32>
      tpu.vector_store %arg14[%c0_63, %c0_64, %c0_65], %100 {strides = array<i32>} : memref<16x8x128xf32, #tpu.memory_space<vmem>>, vector<16x8x128xf32>,
      %cst_66 = arith.constant 0.000000e+00 : f32
      %102 = vector.broadcast %cst_66 : f32 to vector<16x128xf32>
      %c0_67 = arith.constant 0 : index
      %c0_68 = arith.constant 0 : index
      %103 = vector.load %arg15[%c0_67, %c0_68] : memref<80x128xf32, #tpu.memory_space<vmem>>, vector<16x128xf32>
      tpu.vector_store %arg15[%c0_67, %c0_68], %102 {strides = array<i32>} : memref<80x128xf32, #tpu.memory_space<vmem>>, vector<16x128xf32>,
    } else {
    }
    %c16 = arith.constant 16 : index
    %c0_14 = arith.constant 0 : index
    %26 = vector.load %arg15[%c16, %c0_14] : memref<80x128xf32, #tpu.memory_space<vmem>>, vector<64x128xf32>
    tpu.vector_store %arg15[%c16, %c0_14], %20 {strides = array<i32>} : memref<80x128xf32, #tpu.memory_space<vmem>>, vector<64x128xf32>,
    %cst_15 = arith.constant 0.000000e+00 : f32
    %27 = vector.broadcast %cst_15 : f32 to vector<64x128xf32>
    %c0_16 = arith.constant 0 : index
    %c0_17 = arith.constant 0 : index
    %28 = vector.load %arg6[%c0_16, %c0_17] : memref<3x128xf32, #tpu.memory_space<vmem>>, vector<1x128xf32>
    %c0_18 = arith.constant 0 : index
    %c0_19 = arith.constant 0 : index
    %29 = vector.load %arg15[%c0_18, %c0_19] : memref<80x128xf32, #tpu.memory_space<vmem>>, vector<64x128xf32>
    %30 = vector.broadcast %28 : vector<1x128xf32> to vector<64x128xf32>
    %31 = arith.mulf %30, %29 : vector<64x128xf32>
    %32 = arith.addf %27, %31 : vector<64x128xf32>
    %c1 = arith.constant 1 : index
    %c0_20 = arith.constant 0 : index
    %33 = vector.load %arg6[%c1, %c0_20] : memref<3x128xf32, #tpu.memory_space<vmem>>, vector<1x128xf32>
    %c8 = arith.constant 8 : index
    %c0_21 = arith.constant 0 : index
    %34 = vector.load %arg15[%c8, %c0_21] : memref<80x128xf32, #tpu.memory_space<vmem>>, vector<64x128xf32>
    %35 = vector.broadcast %33 : vector<1x128xf32> to vector<64x128xf32>
    %36 = arith.mulf %35, %34 : vector<64x128xf32>
    %37 = arith.addf %32, %36 : vector<64x128xf32>
    %c2 = arith.constant 2 : index
    %c0_22 = arith.constant 0 : index
    %38 = vector.load %arg6[%c2, %c0_22] : memref<3x128xf32, #tpu.memory_space<vmem>>, vector<1x128xf32>
    %c16_23 = arith.constant 16 : index
    %c0_24 = arith.constant 0 : index
    %39 = vector.load %arg15[%c16_23, %c0_24] : memref<80x128xf32, #tpu.memory_space<vmem>>, vector<64x128xf32>
    %40 = vector.broadcast %38 : vector<1x128xf32> to vector<64x128xf32>
    %41 = arith.mulf %40, %39 : vector<64x128xf32>
    %42 = arith.addf %37, %41 : vector<64x128xf32>
    %c0_25 = arith.constant 0 : index
    %c0_26 = arith.constant 0 : index
    %43 = vector.load %arg7[%c0_25, %c0_26] : memref<1x128xf32, #tpu.memory_space<vmem>>, vector<1x128xf32>
    %44 = vector.broadcast %43 : vector<1x128xf32> to vector<64x128xf32>
    %45 = arith.addf %42, %44 : vector<64x128xf32>
    %c64 = arith.constant 64 : index
    %c0_27 = arith.constant 0 : index
    %46 = vector.load %arg15[%c64, %c0_27] : memref<80x128xf32, #tpu.memory_space<vmem>>, vector<16x128xf32>
    %c0_28 = arith.constant 0 : index
    %c0_29 = arith.constant 0 : index
    %47 = vector.load %arg15[%c0_28, %c0_29] : memref<80x128xf32, #tpu.memory_space<vmem>>, vector<16x128xf32>
    tpu.vector_store %arg15[%c0_28, %c0_29], %46 {strides = array<i32>} : memref<80x128xf32, #tpu.memory_space<vmem>>, vector<16x128xf32>,
    %48 = arith.negf %45 : vector<64x128xf32>
    %49 = math.exp %48 : vector<64x128xf32>
    %cst_30 = arith.constant 1.000000e+00 : f32
    %50 = vector.broadcast %cst_30 : f32 to vector<64x128xf32>
    %51 = arith.addf %50, %49 : vector<64x128xf32>
    %52 = arith.divf %50, %51 : vector<64x128xf32>
    %53 = arith.mulf %45, %52 : vector<64x128xf32>
    %c0_31 = arith.constant 0 : index
    %c0_32 = arith.constant 0 : index
    %54 = vector.load %arg8[%c0_31, %c0_32] : memref<128x256xf32, #tpu.memory_space<vmem>>, vector<128x256xf32>
    %cst_33 = arith.constant dense<0.000000e+00> : vector<64x256xf32>
    %55 = tpu.matmul %53, %54, %cst_33 {dimension_numbers = #tpu.dot_dimension_numbers<[1], [0], [0], [1], [0, 0, 1, 1], [], []>} : vector<64x128xf32>, vector<128x256xf32>, vector<64x256xf32> -> vector<64x256xf32>
    %56 = vector.extract_strided_slice %55 {offsets = [0, 0], sizes = [64, 128], strides = [1, 1]} : vector<64x256xf32> to vector<64x128xf32>
    %c0_34 = arith.constant 0 : index
    %c0_35 = arith.constant 0 : index
    %57 = vector.load %arg9[%c0_34, %c0_35] : memref<1x128xf32, #tpu.memory_space<vmem>>, vector<1x128xf32>
    %58 = vector.broadcast %57 : vector<1x128xf32> to vector<64x128xf32>
    %59 = arith.addf %56, %58 : vector<64x128xf32>
    %cst_36 = arith.constant 0.000000e+00 : f32
    %60 = vector.broadcast %cst_36 : f32 to vector<64x128xf32>
    %61 = arith.maximumf %59, %60 : vector<64x128xf32>
    %62 = vector.broadcast %cst_36 : f32 to vector<64x128xf32>
    %63 = arith.subf %59, %62 : vector<64x128xf32>
    %64 = arith.cmpf one, %63, %63 : vector<64x128xf32>
    %65 = vector.broadcast %cst_36 : f32 to vector<64x128xf32>
    %66 = arith.addf %59, %65 : vector<64x128xf32>
    %67 = math.absf %63 : vector<64x128xf32>
    %cst_37 = arith.constant 0.000000e+00 : f32
    %68 = vector.broadcast %cst_37 : f32 to vector<64x128xf32>
    %69 = arith.subf %68, %67 : vector<64x128xf32>
    %70 = math.exp %69 : vector<64x128xf32>
    %71 = math.log1p %70 : vector<64x128xf32>
    %72 = arith.addf %61, %71 : vector<64x128xf32>
    %73 = arith.select %64, %66, %72 : vector<64x128xi1>, vector<64x128xf32>
    %c0_38 = arith.constant 0 : index
    %c0_39 = arith.constant 0 : index
    %74 = vector.load %arg16[%c0_38, %c0_39] : memref<64x128xf32, #tpu.memory_space<vmem>>, vector<64x128xf32>
    tpu.vector_store %arg16[%c0_38, %c0_39], %73 {strides = array<i32>} : memref<64x128xf32, #tpu.memory_space<vmem>>, vector<64x128xf32>,
    %75 = arith.mulf %73, %53 : vector<64x128xf32>
    %c0_40 = arith.constant 0 : index
    %c0_41 = arith.constant 0 : index
    %76 = vector.load %arg17[%c0_40, %c0_41] : memref<64x128xf32, #tpu.memory_space<vmem>>, vector<64x128xf32>
    tpu.vector_store %arg17[%c0_40, %c0_41], %75 {strides = array<i32>} : memref<64x128xf32, #tpu.memory_space<vmem>>, vector<64x128xf32>,
    %77 = vector.extract_strided_slice %55 {offsets = [0, 128], sizes = [64, 128], strides = [1, 1]} : vector<64x256xf32> to vector<64x128xf32>
    %c0_42 = arith.constant 0 : index
    %c0_43 = arith.constant 0 : index
    %78 = vector.load %arg18[%c0_42, %c0_43] : memref<64x128xf32, #tpu.memory_space<vmem>>, vector<64x128xf32>
    tpu.vector_store %arg18[%c0_42, %c0_43], %77 {strides = array<i32>} : memref<64x128xf32, #tpu.memory_space<vmem>>, vector<64x128xf32>,
    %c0_i32_44 = arith.constant 0 : i32
    %c8_i32 = arith.constant 8 : i32
    %79 = arith.addi %c0_i32_44, %c8_i32 : i32
    %c1_i32 = arith.constant 1 : i32
    scf.for %arg21 = %c0_i32_44 to %79 step %c1_i32  : i32 {
      %c1_i32_62 = arith.constant 1 : i32
      %100 = arith.muli %arg21, %c1_i32_62 : i32
      %c0_i32_63 = arith.constant 0 : i32
      %101 = arith.addi %c0_i32_63, %100 : i32
      %c8_i32_64 = arith.constant 8 : i32
      %102 = arith.muli %101, %c8_i32_64 : i32
      %103 = tpu.assume_multiple %102, 8 : i32
      %104 = arith.index_cast %103 : i32 to index
      %c0_65 = arith.constant 0 : index
      %105 = vector.load %arg18[%104, %c0_65] : memref<64x128xf32, #tpu.memory_space<vmem>>, vector<8x128xf32>
      %106 = arith.index_cast %103 : i32 to index
      %c0_66 = arith.constant 0 : index
      %107 = vector.load %arg16[%106, %c0_66] : memref<64x128xf32, #tpu.memory_space<vmem>>, vector<8x128xf32>
      %108 = arith.index_cast %103 : i32 to index
      %c0_67 = arith.constant 0 : index
      %109 = vector.load %arg17[%108, %c0_67] : memref<64x128xf32, #tpu.memory_space<vmem>>, vector<8x128xf32>
      %cst_68 = arith.constant 0.000000e+00 : f32
      %110 = vector.broadcast %cst_68 : f32 to vector<8x128xf32>
      %c0_69 = arith.constant 0 : index
      %c0_70 = arith.constant 0 : index
      %111 = vector.load %arg10[%c0_69, %c0_70] : memref<16x128xf32, #tpu.memory_space<vmem>>, vector<1x128xf32>
      %112 = vector.broadcast %111 : vector<1x128xf32> to vector<8x128xf32>
      %113 = arith.mulf %107, %112 : vector<8x128xf32>
      %114 = math.exp %113 : vector<8x128xf32>
      %c0_71 = arith.constant 0 : index
      %c0_72 = arith.constant 0 : index
      %c0_73 = arith.constant 0 : index
      %115 = vector.load %arg14[%c0_71, %c0_72, %c0_73] : memref<16x8x128xf32, #tpu.memory_space<vmem>>, vector<1x8x128xf32>
      %116 = vector.shape_cast %115 : vector<1x8x128xf32> to vector<8x128xf32>
      %117 = arith.mulf %114, %116 : vector<8x128xf32>
      %118 = vector.extract_strided_slice %105 {offsets = [0, 0], sizes = [8, 1], strides = [1, 1]} : vector<8x128xf32> to vector<8x1xf32>
      %119 = vector.broadcast %118 : vector<8x1xf32> to vector<8x128xf32>
      %120 = arith.mulf %119, %109 : vector<8x128xf32>
      %121 = arith.addf %117, %120 : vector<8x128xf32>
      %c0_74 = arith.constant 0 : index
      %c0_75 = arith.constant 0 : index
      %c0_76 = arith.constant 0 : index
      %122 = vector.load %arg14[%c0_74, %c0_75, %c0_76] : memref<16x8x128xf32, #tpu.memory_space<vmem>>, vector<1x8x128xf32>
      %123 = vector.shape_cast %122 : vector<1x8x128xf32> to vector<8x128xf32>
      %124 = vector.shape_cast %121 : vector<8x128xf32> to vector<1x8x128xf32>
      tpu.vector_store %arg14[%c0_74, %c0_75, %c0_76], %124 {strides = array<i32>} : memref<16x8x128xf32, #tpu.memory_space<vmem>>, vector<1x8x128xf32>,
      %125 = vector.extract_strided_slice %105 {offsets = [0, 16], sizes = [8, 1], strides = [1, 1]} : vector<8x128xf32> to vector<8x1xf32>
      %126 = vector.broadcast %125 : vector<8x1xf32> to vector<8x128xf32>
      %127 = arith.mulf %121, %126 : vector<8x128xf32>
      %128 = arith.addf %110, %127 : vector<8x128xf32>
      %c1_77 = arith.constant 1 : index
      %c0_78 = arith.constant 0 : index
      %129 = vector.load %arg10[%c1_77, %c0_78] : memref<16x128xf32, #tpu.memory_space<vmem>>, vector<1x128xf32>
      %130 = vector.broadcast %129 : vector<1x128xf32> to vector<8x128xf32>
      %131 = arith.mulf %107, %130 : vector<8x128xf32>
      %132 = math.exp %131 : vector<8x128xf32>
      %c1_79 = arith.constant 1 : index
      %c0_80 = arith.constant 0 : index
      %c0_81 = arith.constant 0 : index
      %133 = vector.load %arg14[%c1_79, %c0_80, %c0_81] : memref<16x8x128xf32, #tpu.memory_space<vmem>>, vector<1x8x128xf32>
      %134 = vector.shape_cast %133 : vector<1x8x128xf32> to vector<8x128xf32>
      %135 = arith.mulf %132, %134 : vector<8x128xf32>
      %136 = vector.extract_strided_slice %105 {offsets = [0, 1], sizes = [8, 1], strides = [1, 1]} : vector<8x128xf32> to vector<8x1xf32>
      %137 = vector.broadcast %136 : vector<8x1xf32> to vector<8x128xf32>
      %138 = arith.mulf %137, %109 : vector<8x128xf32>
      %139 = arith.addf %135, %138 : vector<8x128xf32>
      %c1_82 = arith.constant 1 : index
      %c0_83 = arith.constant 0 : index
      %c0_84 = arith.constant 0 : index
      %140 = vector.load %arg14[%c1_82, %c0_83, %c0_84] : memref<16x8x128xf32, #tpu.memory_space<vmem>>, vector<1x8x128xf32>
      %141 = vector.shape_cast %140 : vector<1x8x128xf32> to vector<8x128xf32>
      %142 = vector.shape_cast %139 : vector<8x128xf32> to vector<1x8x128xf32>
      tpu.vector_store %arg14[%c1_82, %c0_83, %c0_84], %142 {strides = array<i32>} : memref<16x8x128xf32, #tpu.memory_space<vmem>>, vector<1x8x128xf32>,
      %143 = vector.extract_strided_slice %105 {offsets = [0, 17], sizes = [8, 1], strides = [1, 1]} : vector<8x128xf32> to vector<8x1xf32>
      %144 = vector.broadcast %143 : vector<8x1xf32> to vector<8x128xf32>
      %145 = arith.mulf %139, %144 : vector<8x128xf32>
      %146 = arith.addf %128, %145 : vector<8x128xf32>
      %c2_85 = arith.constant 2 : index
      %c0_86 = arith.constant 0 : index
      %147 = vector.load %arg10[%c2_85, %c0_86] : memref<16x128xf32, #tpu.memory_space<vmem>>, vector<1x128xf32>
      %148 = vector.broadcast %147 : vector<1x128xf32> to vector<8x128xf32>
      %149 = arith.mulf %107, %148 : vector<8x128xf32>
      %150 = math.exp %149 : vector<8x128xf32>
      %c2_87 = arith.constant 2 : index
      %c0_88 = arith.constant 0 : index
      %c0_89 = arith.constant 0 : index
      %151 = vector.load %arg14[%c2_87, %c0_88, %c0_89] : memref<16x8x128xf32, #tpu.memory_space<vmem>>, vector<1x8x128xf32>
      %152 = vector.shape_cast %151 : vector<1x8x128xf32> to vector<8x128xf32>
      %153 = arith.mulf %150, %152 : vector<8x128xf32>
      %154 = vector.extract_strided_slice %105 {offsets = [0, 2], sizes = [8, 1], strides = [1, 1]} : vector<8x128xf32> to vector<8x1xf32>
      %155 = vector.broadcast %154 : vector<8x1xf32> to vector<8x128xf32>
      %156 = arith.mulf %155, %109 : vector<8x128xf32>
      %157 = arith.addf %153, %156 : vector<8x128xf32>
      %c2_90 = arith.constant 2 : index
      %c0_91 = arith.constant 0 : index
      %c0_92 = arith.constant 0 : index
      %158 = vector.load %arg14[%c2_90, %c0_91, %c0_92] : memref<16x8x128xf32, #tpu.memory_space<vmem>>, vector<1x8x128xf32>
      %159 = vector.shape_cast %158 : vector<1x8x128xf32> to vector<8x128xf32>
      %160 = vector.shape_cast %157 : vector<8x128xf32> to vector<1x8x128xf32>
      tpu.vector_store %arg14[%c2_90, %c0_91, %c0_92], %160 {strides = array<i32>} : memref<16x8x128xf32, #tpu.memory_space<vmem>>, vector<1x8x128xf32>,
      %161 = vector.extract_strided_slice %105 {offsets = [0, 18], sizes = [8, 1], strides = [1, 1]} : vector<8x128xf32> to vector<8x1xf32>
      %162 = vector.broadcast %161 : vector<8x1xf32> to vector<8x128xf32>
      %163 = arith.mulf %157, %162 : vector<8x128xf32>
      %164 = arith.addf %146, %163 : vector<8x128xf32>
      %c3 = arith.constant 3 : index
      %c0_93 = arith.constant 0 : index
      %165 = vector.load %arg10[%c3, %c0_93] : memref<16x128xf32, #tpu.memory_space<vmem>>, vector<1x128xf32>
      %166 = vector.broadcast %165 : vector<1x128xf32> to vector<8x128xf32>
      %167 = arith.mulf %107, %166 : vector<8x128xf32>
      %168 = math.exp %167 : vector<8x128xf32>
      %c3_94 = arith.constant 3 : index
      %c0_95 = arith.constant 0 : index
      %c0_96 = arith.constant 0 : index
      %169 = vector.load %arg14[%c3_94, %c0_95, %c0_96] : memref<16x8x128xf32, #tpu.memory_space<vmem>>, vector<1x8x128xf32>
      %170 = vector.shape_cast %169 : vector<1x8x128xf32> to vector<8x128xf32>
      %171 = arith.mulf %168, %170 : vector<8x128xf32>
      %172 = vector.extract_strided_slice %105 {offsets = [0, 3], sizes = [8, 1], strides = [1, 1]} : vector<8x128xf32> to vector<8x1xf32>
      %173 = vector.broadcast %172 : vector<8x1xf32> to vector<8x128xf32>
      %174 = arith.mulf %173, %109 : vector<8x128xf32>
      %175 = arith.addf %171, %174 : vector<8x128xf32>
      %c3_97 = arith.constant 3 : index
      %c0_98 = arith.constant 0 : index
      %c0_99 = arith.constant 0 : index
      %176 = vector.load %arg14[%c3_97, %c0_98, %c0_99] : memref<16x8x128xf32, #tpu.memory_space<vmem>>, vector<1x8x128xf32>
      %177 = vector.shape_cast %176 : vector<1x8x128xf32> to vector<8x128xf32>
      %178 = vector.shape_cast %175 : vector<8x128xf32> to vector<1x8x128xf32>
      tpu.vector_store %arg14[%c3_97, %c0_98, %c0_99], %178 {strides = array<i32>} : memref<16x8x128xf32, #tpu.memory_space<vmem>>, vector<1x8x128xf32>,
      %179 = vector.extract_strided_slice %105 {offsets = [0, 19], sizes = [8, 1], strides = [1, 1]} : vector<8x128xf32> to vector<8x1xf32>
      %180 = vector.broadcast %179 : vector<8x1xf32> to vector<8x128xf32>
      %181 = arith.mulf %175, %180 : vector<8x128xf32>
      %182 = arith.addf %164, %181 : vector<8x128xf32>
      %c4 = arith.constant 4 : index
      %c0_100 = arith.constant 0 : index
      %183 = vector.load %arg10[%c4, %c0_100] : memref<16x128xf32, #tpu.memory_space<vmem>>, vector<1x128xf32>
      %184 = vector.broadcast %183 : vector<1x128xf32> to vector<8x128xf32>
      %185 = arith.mulf %107, %184 : vector<8x128xf32>
      %186 = math.exp %185 : vector<8x128xf32>
      %c4_101 = arith.constant 4 : index
      %c0_102 = arith.constant 0 : index
      %c0_103 = arith.constant 0 : index
      %187 = vector.load %arg14[%c4_101, %c0_102, %c0_103] : memref<16x8x128xf32, #tpu.memory_space<vmem>>, vector<1x8x128xf32>
      %188 = vector.shape_cast %187 : vector<1x8x128xf32> to vector<8x128xf32>
      %189 = arith.mulf %186, %188 : vector<8x128xf32>
      %190 = vector.extract_strided_slice %105 {offsets = [0, 4], sizes = [8, 1], strides = [1, 1]} : vector<8x128xf32> to vector<8x1xf32>
      %191 = vector.broadcast %190 : vector<8x1xf32> to vector<8x128xf32>
      %192 = arith.mulf %191, %109 : vector<8x128xf32>
      %193 = arith.addf %189, %192 : vector<8x128xf32>
      %c4_104 = arith.constant 4 : index
      %c0_105 = arith.constant 0 : index
      %c0_106 = arith.constant 0 : index
      %194 = vector.load %arg14[%c4_104, %c0_105, %c0_106] : memref<16x8x128xf32, #tpu.memory_space<vmem>>, vector<1x8x128xf32>
      %195 = vector.shape_cast %194 : vector<1x8x128xf32> to vector<8x128xf32>
      %196 = vector.shape_cast %193 : vector<8x128xf32> to vector<1x8x128xf32>
      tpu.vector_store %arg14[%c4_104, %c0_105, %c0_106], %196 {strides = array<i32>} : memref<16x8x128xf32, #tpu.memory_space<vmem>>, vector<1x8x128xf32>,
      %197 = vector.extract_strided_slice %105 {offsets = [0, 20], sizes = [8, 1], strides = [1, 1]} : vector<8x128xf32> to vector<8x1xf32>
      %198 = vector.broadcast %197 : vector<8x1xf32> to vector<8x128xf32>
      %199 = arith.mulf %193, %198 : vector<8x128xf32>
      %200 = arith.addf %182, %199 : vector<8x128xf32>
      %c5 = arith.constant 5 : index
      %c0_107 = arith.constant 0 : index
      %201 = vector.load %arg10[%c5, %c0_107] : memref<16x128xf32, #tpu.memory_space<vmem>>, vector<1x128xf32>
      %202 = vector.broadcast %201 : vector<1x128xf32> to vector<8x128xf32>
      %203 = arith.mulf %107, %202 : vector<8x128xf32>
      %204 = math.exp %203 : vector<8x128xf32>
      %c5_108 = arith.constant 5 : index
      %c0_109 = arith.constant 0 : index
      %c0_110 = arith.constant 0 : index
      %205 = vector.load %arg14[%c5_108, %c0_109, %c0_110] : memref<16x8x128xf32, #tpu.memory_space<vmem>>, vector<1x8x128xf32>
      %206 = vector.shape_cast %205 : vector<1x8x128xf32> to vector<8x128xf32>
      %207 = arith.mulf %204, %206 : vector<8x128xf32>
      %208 = vector.extract_strided_slice %105 {offsets = [0, 5], sizes = [8, 1], strides = [1, 1]} : vector<8x128xf32> to vector<8x1xf32>
      %209 = vector.broadcast %208 : vector<8x1xf32> to vector<8x128xf32>
      %210 = arith.mulf %209, %109 : vector<8x128xf32>
      %211 = arith.addf %207, %210 : vector<8x128xf32>
      %c5_111 = arith.constant 5 : index
      %c0_112 = arith.constant 0 : index
      %c0_113 = arith.constant 0 : index
      %212 = vector.load %arg14[%c5_111, %c0_112, %c0_113] : memref<16x8x128xf32, #tpu.memory_space<vmem>>, vector<1x8x128xf32>
      %213 = vector.shape_cast %212 : vector<1x8x128xf32> to vector<8x128xf32>
      %214 = vector.shape_cast %211 : vector<8x128xf32> to vector<1x8x128xf32>
      tpu.vector_store %arg14[%c5_111, %c0_112, %c0_113], %214 {strides = array<i32>} : memref<16x8x128xf32, #tpu.memory_space<vmem>>, vector<1x8x128xf32>,
      %215 = vector.extract_strided_slice %105 {offsets = [0, 21], sizes = [8, 1], strides = [1, 1]} : vector<8x128xf32> to vector<8x1xf32>
      %216 = vector.broadcast %215 : vector<8x1xf32> to vector<8x128xf32>
      %217 = arith.mulf %211, %216 : vector<8x128xf32>
      %218 = arith.addf %200, %217 : vector<8x128xf32>
      %c6 = arith.constant 6 : index
      %c0_114 = arith.constant 0 : index
      %219 = vector.load %arg10[%c6, %c0_114] : memref<16x128xf32, #tpu.memory_space<vmem>>, vector<1x128xf32>
      %220 = vector.broadcast %219 : vector<1x128xf32> to vector<8x128xf32>
      %221 = arith.mulf %107, %220 : vector<8x128xf32>
      %222 = math.exp %221 : vector<8x128xf32>
      %c6_115 = arith.constant 6 : index
      %c0_116 = arith.constant 0 : index
      %c0_117 = arith.constant 0 : index
      %223 = vector.load %arg14[%c6_115, %c0_116, %c0_117] : memref<16x8x128xf32, #tpu.memory_space<vmem>>, vector<1x8x128xf32>
      %224 = vector.shape_cast %223 : vector<1x8x128xf32> to vector<8x128xf32>
      %225 = arith.mulf %222, %224 : vector<8x128xf32>
      %226 = vector.extract_strided_slice %105 {offsets = [0, 6], sizes = [8, 1], strides = [1, 1]} : vector<8x128xf32> to vector<8x1xf32>
      %227 = vector.broadcast %226 : vector<8x1xf32> to vector<8x128xf32>
      %228 = arith.mulf %227, %109 : vector<8x128xf32>
      %229 = arith.addf %225, %228 : vector<8x128xf32>
      %c6_118 = arith.constant 6 : index
      %c0_119 = arith.constant 0 : index
      %c0_120 = arith.constant 0 : index
      %230 = vector.load %arg14[%c6_118, %c0_119, %c0_120] : memref<16x8x128xf32, #tpu.memory_space<vmem>>, vector<1x8x128xf32>
      %231 = vector.shape_cast %230 : vector<1x8x128xf32> to vector<8x128xf32>
      %232 = vector.shape_cast %229 : vector<8x128xf32> to vector<1x8x128xf32>
      tpu.vector_store %arg14[%c6_118, %c0_119, %c0_120], %232 {strides = array<i32>} : memref<16x8x128xf32, #tpu.memory_space<vmem>>, vector<1x8x128xf32>,
      %233 = vector.extract_strided_slice %105 {offsets = [0, 22], sizes = [8, 1], strides = [1, 1]} : vector<8x128xf32> to vector<8x1xf32>
      %234 = vector.broadcast %233 : vector<8x1xf32> to vector<8x128xf32>
      %235 = arith.mulf %229, %234 : vector<8x128xf32>
      %236 = arith.addf %218, %235 : vector<8x128xf32>
      %c7 = arith.constant 7 : index
      %c0_121 = arith.constant 0 : index
      %237 = vector.load %arg10[%c7, %c0_121] : memref<16x128xf32, #tpu.memory_space<vmem>>, vector<1x128xf32>
      %238 = vector.broadcast %237 : vector<1x128xf32> to vector<8x128xf32>
      %239 = arith.mulf %107, %238 : vector<8x128xf32>
      %240 = math.exp %239 : vector<8x128xf32>
      %c7_122 = arith.constant 7 : index
      %c0_123 = arith.constant 0 : index
      %c0_124 = arith.constant 0 : index
      %241 = vector.load %arg14[%c7_122, %c0_123, %c0_124] : memref<16x8x128xf32, #tpu.memory_space<vmem>>, vector<1x8x128xf32>
      %242 = vector.shape_cast %241 : vector<1x8x128xf32> to vector<8x128xf32>
      %243 = arith.mulf %240, %242 : vector<8x128xf32>
      %244 = vector.extract_strided_slice %105 {offsets = [0, 7], sizes = [8, 1], strides = [1, 1]} : vector<8x128xf32> to vector<8x1xf32>
      %245 = vector.broadcast %244 : vector<8x1xf32> to vector<8x128xf32>
      %246 = arith.mulf %245, %109 : vector<8x128xf32>
      %247 = arith.addf %243, %246 : vector<8x128xf32>
      %c7_125 = arith.constant 7 : index
      %c0_126 = arith.constant 0 : index
      %c0_127 = arith.constant 0 : index
      %248 = vector.load %arg14[%c7_125, %c0_126, %c0_127] : memref<16x8x128xf32, #tpu.memory_space<vmem>>, vector<1x8x128xf32>
      %249 = vector.shape_cast %248 : vector<1x8x128xf32> to vector<8x128xf32>
      %250 = vector.shape_cast %247 : vector<8x128xf32> to vector<1x8x128xf32>
      tpu.vector_store %arg14[%c7_125, %c0_126, %c0_127], %250 {strides = array<i32>} : memref<16x8x128xf32, #tpu.memory_space<vmem>>, vector<1x8x128xf32>,
      %251 = vector.extract_strided_slice %105 {offsets = [0, 23], sizes = [8, 1], strides = [1, 1]} : vector<8x128xf32> to vector<8x1xf32>
      %252 = vector.broadcast %251 : vector<8x1xf32> to vector<8x128xf32>
      %253 = arith.mulf %247, %252 : vector<8x128xf32>
      %254 = arith.addf %236, %253 : vector<8x128xf32>
      %c8_128 = arith.constant 8 : index
      %c0_129 = arith.constant 0 : index
      %255 = vector.load %arg10[%c8_128, %c0_129] : memref<16x128xf32, #tpu.memory_space<vmem>>, vector<1x128xf32>
      %256 = vector.broadcast %255 : vector<1x128xf32> to vector<8x128xf32>
      %257 = arith.mulf %107, %256 : vector<8x128xf32>
      %258 = math.exp %257 : vector<8x128xf32>
      %c8_130 = arith.constant 8 : index
      %c0_131 = arith.constant 0 : index
      %c0_132 = arith.constant 0 : index
      %259 = vector.load %arg14[%c8_130, %c0_131, %c0_132] : memref<16x8x128xf32, #tpu.memory_space<vmem>>, vector<1x8x128xf32>
      %260 = vector.shape_cast %259 : vector<1x8x128xf32> to vector<8x128xf32>
      %261 = arith.mulf %258, %260 : vector<8x128xf32>
      %262 = vector.extract_strided_slice %105 {offsets = [0, 8], sizes = [8, 1], strides = [1, 1]} : vector<8x128xf32> to vector<8x1xf32>
      %263 = vector.broadcast %262 : vector<8x1xf32> to vector<8x128xf32>
      %264 = arith.mulf %263, %109 : vector<8x128xf32>
      %265 = arith.addf %261, %264 : vector<8x128xf32>
      %c8_133 = arith.constant 8 : index
      %c0_134 = arith.constant 0 : index
      %c0_135 = arith.constant 0 : index
      %266 = vector.load %arg14[%c8_133, %c0_134, %c0_135] : memref<16x8x128xf32, #tpu.memory_space<vmem>>, vector<1x8x128xf32>
      %267 = vector.shape_cast %266 : vector<1x8x128xf32> to vector<8x128xf32>
      %268 = vector.shape_cast %265 : vector<8x128xf32> to vector<1x8x128xf32>
      tpu.vector_store %arg14[%c8_133, %c0_134, %c0_135], %268 {strides = array<i32>} : memref<16x8x128xf32, #tpu.memory_space<vmem>>, vector<1x8x128xf32>,
      %269 = vector.extract_strided_slice %105 {offsets = [0, 24], sizes = [8, 1], strides = [1, 1]} : vector<8x128xf32> to vector<8x1xf32>
      %270 = vector.broadcast %269 : vector<8x1xf32> to vector<8x128xf32>
      %271 = arith.mulf %265, %270 : vector<8x128xf32>
      %272 = arith.addf %254, %271 : vector<8x128xf32>
      %c9 = arith.constant 9 : index
      %c0_136 = arith.constant 0 : index
      %273 = vector.load %arg10[%c9, %c0_136] : memref<16x128xf32, #tpu.memory_space<vmem>>, vector<1x128xf32>
      %274 = vector.broadcast %273 : vector<1x128xf32> to vector<8x128xf32>
      %275 = arith.mulf %107, %274 : vector<8x128xf32>
      %276 = math.exp %275 : vector<8x128xf32>
      %c9_137 = arith.constant 9 : index
      %c0_138 = arith.constant 0 : index
      %c0_139 = arith.constant 0 : index
      %277 = vector.load %arg14[%c9_137, %c0_138, %c0_139] : memref<16x8x128xf32, #tpu.memory_space<vmem>>, vector<1x8x128xf32>
      %278 = vector.shape_cast %277 : vector<1x8x128xf32> to vector<8x128xf32>
      %279 = arith.mulf %276, %278 : vector<8x128xf32>
      %280 = vector.extract_strided_slice %105 {offsets = [0, 9], sizes = [8, 1], strides = [1, 1]} : vector<8x128xf32> to vector<8x1xf32>
      %281 = vector.broadcast %280 : vector<8x1xf32> to vector<8x128xf32>
      %282 = arith.mulf %281, %109 : vector<8x128xf32>
      %283 = arith.addf %279, %282 : vector<8x128xf32>
      %c9_140 = arith.constant 9 : index
      %c0_141 = arith.constant 0 : index
      %c0_142 = arith.constant 0 : index
      %284 = vector.load %arg14[%c9_140, %c0_141, %c0_142] : memref<16x8x128xf32, #tpu.memory_space<vmem>>, vector<1x8x128xf32>
      %285 = vector.shape_cast %284 : vector<1x8x128xf32> to vector<8x128xf32>
      %286 = vector.shape_cast %283 : vector<8x128xf32> to vector<1x8x128xf32>
      tpu.vector_store %arg14[%c9_140, %c0_141, %c0_142], %286 {strides = array<i32>} : memref<16x8x128xf32, #tpu.memory_space<vmem>>, vector<1x8x128xf32>,
      %287 = vector.extract_strided_slice %105 {offsets = [0, 25], sizes = [8, 1], strides = [1, 1]} : vector<8x128xf32> to vector<8x1xf32>
      %288 = vector.broadcast %287 : vector<8x1xf32> to vector<8x128xf32>
      %289 = arith.mulf %283, %288 : vector<8x128xf32>
      %290 = arith.addf %272, %289 : vector<8x128xf32>
      %c10 = arith.constant 10 : index
      %c0_143 = arith.constant 0 : index
      %291 = vector.load %arg10[%c10, %c0_143] : memref<16x128xf32, #tpu.memory_space<vmem>>, vector<1x128xf32>
      %292 = vector.broadcast %291 : vector<1x128xf32> to vector<8x128xf32>
      %293 = arith.mulf %107, %292 : vector<8x128xf32>
      %294 = math.exp %293 : vector<8x128xf32>
      %c10_144 = arith.constant 10 : index
      %c0_145 = arith.constant 0 : index
      %c0_146 = arith.constant 0 : index
      %295 = vector.load %arg14[%c10_144, %c0_145, %c0_146] : memref<16x8x128xf32, #tpu.memory_space<vmem>>, vector<1x8x128xf32>
      %296 = vector.shape_cast %295 : vector<1x8x128xf32> to vector<8x128xf32>
      %297 = arith.mulf %294, %296 : vector<8x128xf32>
      %298 = vector.extract_strided_slice %105 {offsets = [0, 10], sizes = [8, 1], strides = [1, 1]} : vector<8x128xf32> to vector<8x1xf32>
      %299 = vector.broadcast %298 : vector<8x1xf32> to vector<8x128xf32>
      %300 = arith.mulf %299, %109 : vector<8x128xf32>
      %301 = arith.addf %297, %300 : vector<8x128xf32>
      %c10_147 = arith.constant 10 : index
      %c0_148 = arith.constant 0 : index
      %c0_149 = arith.constant 0 : index
      %302 = vector.load %arg14[%c10_147, %c0_148, %c0_149] : memref<16x8x128xf32, #tpu.memory_space<vmem>>, vector<1x8x128xf32>
      %303 = vector.shape_cast %302 : vector<1x8x128xf32> to vector<8x128xf32>
      %304 = vector.shape_cast %301 : vector<8x128xf32> to vector<1x8x128xf32>
      tpu.vector_store %arg14[%c10_147, %c0_148, %c0_149], %304 {strides = array<i32>} : memref<16x8x128xf32, #tpu.memory_space<vmem>>, vector<1x8x128xf32>,
      %305 = vector.extract_strided_slice %105 {offsets = [0, 26], sizes = [8, 1], strides = [1, 1]} : vector<8x128xf32> to vector<8x1xf32>
      %306 = vector.broadcast %305 : vector<8x1xf32> to vector<8x128xf32>
      %307 = arith.mulf %301, %306 : vector<8x128xf32>
      %308 = arith.addf %290, %307 : vector<8x128xf32>
      %c11 = arith.constant 11 : index
      %c0_150 = arith.constant 0 : index
      %309 = vector.load %arg10[%c11, %c0_150] : memref<16x128xf32, #tpu.memory_space<vmem>>, vector<1x128xf32>
      %310 = vector.broadcast %309 : vector<1x128xf32> to vector<8x128xf32>
      %311 = arith.mulf %107, %310 : vector<8x128xf32>
      %312 = math.exp %311 : vector<8x128xf32>
      %c11_151 = arith.constant 11 : index
      %c0_152 = arith.constant 0 : index
      %c0_153 = arith.constant 0 : index
      %313 = vector.load %arg14[%c11_151, %c0_152, %c0_153] : memref<16x8x128xf32, #tpu.memory_space<vmem>>, vector<1x8x128xf32>
      %314 = vector.shape_cast %313 : vector<1x8x128xf32> to vector<8x128xf32>
      %315 = arith.mulf %312, %314 : vector<8x128xf32>
      %316 = vector.extract_strided_slice %105 {offsets = [0, 11], sizes = [8, 1], strides = [1, 1]} : vector<8x128xf32> to vector<8x1xf32>
      %317 = vector.broadcast %316 : vector<8x1xf32> to vector<8x128xf32>
      %318 = arith.mulf %317, %109 : vector<8x128xf32>
      %319 = arith.addf %315, %318 : vector<8x128xf32>
      %c11_154 = arith.constant 11 : index
      %c0_155 = arith.constant 0 : index
      %c0_156 = arith.constant 0 : index
      %320 = vector.load %arg14[%c11_154, %c0_155, %c0_156] : memref<16x8x128xf32, #tpu.memory_space<vmem>>, vector<1x8x128xf32>
      %321 = vector.shape_cast %320 : vector<1x8x128xf32> to vector<8x128xf32>
      %322 = vector.shape_cast %319 : vector<8x128xf32> to vector<1x8x128xf32>
      tpu.vector_store %arg14[%c11_154, %c0_155, %c0_156], %322 {strides = array<i32>} : memref<16x8x128xf32, #tpu.memory_space<vmem>>, vector<1x8x128xf32>,
      %323 = vector.extract_strided_slice %105 {offsets = [0, 27], sizes = [8, 1], strides = [1, 1]} : vector<8x128xf32> to vector<8x1xf32>
      %324 = vector.broadcast %323 : vector<8x1xf32> to vector<8x128xf32>
      %325 = arith.mulf %319, %324 : vector<8x128xf32>
      %326 = arith.addf %308, %325 : vector<8x128xf32>
      %c12 = arith.constant 12 : index
      %c0_157 = arith.constant 0 : index
      %327 = vector.load %arg10[%c12, %c0_157] : memref<16x128xf32, #tpu.memory_space<vmem>>, vector<1x128xf32>
      %328 = vector.broadcast %327 : vector<1x128xf32> to vector<8x128xf32>
      %329 = arith.mulf %107, %328 : vector<8x128xf32>
      %330 = math.exp %329 : vector<8x128xf32>
      %c12_158 = arith.constant 12 : index
      %c0_159 = arith.constant 0 : index
      %c0_160 = arith.constant 0 : index
      %331 = vector.load %arg14[%c12_158, %c0_159, %c0_160] : memref<16x8x128xf32, #tpu.memory_space<vmem>>, vector<1x8x128xf32>
      %332 = vector.shape_cast %331 : vector<1x8x128xf32> to vector<8x128xf32>
      %333 = arith.mulf %330, %332 : vector<8x128xf32>
      %334 = vector.extract_strided_slice %105 {offsets = [0, 12], sizes = [8, 1], strides = [1, 1]} : vector<8x128xf32> to vector<8x1xf32>
      %335 = vector.broadcast %334 : vector<8x1xf32> to vector<8x128xf32>
      %336 = arith.mulf %335, %109 : vector<8x128xf32>
      %337 = arith.addf %333, %336 : vector<8x128xf32>
      %c12_161 = arith.constant 12 : index
      %c0_162 = arith.constant 0 : index
      %c0_163 = arith.constant 0 : index
      %338 = vector.load %arg14[%c12_161, %c0_162, %c0_163] : memref<16x8x128xf32, #tpu.memory_space<vmem>>, vector<1x8x128xf32>
      %339 = vector.shape_cast %338 : vector<1x8x128xf32> to vector<8x128xf32>
      %340 = vector.shape_cast %337 : vector<8x128xf32> to vector<1x8x128xf32>
      tpu.vector_store %arg14[%c12_161, %c0_162, %c0_163], %340 {strides = array<i32>} : memref<16x8x128xf32, #tpu.memory_space<vmem>>, vector<1x8x128xf32>,
      %341 = vector.extract_strided_slice %105 {offsets = [0, 28], sizes = [8, 1], strides = [1, 1]} : vector<8x128xf32> to vector<8x1xf32>
      %342 = vector.broadcast %341 : vector<8x1xf32> to vector<8x128xf32>
      %343 = arith.mulf %337, %342 : vector<8x128xf32>
      %344 = arith.addf %326, %343 : vector<8x128xf32>
      %c13 = arith.constant 13 : index
      %c0_164 = arith.constant 0 : index
      %345 = vector.load %arg10[%c13, %c0_164] : memref<16x128xf32, #tpu.memory_space<vmem>>, vector<1x128xf32>
      %346 = vector.broadcast %345 : vector<1x128xf32> to vector<8x128xf32>
      %347 = arith.mulf %107, %346 : vector<8x128xf32>
      %348 = math.exp %347 : vector<8x128xf32>
      %c13_165 = arith.constant 13 : index
      %c0_166 = arith.constant 0 : index
      %c0_167 = arith.constant 0 : index
      %349 = vector.load %arg14[%c13_165, %c0_166, %c0_167] : memref<16x8x128xf32, #tpu.memory_space<vmem>>, vector<1x8x128xf32>
      %350 = vector.shape_cast %349 : vector<1x8x128xf32> to vector<8x128xf32>
      %351 = arith.mulf %348, %350 : vector<8x128xf32>
      %352 = vector.extract_strided_slice %105 {offsets = [0, 13], sizes = [8, 1], strides = [1, 1]} : vector<8x128xf32> to vector<8x1xf32>
      %353 = vector.broadcast %352 : vector<8x1xf32> to vector<8x128xf32>
      %354 = arith.mulf %353, %109 : vector<8x128xf32>
      %355 = arith.addf %351, %354 : vector<8x128xf32>
      %c13_168 = arith.constant 13 : index
      %c0_169 = arith.constant 0 : index
      %c0_170 = arith.constant 0 : index
      %356 = vector.load %arg14[%c13_168, %c0_169, %c0_170] : memref<16x8x128xf32, #tpu.memory_space<vmem>>, vector<1x8x128xf32>
      %357 = vector.shape_cast %356 : vector<1x8x128xf32> to vector<8x128xf32>
      %358 = vector.shape_cast %355 : vector<8x128xf32> to vector<1x8x128xf32>
      tpu.vector_store %arg14[%c13_168, %c0_169, %c0_170], %358 {strides = array<i32>} : memref<16x8x128xf32, #tpu.memory_space<vmem>>, vector<1x8x128xf32>,
      %359 = vector.extract_strided_slice %105 {offsets = [0, 29], sizes = [8, 1], strides = [1, 1]} : vector<8x128xf32> to vector<8x1xf32>
      %360 = vector.broadcast %359 : vector<8x1xf32> to vector<8x128xf32>
      %361 = arith.mulf %355, %360 : vector<8x128xf32>
      %362 = arith.addf %344, %361 : vector<8x128xf32>
      %c14 = arith.constant 14 : index
      %c0_171 = arith.constant 0 : index
      %363 = vector.load %arg10[%c14, %c0_171] : memref<16x128xf32, #tpu.memory_space<vmem>>, vector<1x128xf32>
      %364 = vector.broadcast %363 : vector<1x128xf32> to vector<8x128xf32>
      %365 = arith.mulf %107, %364 : vector<8x128xf32>
      %366 = math.exp %365 : vector<8x128xf32>
      %c14_172 = arith.constant 14 : index
      %c0_173 = arith.constant 0 : index
      %c0_174 = arith.constant 0 : index
      %367 = vector.load %arg14[%c14_172, %c0_173, %c0_174] : memref<16x8x128xf32, #tpu.memory_space<vmem>>, vector<1x8x128xf32>
      %368 = vector.shape_cast %367 : vector<1x8x128xf32> to vector<8x128xf32>
      %369 = arith.mulf %366, %368 : vector<8x128xf32>
      %370 = vector.extract_strided_slice %105 {offsets = [0, 14], sizes = [8, 1], strides = [1, 1]} : vector<8x128xf32> to vector<8x1xf32>
      %371 = vector.broadcast %370 : vector<8x1xf32> to vector<8x128xf32>
      %372 = arith.mulf %371, %109 : vector<8x128xf32>
      %373 = arith.addf %369, %372 : vector<8x128xf32>
      %c14_175 = arith.constant 14 : index
      %c0_176 = arith.constant 0 : index
      %c0_177 = arith.constant 0 : index
      %374 = vector.load %arg14[%c14_175, %c0_176, %c0_177] : memref<16x8x128xf32, #tpu.memory_space<vmem>>, vector<1x8x128xf32>
      %375 = vector.shape_cast %374 : vector<1x8x128xf32> to vector<8x128xf32>
      %376 = vector.shape_cast %373 : vector<8x128xf32> to vector<1x8x128xf32>
      tpu.vector_store %arg14[%c14_175, %c0_176, %c0_177], %376 {strides = array<i32>} : memref<16x8x128xf32, #tpu.memory_space<vmem>>, vector<1x8x128xf32>,
      %377 = vector.extract_strided_slice %105 {offsets = [0, 30], sizes = [8, 1], strides = [1, 1]} : vector<8x128xf32> to vector<8x1xf32>
      %378 = vector.broadcast %377 : vector<8x1xf32> to vector<8x128xf32>
      %379 = arith.mulf %373, %378 : vector<8x128xf32>
      %380 = arith.addf %362, %379 : vector<8x128xf32>
      %c15 = arith.constant 15 : index
      %c0_178 = arith.constant 0 : index
      %381 = vector.load %arg10[%c15, %c0_178] : memref<16x128xf32, #tpu.memory_space<vmem>>, vector<1x128xf32>
      %382 = vector.broadcast %381 : vector<1x128xf32> to vector<8x128xf32>
      %383 = arith.mulf %107, %382 : vector<8x128xf32>
      %384 = math.exp %383 : vector<8x128xf32>
      %c15_179 = arith.constant 15 : index
      %c0_180 = arith.constant 0 : index
      %c0_181 = arith.constant 0 : index
      %385 = vector.load %arg14[%c15_179, %c0_180, %c0_181] : memref<16x8x128xf32, #tpu.memory_space<vmem>>, vector<1x8x128xf32>
      %386 = vector.shape_cast %385 : vector<1x8x128xf32> to vector<8x128xf32>
      %387 = arith.mulf %384, %386 : vector<8x128xf32>
      %388 = vector.extract_strided_slice %105 {offsets = [0, 15], sizes = [8, 1], strides = [1, 1]} : vector<8x128xf32> to vector<8x1xf32>
      %389 = vector.broadcast %388 : vector<8x1xf32> to vector<8x128xf32>
      %390 = arith.mulf %389, %109 : vector<8x128xf32>
      %391 = arith.addf %387, %390 : vector<8x128xf32>
      %c15_182 = arith.constant 15 : index
      %c0_183 = arith.constant 0 : index
      %c0_184 = arith.constant 0 : index
      %392 = vector.load %arg14[%c15_182, %c0_183, %c0_184] : memref<16x8x128xf32, #tpu.memory_space<vmem>>, vector<1x8x128xf32>
      %393 = vector.shape_cast %392 : vector<1x8x128xf32> to vector<8x128xf32>
      %394 = vector.shape_cast %391 : vector<8x128xf32> to vector<1x8x128xf32>
      tpu.vector_store %arg14[%c15_182, %c0_183, %c0_184], %394 {strides = array<i32>} : memref<16x8x128xf32, #tpu.memory_space<vmem>>, vector<1x8x128xf32>,
      %395 = vector.extract_strided_slice %105 {offsets = [0, 31], sizes = [8, 1], strides = [1, 1]} : vector<8x128xf32> to vector<8x1xf32>
      %396 = vector.broadcast %395 : vector<8x1xf32> to vector<8x128xf32>
      %397 = arith.mulf %391, %396 : vector<8x128xf32>
      %398 = arith.addf %380, %397 : vector<8x128xf32>
      %399 = arith.index_cast %103 : i32 to index
      %c0_185 = arith.constant 0 : index
      %400 = vector.load %arg19[%399, %c0_185] : memref<64x128xf32, #tpu.memory_space<vmem>>, vector<8x128xf32>
      tpu.vector_store %arg19[%399, %c0_185], %398 {strides = array<i32>} : memref<64x128xf32, #tpu.memory_space<vmem>>, vector<8x128xf32>,
    }
    %c8_i32_45 = arith.constant 8 : i32
    %c0_46 = arith.constant 0 : index
    %c0_47 = arith.constant 0 : index
    %80 = vector.load %arg20[%c0_46, %c0_47] : memref<64x128xf32, #tpu.memory_space<vmem>>, vector<64x128xf32>
    %c0_48 = arith.constant 0 : index
    %c0_49 = arith.constant 0 : index
    %81 = vector.load %arg19[%c0_48, %c0_49] : memref<64x128xf32, #tpu.memory_space<vmem>>, vector<64x128xf32>
    %82 = arith.negf %80 : vector<64x128xf32>
    %83 = math.exp %82 : vector<64x128xf32>
    %cst_50 = arith.constant 1.000000e+00 : f32
    %84 = vector.broadcast %cst_50 : f32 to vector<64x128xf32>
    %85 = arith.addf %84, %83 : vector<64x128xf32>
    %86 = arith.divf %84, %85 : vector<64x128xf32>
    %87 = arith.mulf %80, %86 : vector<64x128xf32>
    %88 = arith.mulf %81, %87 : vector<64x128xf32>
    %c0_51 = arith.constant 0 : index
    %c0_52 = arith.constant 0 : index
    %89 = vector.load %arg11[%c0_51, %c0_52] : memref<128x64xf32, #tpu.memory_space<vmem>>, vector<128x64xf32>
    %cst_53 = arith.constant dense<0.000000e+00> : vector<64x64xf32>
    %90 = tpu.matmul %88, %89, %cst_53 {dimension_numbers = #tpu.dot_dimension_numbers<[1], [0], [0], [1], [0, 0, 1, 1], [], []>} : vector<64x128xf32>, vector<128x64xf32>, vector<64x64xf32> -> vector<64x64xf32>
    %c0_54 = arith.constant 0 : index
    %c0_55 = arith.constant 0 : index
    %91 = vector.load %arg12[%c0_54, %c0_55] : memref<1x64xf32, #tpu.memory_space<vmem>>, vector<1x64xf32>
    %92 = vector.broadcast %91 : vector<1x64xf32> to vector<64x64xf32>
    %93 = arith.addf %90, %92 : vector<64x64xf32>
    %c0_56 = arith.constant 0 : index
    %c0_57 = arith.constant 0 : index
    %c0_58 = arith.constant 0 : index
    %94 = vector.load %arg2[%c0_56, %c0_57, %c0_58] : memref<1x64x64xf32, #tpu.memory_space<vmem>>, vector<1x64x64xf32>
    %95 = vector.shape_cast %94 : vector<1x64x64xf32> to vector<64x64xf32>
    %96 = arith.addf %93, %95 : vector<64x64xf32>
    %c0_59 = arith.constant 0 : index
    %c0_60 = arith.constant 0 : index
    %c0_61 = arith.constant 0 : index
    %97 = vector.load %arg13[%c0_59, %c0_60, %c0_61] : memref<1x64x64xf32, #tpu.memory_space<vmem>>, vector<1x64x64xf32>
    %98 = vector.shape_cast %97 : vector<1x64x64xf32> to vector<64x64xf32>
    %99 = vector.shape_cast %96 : vector<64x64xf32> to vector<1x64x64xf32>
    tpu.vector_store %arg13[%c0_59, %c0_60, %c0_61], %99 {strides = array<i32>} : memref<1x64x64xf32, #tpu.memory_space<vmem>>, vector<1x64x64xf32>,
    return
  }
  func.func @transform_0(%arg0: i32, %arg1: i32) -> (i32, i32, i32) {
    %c0_i32 = arith.constant 0 : i32
    %c0_i32_0 = arith.constant 0 : i32
    return %arg0, %arg1, %c0_i32 : i32, i32, i32
  }
  func.func @transform_1(%arg0: i32, %arg1: i32) -> (i32, i32) {
    %c0_i32 = arith.constant 0 : i32
    %c0_i32_0 = arith.constant 0 : i32
    %c0_i32_1 = arith.constant 0 : i32
    return %c0_i32, %c0_i32_0 : i32, i32
  }
  func.func @transform_2(%arg0: i32, %arg1: i32) -> (i32, i32) {
    %c0_i32 = arith.constant 0 : i32
    %c0_i32_0 = arith.constant 0 : i32
    %c0_i32_1 = arith.constant 0 : i32
    return %c0_i32, %c0_i32_0 : i32, i32
  }
  func.func @transform_3(%arg0: i32, %arg1: i32) -> (i32, i32) {
    %c0_i32 = arith.constant 0 : i32
    %c0_i32_0 = arith.constant 0 : i32
    %c0_i32_1 = arith.constant 0 : i32
    return %c0_i32, %c0_i32_0 : i32, i32
  }
  func.func @transform_4(%arg0: i32, %arg1: i32) -> (i32, i32) {
    %c0_i32 = arith.constant 0 : i32
    %c0_i32_0 = arith.constant 0 : i32
    %c0_i32_1 = arith.constant 0 : i32
    return %c0_i32, %c0_i32_0 : i32, i32
  }
  func.func @transform_5(%arg0: i32, %arg1: i32) -> (i32, i32) {
    %c0_i32 = arith.constant 0 : i32
    %c0_i32_0 = arith.constant 0 : i32
    %c0_i32_1 = arith.constant 0 : i32
    return %c0_i32, %c0_i32_0 : i32, i32
  }
  func.func @transform_6(%arg0: i32, %arg1: i32) -> (i32, i32) {
    %c0_i32 = arith.constant 0 : i32
    %c0_i32_0 = arith.constant 0 : i32
    %c0_i32_1 = arith.constant 0 : i32
    return %c0_i32, %c0_i32_0 : i32, i32
  }
  func.func @transform_7(%arg0: i32, %arg1: i32) -> (i32, i32) {
    %c0_i32 = arith.constant 0 : i32
    %c0_i32_0 = arith.constant 0 : i32
    %c0_i32_1 = arith.constant 0 : i32
    return %c0_i32, %c0_i32_0 : i32, i32
  }
  func.func @transform_8(%arg0: i32, %arg1: i32) -> (i32, i32) {
    %c0_i32 = arith.constant 0 : i32
    %c0_i32_0 = arith.constant 0 : i32
    %c0_i32_1 = arith.constant 0 : i32
    return %c0_i32, %c0_i32_0 : i32, i32
  }
  func.func @transform_9(%arg0: i32, %arg1: i32) -> (i32, i32) {
    %c0_i32 = arith.constant 0 : i32
    %c0_i32_0 = arith.constant 0 : i32
    %c0_i32_1 = arith.constant 0 : i32
    return %c0_i32, %c0_i32_0 : i32, i32
  }
  func.func @transform_10(%arg0: i32, %arg1: i32) -> (i32, i32) {
    %c0_i32 = arith.constant 0 : i32
    %c0_i32_0 = arith.constant 0 : i32
    %c0_i32_1 = arith.constant 0 : i32
    return %c0_i32, %c0_i32_0 : i32, i32
  }
  func.func @transform_11(%arg0: i32, %arg1: i32) -> (i32, i32, i32) {
    %c0_i32 = arith.constant 0 : i32
    %c0_i32_0 = arith.constant 0 : i32
    return %arg0, %arg1, %c0_i32 : i32, i32, i32
  }
}

module attributes {stable_mosaic.version = 11 : i64} {
  func.func @residual_mamba_kernel(%arg0: i32, %arg1: i32, %arg2: memref<1x64x64xf32, #tpu.memory_space<vmem>>, %arg3: memref<1x64xf32, #tpu.memory_space<vmem>>, %arg4: memref<64x256xf32, #tpu.memory_space<vmem>>, %arg5: memref<1x256xf32, #tpu.memory_space<vmem>>, %arg6: memref<3x128xf32, #tpu.memory_space<vmem>>, %arg7: memref<1x128xf32, #tpu.memory_space<vmem>>, %arg8: memref<128x256xf32, #tpu.memory_space<vmem>>, %arg9: memref<1x128xf32, #tpu.memory_space<vmem>>, %arg10: memref<16x128xf32, #tpu.memory_space<vmem>>, %arg11: memref<128x64xf32, #tpu.memory_space<vmem>>, %arg12: memref<1x64xf32, #tpu.memory_space<vmem>>, %arg13: memref<1x64x64xf32, #tpu.memory_space<vmem>>, %arg14: memref<16x8x128xf32, #tpu.memory_space<vmem>>, %arg15: memref<80x128xf32, #tpu.memory_space<vmem>>, %arg16: memref<64x128xf32, #tpu.memory_space<vmem>>, %arg17: memref<64x128xf32, #tpu.memory_space<vmem>>, %arg18: memref<64x128xf32, #tpu.memory_space<vmem>>, %arg19: memref<64x128xf32, #tpu.memory_space<vmem>>, %arg20: memref<64x128xf32, #tpu.memory_space<vmem>>) attributes {dimension_semantics = [#tpu.dimension_semantics<parallel>, #tpu.dimension_semantics<arbitrary>], iteration_bounds = array<i64: 2, 2>, scalar_prefetch = 0 : i64, scratch_operands = 7 : i64, tpu.core_type = #tpu.core_type<tc>, window_params = [{transform_indices = @transform_0, window_bounds = array<i64: 1, 64, 64>}, {pipeline_mode = #tpu.pipeline_mode<synchronous>, transform_indices = @transform_1, window_bounds = array<i64: 1, 64>}, {pipeline_mode = #tpu.pipeline_mode<synchronous>, transform_indices = @transform_2, window_bounds = array<i64: 64, 256>}, {pipeline_mode = #tpu.pipeline_mode<synchronous>, transform_indices = @transform_3, window_bounds = array<i64: 1, 256>}, {pipeline_mode = #tpu.pipeline_mode<synchronous>, transform_indices = @transform_4, window_bounds = array<i64: 3, 128>}, {pipeline_mode = #tpu.pipeline_mode<synchronous>, transform_indices = @transform_5, window_bounds = array<i64: 1, 128>}, {pipeline_mode = #tpu.pipeline_mode<synchronous>, transform_indices = @transform_6, window_bounds = array<i64: 128, 256>}, {pipeline_mode = #tpu.pipeline_mode<synchronous>, transform_indices = @transform_7, window_bounds = array<i64: 1, 128>}, {pipeline_mode = #tpu.pipeline_mode<synchronous>, transform_indices = @transform_8, window_bounds = array<i64: 16, 128>}, {pipeline_mode = #tpu.pipeline_mode<synchronous>, transform_indices = @transform_9, window_bounds = array<i64: 128, 64>}, {pipeline_mode = #tpu.pipeline_mode<synchronous>, transform_indices = @transform_10, window_bounds = array<i64: 1, 64>}, {transform_indices = @transform_11, window_bounds = array<i64: 1, 64, 64>}]} {
    %c0 = arith.constant 0 : index
    %c0_0 = arith.constant 0 : index
    %c0_1 = arith.constant 0 : index
    %0 = vector.load %arg2[%c0, %c0_0, %c0_1] : memref<1x64x64xf32, #tpu.memory_space<vmem>>, vector<1x64x64xf32>
    %1 = vector.shape_cast %0 : vector<1x64x64xf32> to vector<64x64xf32>
    %2 = arith.mulf %1, %1 : vector<64x64xf32>
    %cst = arith.constant dense<0.000000e+00> : vector<64xf32>
    %3 = vector.multi_reduction <add>, %2, %cst [1] : vector<64x64xf32> to vector<64xf32>
    %4 = vector.shape_cast %3 : vector<64xf32> to vector<64x1xf32>
    %cst_2 = arith.constant 6.400000e+01 : f32
    %5 = vector.broadcast %cst_2 : f32 to vector<64x1xf32>
    %6 = arith.divf %4, %5 : vector<64x1xf32>
    %cst_3 = arith.constant 9.99999974E-6 : f32
    %7 = vector.broadcast %cst_3 : f32 to vector<64x1xf32>
    %8 = arith.addf %6, %7 : vector<64x1xf32>
    %9 = math.rsqrt %8 : vector<64x1xf32>
    %10 = vector.broadcast %9 : vector<64x1xf32> to vector<64x64xf32>
    %11 = arith.mulf %1, %10 : vector<64x64xf32>
    %c0_4 = arith.constant 0 : index
    %c0_5 = arith.constant 0 : index
    %12 = vector.load %arg3[%c0_4, %c0_5] : memref<1x64xf32, #tpu.memory_space<vmem>>, vector<1x64xf32>
    %13 = vector.broadcast %12 : vector<1x64xf32> to vector<64x64xf32>
    %14 = arith.mulf %11, %13 : vector<64x64xf32>
    %c0_6 = arith.constant 0 : index
    %c0_7 = arith.constant 0 : index
    %15 = vector.load %arg4[%c0_6, %c0_7] : memref<64x256xf32, #tpu.memory_space<vmem>>, vector<64x256xf32>
    %cst_8 = arith.constant dense<0.000000e+00> : vector<64x256xf32>
    %16 = tpu.matmul %14, %15, %cst_8 {dimension_numbers = #tpu.dot_dimension_numbers<[1], [0], [0], [1], [0, 0, 1, 1], [], []>} : vector<64x64xf32>, vector<64x256xf32>, vector<64x256xf32> -> vector<64x256xf32>
    %c0_9 = arith.constant 0 : index
    %c0_10 = arith.constant 0 : index
    %17 = vector.load %arg5[%c0_9, %c0_10] : memref<1x256xf32, #tpu.memory_space<vmem>>, vector<1x256xf32>
    %18 = vector.broadcast %17 : vector<1x256xf32> to vector<64x256xf32>
    %19 = arith.addf %16, %18 : vector<64x256xf32>
    %20 = vector.extract_strided_slice %19 {offsets = [0, 0], sizes = [64, 128], strides = [1, 1]} : vector<64x256xf32> to vector<64x128xf32>
    %21 = vector.extract_strided_slice %19 {offsets = [0, 128], sizes = [64, 128], strides = [1, 1]} : vector<64x256xf32> to vector<64x128xf32>
    %c0_11 = arith.constant 0 : index
    %c0_12 = arith.constant 0 : index
    %22 = vector.load %arg20[%c0_11, %c0_12] : memref<64x128xf32, #tpu.memory_space<vmem>>, vector<64x128xf32>
    tpu.vector_store %arg20[%c0_11, %c0_12], %21 {strides = array<i32>} : memref<64x128xf32, #tpu.memory_space<vmem>>, vector<64x128xf32>,
    %c0_i32 = arith.constant 0 : i32
    %23 = arith.cmpi eq, %arg1, %c0_i32 : i32
    %24 = arith.extui %23 : i1 to i32
    %c0_i32_13 = arith.constant 0 : i32
    %25 = arith.cmpi ne, %24, %c0_i32_13 : i32
    scf.if %25 {
      %cst_62 = arith.constant 0.000000e+00 : f32
      %100 = vector.broadcast %cst_62 : f32 to vector<16x8x128xf32>
      %c0_63 = arith.constant 0 : index
      %c0_64 = arith.constant 0 : index
      %c0_65 = arith.constant 0 : index
      %101 = vector.load %arg14[%c0_63, %c0_64, %c0_65] : memref<16x8x128xf32, #tpu.memory_space<vmem>>, vector<16x8x128xf32>
      tpu.vector_store %arg14[%c0_63, %c0_64, %c0_65], %100 {strides = array<i32>} : memref<16x8x128xf32, #tpu.memory_space<vmem>>, vector<16x8x128xf32>,
      %cst_66 = arith.constant 0.000000e+00 : f32
      %102 = vector.broadcast %cst_66 : f32 to vector<16x128xf32>
      %c0_67 = arith.constant 0 : index
      %c0_68 = arith.constant 0 : index
      %103 = vector.load %arg15[%c0_67, %c0_68] : memref<80x128xf32, #tpu.memory_space<vmem>>, vector<16x128xf32>
      tpu.vector_store %arg15[%c0_67, %c0_68], %102 {strides = array<i32>} : memref<80x128xf32, #tpu.memory_space<vmem>>, vector<16x128xf32>,
    } else {
    }
    %c16 = arith.constant 16 : index
    %c0_14 = arith.constant 0 : index
    %26 = vector.load %arg15[%c16, %c0_14] : memref<80x128xf32, #tpu.memory_space<vmem>>, vector<64x128xf32>
    tpu.vector_store %arg15[%c16, %c0_14], %20 {strides = array<i32>} : memref<80x128xf32, #tpu.memory_space<vmem>>, vector<64x128xf32>,
    %cst_15 = arith.constant 0.000000e+00 : f32
    %27 = vector.broadcast %cst_15 : f32 to vector<64x128xf32>
    %c0_16 = arith.constant 0 : index
    %c0_17 = arith.constant 0 : index
    %28 = vector.load %arg6[%c0_16, %c0_17] : memref<3x128xf32, #tpu.memory_space<vmem>>, vector<1x128xf32>
    %c0_18 = arith.constant 0 : index
    %c0_19 = arith.constant 0 : index
    %29 = vector.load %arg15[%c0_18, %c0_19] : memref<80x128xf32, #tpu.memory_space<vmem>>, vector<64x128xf32>
    %30 = vector.broadcast %28 : vector<1x128xf32> to vector<64x128xf32>
    %31 = arith.mulf %30, %29 : vector<64x128xf32>
    %32 = arith.addf %27, %31 : vector<64x128xf32>
    %c1 = arith.constant 1 : index
    %c0_20 = arith.constant 0 : index
    %33 = vector.load %arg6[%c1, %c0_20] : memref<3x128xf32, #tpu.memory_space<vmem>>, vector<1x128xf32>
    %c8 = arith.constant 8 : index
    %c0_21 = arith.constant 0 : index
    %34 = vector.load %arg15[%c8, %c0_21] : memref<80x128xf32, #tpu.memory_space<vmem>>, vector<64x128xf32>
    %35 = vector.broadcast %33 : vector<1x128xf32> to vector<64x128xf32>
    %36 = arith.mulf %35, %34 : vector<64x128xf32>
    %37 = arith.addf %32, %36 : vector<64x128xf32>
    %c2 = arith.constant 2 : index
    %c0_22 = arith.constant 0 : index
    %38 = vector.load %arg6[%c2, %c0_22] : memref<3x128xf32, #tpu.memory_space<vmem>>, vector<1x128xf32>
    %c16_23 = arith.constant 16 : index
    %c0_24 = arith.constant 0 : index
    %39 = vector.load %arg15[%c16_23, %c0_24] : memref<80x128xf32, #tpu.memory_space<vmem>>, vector<64x128xf32>
    %40 = vector.broadcast %38 : vector<1x128xf32> to vector<64x128xf32>
    %41 = arith.mulf %40, %39 : vector<64x128xf32>
    %42 = arith.addf %37, %41 : vector<64x128xf32>
    %c0_25 = arith.constant 0 : index
    %c0_26 = arith.constant 0 : index
    %43 = vector.load %arg7[%c0_25, %c0_26] : memref<1x128xf32, #tpu.memory_space<vmem>>, vector<1x128xf32>
    %44 = vector.broadcast %43 : vector<1x128xf32> to vector<64x128xf32>
    %45 = arith.addf %42, %44 : vector<64x128xf32>
    %c64 = arith.constant 64 : index
    %c0_27 = arith.constant 0 : index
    %46 = vector.load %arg15[%c64, %c0_27] : memref<80x128xf32, #tpu.memory_space<vmem>>, vector<16x128xf32>
    %c0_28 = arith.constant 0 : index
    %c0_29 = arith.constant 0 : index
    %47 = vector.load %arg15[%c0_28, %c0_29] : memref<80x128xf32, #tpu.memory_space<vmem>>, vector<16x128xf32>
    tpu.vector_store %arg15[%c0_28, %c0_29], %46 {strides = array<i32>} : memref<80x128xf32, #tpu.memory_space<vmem>>, vector<16x128xf32>,
    %48 = arith.negf %45 : vector<64x128xf32>
    %49 = math.exp %48 : vector<64x128xf32>
    %cst_30 = arith.constant 1.000000e+00 : f32
    %50 = vector.broadcast %cst_30 : f32 to vector<64x128xf32>
    %51 = arith.addf %50, %49 : vector<64x128xf32>
    %52 = arith.divf %50, %51 : vector<64x128xf32>
    %53 = arith.mulf %45, %52 : vector<64x128xf32>
    %c0_31 = arith.constant 0 : index
    %c0_32 = arith.constant 0 : index
    %54 = vector.load %arg8[%c0_31, %c0_32] : memref<128x256xf32, #tpu.memory_space<vmem>>, vector<128x256xf32>
    %cst_33 = arith.constant dense<0.000000e+00> : vector<64x256xf32>
    %55 = tpu.matmul %53, %54, %cst_33 {dimension_numbers = #tpu.dot_dimension_numbers<[1], [0], [0], [1], [0, 0, 1, 1], [], []>} : vector<64x128xf32>, vector<128x256xf32>, vector<64x256xf32> -> vector<64x256xf32>
    %56 = vector.extract_strided_slice %55 {offsets = [0, 0], sizes = [64, 128], strides = [1, 1]} : vector<64x256xf32> to vector<64x128xf32>
    %c0_34 = arith.constant 0 : index
    %c0_35 = arith.constant 0 : index
    %57 = vector.load %arg9[%c0_34, %c0_35] : memref<1x128xf32, #tpu.memory_space<vmem>>, vector<1x128xf32>
    %58 = vector.broadcast %57 : vector<1x128xf32> to vector<64x128xf32>
    %59 = arith.addf %56, %58 : vector<64x128xf32>
    %cst_36 = arith.constant 0.000000e+00 : f32
    %60 = vector.broadcast %cst_36 : f32 to vector<64x128xf32>
    %61 = arith.maximumf %59, %60 : vector<64x128xf32>
    %62 = vector.broadcast %cst_36 : f32 to vector<64x128xf32>
    %63 = arith.subf %59, %62 : vector<64x128xf32>
    %64 = arith.cmpf one, %63, %63 : vector<64x128xf32>
    %65 = vector.broadcast %cst_36 : f32 to vector<64x128xf32>
    %66 = arith.addf %59, %65 : vector<64x128xf32>
    %67 = math.absf %63 : vector<64x128xf32>
    %cst_37 = arith.constant 0.000000e+00 : f32
    %68 = vector.broadcast %cst_37 : f32 to vector<64x128xf32>
    %69 = arith.subf %68, %67 : vector<64x128xf32>
    %70 = math.exp %69 : vector<64x128xf32>
    %71 = math.log1p %70 : vector<64x128xf32>
    %72 = arith.addf %61, %71 : vector<64x128xf32>
    %73 = arith.select %64, %66, %72 : vector<64x128xi1>, vector<64x128xf32>
    %c0_38 = arith.constant 0 : index
    %c0_39 = arith.constant 0 : index
    %74 = vector.load %arg16[%c0_38, %c0_39] : memref<64x128xf32, #tpu.memory_space<vmem>>, vector<64x128xf32>
    tpu.vector_store %arg16[%c0_38, %c0_39], %73 {strides = array<i32>} : memref<64x128xf32, #tpu.memory_space<vmem>>, vector<64x128xf32>,
    %75 = arith.mulf %73, %53 : vector<64x128xf32>
    %c0_40 = arith.constant 0 : index
    %c0_41 = arith.constant 0 : index
    %76 = vector.load %arg17[%c0_40, %c0_41] : memref<64x128xf32, #tpu.memory_space<vmem>>, vector<64x128xf32>
    tpu.vector_store %arg17[%c0_40, %c0_41], %75 {strides = array<i32>} : memref<64x128xf32, #tpu.memory_space<vmem>>, vector<64x128xf32>,
    %77 = vector.extract_strided_slice %55 {offsets = [0, 128], sizes = [64, 128], strides = [1, 1]} : vector<64x256xf32> to vector<64x128xf32>
    %c0_42 = arith.constant 0 : index
    %c0_43 = arith.constant 0 : index
    %78 = vector.load %arg18[%c0_42, %c0_43] : memref<64x128xf32, #tpu.memory_space<vmem>>, vector<64x128xf32>
    tpu.vector_store %arg18[%c0_42, %c0_43], %77 {strides = array<i32>} : memref<64x128xf32, #tpu.memory_space<vmem>>, vector<64x128xf32>,
    %c0_i32_44 = arith.constant 0 : i32
    %c8_i32 = arith.constant 8 : i32
    %79 = arith.addi %c0_i32_44, %c8_i32 : i32
    %c1_i32 = arith.constant 1 : i32
    scf.for %arg21 = %c0_i32_44 to %79 step %c1_i32  : i32 {
      %c1_i32_62 = arith.constant 1 : i32
      %100 = arith.muli %arg21, %c1_i32_62 : i32
      %c0_i32_63 = arith.constant 0 : i32
      %101 = arith.addi %c0_i32_63, %100 : i32
      %c8_i32_64 = arith.constant 8 : i32
      %102 = arith.muli %101, %c8_i32_64 : i32
      %103 = tpu.assume_multiple %102, 8 : i32
      %104 = arith.index_cast %103 : i32 to index
      %c0_65 = arith.constant 0 : index
      %105 = vector.load %arg18[%104, %c0_65] : memref<64x128xf32, #tpu.memory_space<vmem>>, vector<8x128xf32>
      %106 = arith.index_cast %103 : i32 to index
      %c0_66 = arith.constant 0 : index
      %107 = vector.load %arg16[%106, %c0_66] : memref<64x128xf32, #tpu.memory_space<vmem>>, vector<8x128xf32>
      %108 = arith.index_cast %103 : i32 to index
      %c0_67 = arith.constant 0 : index
      %109 = vector.load %arg17[%108, %c0_67] : memref<64x128xf32, #tpu.memory_space<vmem>>, vector<8x128xf32>
      %cst_68 = arith.constant 0.000000e+00 : f32
      %110 = vector.broadcast %cst_68 : f32 to vector<8x128xf32>
      %c0_69 = arith.constant 0 : index
      %c0_70 = arith.constant 0 : index
      %111 = vector.load %arg10[%c0_69, %c0_70] : memref<16x128xf32, #tpu.memory_space<vmem>>, vector<1x128xf32>
      %112 = vector.broadcast %111 : vector<1x128xf32> to vector<8x128xf32>
      %113 = arith.mulf %107, %112 : vector<8x128xf32>
      %114 = math.exp %113 : vector<8x128xf32>
      %c0_71 = arith.constant 0 : index
      %c0_72 = arith.constant 0 : index
      %c0_73 = arith.constant 0 : index
      %115 = vector.load %arg14[%c0_71, %c0_72, %c0_73] : memref<16x8x128xf32, #tpu.memory_space<vmem>>, vector<1x8x128xf32>
      %116 = vector.shape_cast %115 : vector<1x8x128xf32> to vector<8x128xf32>
      %117 = arith.mulf %114, %116 : vector<8x128xf32>
      %118 = vector.extract_strided_slice %105 {offsets = [0, 0], sizes = [8, 1], strides = [1, 1]} : vector<8x128xf32> to vector<8x1xf32>
      %119 = vector.broadcast %118 : vector<8x1xf32> to vector<8x128xf32>
      %120 = arith.mulf %119, %109 : vector<8x128xf32>
      %121 = arith.addf %117, %120 : vector<8x128xf32>
      %c0_74 = arith.constant 0 : index
      %c0_75 = arith.constant 0 : index
      %c0_76 = arith.constant 0 : index
      %122 = vector.load %arg14[%c0_74, %c0_75, %c0_76] : memref<16x8x128xf32, #tpu.memory_space<vmem>>, vector<1x8x128xf32>
      %123 = vector.shape_cast %122 : vector<1x8x128xf32> to vector<8x128xf32>
      %124 = vector.shape_cast %121 : vector<8x128xf32> to vector<1x8x128xf32>
      tpu.vector_store %arg14[%c0_74, %c0_75, %c0_76], %124 {strides = array<i32>} : memref<16x8x128xf32, #tpu.memory_space<vmem>>, vector<1x8x128xf32>,
      %125 = vector.extract_strided_slice %105 {offsets = [0, 16], sizes = [8, 1], strides = [1, 1]} : vector<8x128xf32> to vector<8x1xf32>
      %126 = vector.broadcast %125 : vector<8x1xf32> to vector<8x128xf32>
      %127 = arith.mulf %121, %126 : vector<8x128xf32>
      %128 = arith.addf %110, %127 : vector<8x128xf32>
      %c1_77 = arith.constant 1 : index
      %c0_78 = arith.constant 0 : index
      %129 = vector.load %arg10[%c1_77, %c0_78] : memref<16x128xf32, #tpu.memory_space<vmem>>, vector<1x128xf32>
      %130 = vector.broadcast %129 : vector<1x128xf32> to vector<8x128xf32>
      %131 = arith.mulf %107, %130 : vector<8x128xf32>
      %132 = math.exp %131 : vector<8x128xf32>
      %c1_79 = arith.constant 1 : index
      %c0_80 = arith.constant 0 : index
      %c0_81 = arith.constant 0 : index
      %133 = vector.load %arg14[%c1_79, %c0_80, %c0_81] : memref<16x8x128xf32, #tpu.memory_space<vmem>>, vector<1x8x128xf32>
      %134 = vector.shape_cast %133 : vector<1x8x128xf32> to vector<8x128xf32>
      %135 = arith.mulf %132, %134 : vector<8x128xf32>
      %136 = vector.extract_strided_slice %105 {offsets = [0, 1], sizes = [8, 1], strides = [1, 1]} : vector<8x128xf32> to vector<8x1xf32>
      %137 = vector.broadcast %136 : vector<8x1xf32> to vector<8x128xf32>
      %138 = arith.mulf %137, %109 : vector<8x128xf32>
      %139 = arith.addf %135, %138 : vector<8x128xf32>
      %c1_82 = arith.constant 1 : index
      %c0_83 = arith.constant 0 : index
      %c0_84 = arith.constant 0 : index
      %140 = vector.load %arg14[%c1_82, %c0_83, %c0_84] : memref<16x8x128xf32, #tpu.memory_space<vmem>>, vector<1x8x128xf32>
      %141 = vector.shape_cast %140 : vector<1x8x128xf32> to vector<8x128xf32>
      %142 = vector.shape_cast %139 : vector<8x128xf32> to vector<1x8x128xf32>
      tpu.vector_store %arg14[%c1_82, %c0_83, %c0_84], %142 {strides = array<i32>} : memref<16x8x128xf32, #tpu.memory_space<vmem>>, vector<1x8x128xf32>,
      %143 = vector.extract_strided_slice %105 {offsets = [0, 17], sizes = [8, 1], strides = [1, 1]} : vector<8x128xf32> to vector<8x1xf32>
      %144 = vector.broadcast %143 : vector<8x1xf32> to vector<8x128xf32>
      %145 = arith.mulf %139, %144 : vector<8x128xf32>
      %146 = arith.addf %128, %145 : vector<8x128xf32>
      %c2_85 = arith.constant 2 : index
      %c0_86 = arith.constant 0 : index
      %147 = vector.load %arg10[%c2_85, %c0_86] : memref<16x128xf32, #tpu.memory_space<vmem>>, vector<1x128xf32>
      %148 = vector.broadcast %147 : vector<1x128xf32> to vector<8x128xf32>
      %149 = arith.mulf %107, %148 : vector<8x128xf32>
      %150 = math.exp %149 : vector<8x128xf32>
      %c2_87 = arith.constant 2 : index
      %c0_88 = arith.constant 0 : index
      %c0_89 = arith.constant 0 : index
      %151 = vector.load %arg14[%c2_87, %c0_88, %c0_89] : memref<16x8x128xf32, #tpu.memory_space<vmem>>, vector<1x8x128xf32>
      %152 = vector.shape_cast %151 : vector<1x8x128xf32> to vector<8x128xf32>
      %153 = arith.mulf %150, %152 : vector<8x128xf32>
      %154 = vector.extract_strided_slice %105 {offsets = [0, 2], sizes = [8, 1], strides = [1, 1]} : vector<8x128xf32> to vector<8x1xf32>
      %155 = vector.broadcast %154 : vector<8x1xf32> to vector<8x128xf32>
      %156 = arith.mulf %155, %109 : vector<8x128xf32>
      %157 = arith.addf %153, %156 : vector<8x128xf32>
      %c2_90 = arith.constant 2 : index
      %c0_91 = arith.constant 0 : index
      %c0_92 = arith.constant 0 : index
      %158 = vector.load %arg14[%c2_90, %c0_91, %c0_92] : memref<16x8x128xf32, #tpu.memory_space<vmem>>, vector<1x8x128xf32>
      %159 = vector.shape_cast %158 : vector<1x8x128xf32> to vector<8x128xf32>
      %160 = vector.shape_cast %157 : vector<8x128xf32> to vector<1x8x128xf32>
      tpu.vector_store %arg14[%c2_90, %c0_91, %c0_92], %160 {strides = array<i32>} : memref<16x8x128xf32, #tpu.memory_space<vmem>>, vector<1x8x128xf32>,
      %161 = vector.extract_strided_slice %105 {offsets = [0, 18], sizes = [8, 1], strides = [1, 1]} : vector<8x128xf32> to vector<8x1xf32>
      %162 = vector.broadcast %161 : vector<8x1xf32> to vector<8x128xf32>
      %163 = arith.mulf %157, %162 : vector<8x128xf32>
      %164 = arith.addf %146, %163 : vector<8x128xf32>
      %c3 = arith.constant 3 : index
      %c0_93 = arith.constant 0 : index
      %165 = vector.load %arg10[%c3, %c0_93] : memref<16x128xf32, #tpu.memory_space<vmem>>, vector<1x128xf32>
      %166 = vector.broadcast %165 : vector<1x128xf32> to vector<8x128xf32>
      %167 = arith.mulf %107, %166 : vector<8x128xf32>
      %168 = math.exp %167 : vector<8x128xf32>
      %c3_94 = arith.constant 3 : index
      %c0_95 = arith.constant 0 : index
      %c0_96 = arith.constant 0 : index
      %169 = vector.load %arg14[%c3_94, %c0_95, %c0_96] : memref<16x8x128xf32, #tpu.memory_space<vmem>>, vector<1x8x128xf32>
      %170 = vector.shape_cast %169 : vector<1x8x128xf32> to vector<8x128xf32>
      %171 = arith.mulf %168, %170 : vector<8x128xf32>
      %172 = vector.extract_strided_slice %105 {offsets = [0, 3], sizes = [8, 1], strides = [1, 1]} : vector<8x128xf32> to vector<8x1xf32>
      %173 = vector.broadcast %172 : vector<8x1xf32> to vector<8x128xf32>
      %174 = arith.mulf %173, %109 : vector<8x128xf32>
      %175 = arith.addf %171, %174 : vector<8x128xf32>
      %c3_97 = arith.constant 3 : index
      %c0_98 = arith.constant 0 : index
      %c0_99 = arith.constant 0 : index
      %176 = vector.load %arg14[%c3_97, %c0_98, %c0_99] : memref<16x8x128xf32, #tpu.memory_space<vmem>>, vector<1x8x128xf32>
      %177 = vector.shape_cast %176 : vector<1x8x128xf32> to vector<8x128xf32>
      %178 = vector.shape_cast %175 : vector<8x128xf32> to vector<1x8x128xf32>
      tpu.vector_store %arg14[%c3_97, %c0_98, %c0_99], %178 {strides = array<i32>} : memref<16x8x128xf32, #tpu.memory_space<vmem>>, vector<1x8x128xf32>,
      %179 = vector.extract_strided_slice %105 {offsets = [0, 19], sizes = [8, 1], strides = [1, 1]} : vector<8x128xf32> to vector<8x1xf32>
      %180 = vector.broadcast %179 : vector<8x1xf32> to vector<8x128xf32>
      %181 = arith.mulf %175, %180 : vector<8x128xf32>
      %182 = arith.addf %164, %181 : vector<8x128xf32>
      %c4 = arith.constant 4 : index
      %c0_100 = arith.constant 0 : index
      %183 = vector.load %arg10[%c4, %c0_100] : memref<16x128xf32, #tpu.memory_space<vmem>>, vector<1x128xf32>
      %184 = vector.broadcast %183 : vector<1x128xf32> to vector<8x128xf32>
      %185 = arith.mulf %107, %184 : vector<8x128xf32>
      %186 = math.exp %185 : vector<8x128xf32>
      %c4_101 = arith.constant 4 : index
      %c0_102 = arith.constant 0 : index
      %c0_103 = arith.constant 0 : index
      %187 = vector.load %arg14[%c4_101, %c0_102, %c0_103] : memref<16x8x128xf32, #tpu.memory_space<vmem>>, vector<1x8x128xf32>
      %188 = vector.shape_cast %187 : vector<1x8x128xf32> to vector<8x128xf32>
      %189 = arith.mulf %186, %188 : vector<8x128xf32>
      %190 = vector.extract_strided_slice %105 {offsets = [0, 4], sizes = [8, 1], strides = [1, 1]} : vector<8x128xf32> to vector<8x1xf32>
      %191 = vector.broadcast %190 : vector<8x1xf32> to vector<8x128xf32>
      %192 = arith.mulf %191, %109 : vector<8x128xf32>
      %193 = arith.addf %189, %192 : vector<8x128xf32>
      %c4_104 = arith.constant 4 : index
      %c0_105 = arith.constant 0 : index
      %c0_106 = arith.constant 0 : index
      %194 = vector.load %arg14[%c4_104, %c0_105, %c0_106] : memref<16x8x128xf32, #tpu.memory_space<vmem>>, vector<1x8x128xf32>
      %195 = vector.shape_cast %194 : vector<1x8x128xf32> to vector<8x128xf32>
      %196 = vector.shape_cast %193 : vector<8x128xf32> to vector<1x8x128xf32>
      tpu.vector_store %arg14[%c4_104, %c0_105, %c0_106], %196 {strides = array<i32>} : memref<16x8x128xf32, #tpu.memory_space<vmem>>, vector<1x8x128xf32>,
      %197 = vector.extract_strided_slice %105 {offsets = [0, 20], sizes = [8, 1], strides = [1, 1]} : vector<8x128xf32> to vector<8x1xf32>
      %198 = vector.broadcast %197 : vector<8x1xf32> to vector<8x128xf32>
      %199 = arith.mulf %193, %198 : vector<8x128xf32>
      %200 = arith.addf %182, %199 : vector<8x128xf32>
      %c5 = arith.constant 5 : index
      %c0_107 = arith.constant 0 : index
      %201 = vector.load %arg10[%c5, %c0_107] : memref<16x128xf32, #tpu.memory_space<vmem>>, vector<1x128xf32>
      %202 = vector.broadcast %201 : vector<1x128xf32> to vector<8x128xf32>
      %203 = arith.mulf %107, %202 : vector<8x128xf32>
      %204 = math.exp %203 : vector<8x128xf32>
      %c5_108 = arith.constant 5 : index
      %c0_109 = arith.constant 0 : index
      %c0_110 = arith.constant 0 : index
      %205 = vector.load %arg14[%c5_108, %c0_109, %c0_110] : memref<16x8x128xf32, #tpu.memory_space<vmem>>, vector<1x8x128xf32>
      %206 = vector.shape_cast %205 : vector<1x8x128xf32> to vector<8x128xf32>
      %207 = arith.mulf %204, %206 : vector<8x128xf32>
      %208 = vector.extract_strided_slice %105 {offsets = [0, 5], sizes = [8, 1], strides = [1, 1]} : vector<8x128xf32> to vector<8x1xf32>
      %209 = vector.broadcast %208 : vector<8x1xf32> to vector<8x128xf32>
      %210 = arith.mulf %209, %109 : vector<8x128xf32>
      %211 = arith.addf %207, %210 : vector<8x128xf32>
      %c5_111 = arith.constant 5 : index
      %c0_112 = arith.constant 0 : index
      %c0_113 = arith.constant 0 : index
      %212 = vector.load %arg14[%c5_111, %c0_112, %c0_113] : memref<16x8x128xf32, #tpu.memory_space<vmem>>, vector<1x8x128xf32>
      %213 = vector.shape_cast %212 : vector<1x8x128xf32> to vector<8x128xf32>
      %214 = vector.shape_cast %211 : vector<8x128xf32> to vector<1x8x128xf32>
      tpu.vector_store %arg14[%c5_111, %c0_112, %c0_113], %214 {strides = array<i32>} : memref<16x8x128xf32, #tpu.memory_space<vmem>>, vector<1x8x128xf32>,
      %215 = vector.extract_strided_slice %105 {offsets = [0, 21], sizes = [8, 1], strides = [1, 1]} : vector<8x128xf32> to vector<8x1xf32>
      %216 = vector.broadcast %215 : vector<8x1xf32> to vector<8x128xf32>
      %217 = arith.mulf %211, %216 : vector<8x128xf32>
      %218 = arith.addf %200, %217 : vector<8x128xf32>
      %c6 = arith.constant 6 : index
      %c0_114 = arith.constant 0 : index
      %219 = vector.load %arg10[%c6, %c0_114] : memref<16x128xf32, #tpu.memory_space<vmem>>, vector<1x128xf32>
      %220 = vector.broadcast %219 : vector<1x128xf32> to vector<8x128xf32>
      %221 = arith.mulf %107, %220 : vector<8x128xf32>
      %222 = math.exp %221 : vector<8x128xf32>
      %c6_115 = arith.constant 6 : index
      %c0_116 = arith.constant 0 : index
      %c0_117 = arith.constant 0 : index
      %223 = vector.load %arg14[%c6_115, %c0_116, %c0_117] : memref<16x8x128xf32, #tpu.memory_space<vmem>>, vector<1x8x128xf32>
      %224 = vector.shape_cast %223 : vector<1x8x128xf32> to vector<8x128xf32>
      %225 = arith.mulf %222, %224 : vector<8x128xf32>
      %226 = vector.extract_strided_slice %105 {offsets = [0, 6], sizes = [8, 1], strides = [1, 1]} : vector<8x128xf32> to vector<8x1xf32>
      %227 = vector.broadcast %226 : vector<8x1xf32> to vector<8x128xf32>
      %228 = arith.mulf %227, %109 : vector<8x128xf32>
      %229 = arith.addf %225, %228 : vector<8x128xf32>
      %c6_118 = arith.constant 6 : index
      %c0_119 = arith.constant 0 : index
      %c0_120 = arith.constant 0 : index
      %230 = vector.load %arg14[%c6_118, %c0_119, %c0_120] : memref<16x8x128xf32, #tpu.memory_space<vmem>>, vector<1x8x128xf32>
      %231 = vector.shape_cast %230 : vector<1x8x128xf32> to vector<8x128xf32>
      %232 = vector.shape_cast %229 : vector<8x128xf32> to vector<1x8x128xf32>
      tpu.vector_store %arg14[%c6_118, %c0_119, %c0_120], %232 {strides = array<i32>} : memref<16x8x128xf32, #tpu.memory_space<vmem>>, vector<1x8x128xf32>,
      %233 = vector.extract_strided_slice %105 {offsets = [0, 22], sizes = [8, 1], strides = [1, 1]} : vector<8x128xf32> to vector<8x1xf32>
      %234 = vector.broadcast %233 : vector<8x1xf32> to vector<8x128xf32>
      %235 = arith.mulf %229, %234 : vector<8x128xf32>
      %236 = arith.addf %218, %235 : vector<8x128xf32>
      %c7 = arith.constant 7 : index
      %c0_121 = arith.constant 0 : index
      %237 = vector.load %arg10[%c7, %c0_121] : memref<16x128xf32, #tpu.memory_space<vmem>>, vector<1x128xf32>
      %238 = vector.broadcast %237 : vector<1x128xf32> to vector<8x128xf32>
      %239 = arith.mulf %107, %238 : vector<8x128xf32>
      %240 = math.exp %239 : vector<8x128xf32>
      %c7_122 = arith.constant 7 : index
      %c0_123 = arith.constant 0 : index
      %c0_124 = arith.constant 0 : index
      %241 = vector.load %arg14[%c7_122, %c0_123, %c0_124] : memref<16x8x128xf32, #tpu.memory_space<vmem>>, vector<1x8x128xf32>
      %242 = vector.shape_cast %241 : vector<1x8x128xf32> to vector<8x128xf32>
      %243 = arith.mulf %240, %242 : vector<8x128xf32>
      %244 = vector.extract_strided_slice %105 {offsets = [0, 7], sizes = [8, 1], strides = [1, 1]} : vector<8x128xf32> to vector<8x1xf32>
      %245 = vector.broadcast %244 : vector<8x1xf32> to vector<8x128xf32>
      %246 = arith.mulf %245, %109 : vector<8x128xf32>
      %247 = arith.addf %243, %246 : vector<8x128xf32>
      %c7_125 = arith.constant 7 : index
      %c0_126 = arith.constant 0 : index
      %c0_127 = arith.constant 0 : index
      %248 = vector.load %arg14[%c7_125, %c0_126, %c0_127] : memref<16x8x128xf32, #tpu.memory_space<vmem>>, vector<1x8x128xf32>
      %249 = vector.shape_cast %248 : vector<1x8x128xf32> to vector<8x128xf32>
      %250 = vector.shape_cast %247 : vector<8x128xf32> to vector<1x8x128xf32>
      tpu.vector_store %arg14[%c7_125, %c0_126, %c0_127], %250 {strides = array<i32>} : memref<16x8x128xf32, #tpu.memory_space<vmem>>, vector<1x8x128xf32>,
      %251 = vector.extract_strided_slice %105 {offsets = [0, 23], sizes = [8, 1], strides = [1, 1]} : vector<8x128xf32> to vector<8x1xf32>
      %252 = vector.broadcast %251 : vector<8x1xf32> to vector<8x128xf32>
      %253 = arith.mulf %247, %252 : vector<8x128xf32>
      %254 = arith.addf %236, %253 : vector<8x128xf32>
      %c8_128 = arith.constant 8 : index
      %c0_129 = arith.constant 0 : index
      %255 = vector.load %arg10[%c8_128, %c0_129] : memref<16x128xf32, #tpu.memory_space<vmem>>, vector<1x128xf32>
      %256 = vector.broadcast %255 : vector<1x128xf32> to vector<8x128xf32>
      %257 = arith.mulf %107, %256 : vector<8x128xf32>
      %258 = math.exp %257 : vector<8x128xf32>
      %c8_130 = arith.constant 8 : index
      %c0_131 = arith.constant 0 : index
      %c0_132 = arith.constant 0 : index
      %259 = vector.load %arg14[%c8_130, %c0_131, %c0_132] : memref<16x8x128xf32, #tpu.memory_space<vmem>>, vector<1x8x128xf32>
      %260 = vector.shape_cast %259 : vector<1x8x128xf32> to vector<8x128xf32>
      %261 = arith.mulf %258, %260 : vector<8x128xf32>
      %262 = vector.extract_strided_slice %105 {offsets = [0, 8], sizes = [8, 1], strides = [1, 1]} : vector<8x128xf32> to vector<8x1xf32>
      %263 = vector.broadcast %262 : vector<8x1xf32> to vector<8x128xf32>
      %264 = arith.mulf %263, %109 : vector<8x128xf32>
      %265 = arith.addf %261, %264 : vector<8x128xf32>
      %c8_133 = arith.constant 8 : index
      %c0_134 = arith.constant 0 : index
      %c0_135 = arith.constant 0 : index
      %266 = vector.load %arg14[%c8_133, %c0_134, %c0_135] : memref<16x8x128xf32, #tpu.memory_space<vmem>>, vector<1x8x128xf32>
      %267 = vector.shape_cast %266 : vector<1x8x128xf32> to vector<8x128xf32>
      %268 = vector.shape_cast %265 : vector<8x128xf32> to vector<1x8x128xf32>
      tpu.vector_store %arg14[%c8_133, %c0_134, %c0_135], %268 {strides = array<i32>} : memref<16x8x128xf32, #tpu.memory_space<vmem>>, vector<1x8x128xf32>,
      %269 = vector.extract_strided_slice %105 {offsets = [0, 24], sizes = [8, 1], strides = [1, 1]} : vector<8x128xf32> to vector<8x1xf32>
      %270 = vector.broadcast %269 : vector<8x1xf32> to vector<8x128xf32>
      %271 = arith.mulf %265, %270 : vector<8x128xf32>
      %272 = arith.addf %254, %271 : vector<8x128xf32>
      %c9 = arith.constant 9 : index
      %c0_136 = arith.constant 0 : index
      %273 = vector.load %arg10[%c9, %c0_136] : memref<16x128xf32, #tpu.memory_space<vmem>>, vector<1x128xf32>
      %274 = vector.broadcast %273 : vector<1x128xf32> to vector<8x128xf32>
      %275 = arith.mulf %107, %274 : vector<8x128xf32>
      %276 = math.exp %275 : vector<8x128xf32>
      %c9_137 = arith.constant 9 : index
      %c0_138 = arith.constant 0 : index
      %c0_139 = arith.constant 0 : index
      %277 = vector.load %arg14[%c9_137, %c0_138, %c0_139] : memref<16x8x128xf32, #tpu.memory_space<vmem>>, vector<1x8x128xf32>
      %278 = vector.shape_cast %277 : vector<1x8x128xf32> to vector<8x128xf32>
      %279 = arith.mulf %276, %278 : vector<8x128xf32>
      %280 = vector.extract_strided_slice %105 {offsets = [0, 9], sizes = [8, 1], strides = [1, 1]} : vector<8x128xf32> to vector<8x1xf32>
      %281 = vector.broadcast %280 : vector<8x1xf32> to vector<8x128xf32>
      %282 = arith.mulf %281, %109 : vector<8x128xf32>
      %283 = arith.addf %279, %282 : vector<8x128xf32>
      %c9_140 = arith.constant 9 : index
      %c0_141 = arith.constant 0 : index
      %c0_142 = arith.constant 0 : index
      %284 = vector.load %arg14[%c9_140, %c0_141, %c0_142] : memref<16x8x128xf32, #tpu.memory_space<vmem>>, vector<1x8x128xf32>
      %285 = vector.shape_cast %284 : vector<1x8x128xf32> to vector<8x128xf32>
      %286 = vector.shape_cast %283 : vector<8x128xf32> to vector<1x8x128xf32>
      tpu.vector_store %arg14[%c9_140, %c0_141, %c0_142], %286 {strides = array<i32>} : memref<16x8x128xf32, #tpu.memory_space<vmem>>, vector<1x8x128xf32>,
      %287 = vector.extract_strided_slice %105 {offsets = [0, 25], sizes = [8, 1], strides = [1, 1]} : vector<8x128xf32> to vector<8x1xf32>
      %288 = vector.broadcast %287 : vector<8x1xf32> to vector<8x128xf32>
      %289 = arith.mulf %283, %288 : vector<8x128xf32>
      %290 = arith.addf %272, %289 : vector<8x128xf32>
      %c10 = arith.constant 10 : index
      %c0_143 = arith.constant 0 : index
      %291 = vector.load %arg10[%c10, %c0_143] : memref<16x128xf32, #tpu.memory_space<vmem>>, vector<1x128xf32>
      %292 = vector.broadcast %291 : vector<1x128xf32> to vector<8x128xf32>
      %293 = arith.mulf %107, %292 : vector<8x128xf32>
      %294 = math.exp %293 : vector<8x128xf32>
      %c10_144 = arith.constant 10 : index
      %c0_145 = arith.constant 0 : index
      %c0_146 = arith.constant 0 : index
      %295 = vector.load %arg14[%c10_144, %c0_145, %c0_146] : memref<16x8x128xf32, #tpu.memory_space<vmem>>, vector<1x8x128xf32>
      %296 = vector.shape_cast %295 : vector<1x8x128xf32> to vector<8x128xf32>
      %297 = arith.mulf %294, %296 : vector<8x128xf32>
      %298 = vector.extract_strided_slice %105 {offsets = [0, 10], sizes = [8, 1], strides = [1, 1]} : vector<8x128xf32> to vector<8x1xf32>
      %299 = vector.broadcast %298 : vector<8x1xf32> to vector<8x128xf32>
      %300 = arith.mulf %299, %109 : vector<8x128xf32>
      %301 = arith.addf %297, %300 : vector<8x128xf32>
      %c10_147 = arith.constant 10 : index
      %c0_148 = arith.constant 0 : index
      %c0_149 = arith.constant 0 : index
      %302 = vector.load %arg14[%c10_147, %c0_148, %c0_149] : memref<16x8x128xf32, #tpu.memory_space<vmem>>, vector<1x8x128xf32>
      %303 = vector.shape_cast %302 : vector<1x8x128xf32> to vector<8x128xf32>
      %304 = vector.shape_cast %301 : vector<8x128xf32> to vector<1x8x128xf32>
      tpu.vector_store %arg14[%c10_147, %c0_148, %c0_149], %304 {strides = array<i32>} : memref<16x8x128xf32, #tpu.memory_space<vmem>>, vector<1x8x128xf32>,
      %305 = vector.extract_strided_slice %105 {offsets = [0, 26], sizes = [8, 1], strides = [1, 1]} : vector<8x128xf32> to vector<8x1xf32>
      %306 = vector.broadcast %305 : vector<8x1xf32> to vector<8x128xf32>
      %307 = arith.mulf %301, %306 : vector<8x128xf32>
      %308 = arith.addf %290, %307 : vector<8x128xf32>
      %c11 = arith.constant 11 : index
      %c0_150 = arith.constant 0 : index
      %309 = vector.load %arg10[%c11, %c0_150] : memref<16x128xf32, #tpu.memory_space<vmem>>, vector<1x128xf32>
      %310 = vector.broadcast %309 : vector<1x128xf32> to vector<8x128xf32>
      %311 = arith.mulf %107, %310 : vector<8x128xf32>
      %312 = math.exp %311 : vector<8x128xf32>
      %c11_151 = arith.constant 11 : index
      %c0_152 = arith.constant 0 : index
      %c0_153 = arith.constant 0 : index
      %313 = vector.load %arg14[%c11_151, %c0_152, %c0_153] : memref<16x8x128xf32, #tpu.memory_space<vmem>>, vector<1x8x128xf32>
      %314 = vector.shape_cast %313 : vector<1x8x128xf32> to vector<8x128xf32>
      %315 = arith.mulf %312, %314 : vector<8x128xf32>
      %316 = vector.extract_strided_slice %105 {offsets = [0, 11], sizes = [8, 1], strides = [1, 1]} : vector<8x128xf32> to vector<8x1xf32>
      %317 = vector.broadcast %316 : vector<8x1xf32> to vector<8x128xf32>
      %318 = arith.mulf %317, %109 : vector<8x128xf32>
      %319 = arith.addf %315, %318 : vector<8x128xf32>
      %c11_154 = arith.constant 11 : index
      %c0_155 = arith.constant 0 : index
      %c0_156 = arith.constant 0 : index
      %320 = vector.load %arg14[%c11_154, %c0_155, %c0_156] : memref<16x8x128xf32, #tpu.memory_space<vmem>>, vector<1x8x128xf32>
      %321 = vector.shape_cast %320 : vector<1x8x128xf32> to vector<8x128xf32>
      %322 = vector.shape_cast %319 : vector<8x128xf32> to vector<1x8x128xf32>
      tpu.vector_store %arg14[%c11_154, %c0_155, %c0_156], %322 {strides = array<i32>} : memref<16x8x128xf32, #tpu.memory_space<vmem>>, vector<1x8x128xf32>,
      %323 = vector.extract_strided_slice %105 {offsets = [0, 27], sizes = [8, 1], strides = [1, 1]} : vector<8x128xf32> to vector<8x1xf32>
      %324 = vector.broadcast %323 : vector<8x1xf32> to vector<8x128xf32>
      %325 = arith.mulf %319, %324 : vector<8x128xf32>
      %326 = arith.addf %308, %325 : vector<8x128xf32>
      %c12 = arith.constant 12 : index
      %c0_157 = arith.constant 0 : index
      %327 = vector.load %arg10[%c12, %c0_157] : memref<16x128xf32, #tpu.memory_space<vmem>>, vector<1x128xf32>
      %328 = vector.broadcast %327 : vector<1x128xf32> to vector<8x128xf32>
      %329 = arith.mulf %107, %328 : vector<8x128xf32>
      %330 = math.exp %329 : vector<8x128xf32>
      %c12_158 = arith.constant 12 : index
      %c0_159 = arith.constant 0 : index
      %c0_160 = arith.constant 0 : index
      %331 = vector.load %arg14[%c12_158, %c0_159, %c0_160] : memref<16x8x128xf32, #tpu.memory_space<vmem>>, vector<1x8x128xf32>
      %332 = vector.shape_cast %331 : vector<1x8x128xf32> to vector<8x128xf32>
      %333 = arith.mulf %330, %332 : vector<8x128xf32>
      %334 = vector.extract_strided_slice %105 {offsets = [0, 12], sizes = [8, 1], strides = [1, 1]} : vector<8x128xf32> to vector<8x1xf32>
      %335 = vector.broadcast %334 : vector<8x1xf32> to vector<8x128xf32>
      %336 = arith.mulf %335, %109 : vector<8x128xf32>
      %337 = arith.addf %333, %336 : vector<8x128xf32>
      %c12_161 = arith.constant 12 : index
      %c0_162 = arith.constant 0 : index
      %c0_163 = arith.constant 0 : index
      %338 = vector.load %arg14[%c12_161, %c0_162, %c0_163] : memref<16x8x128xf32, #tpu.memory_space<vmem>>, vector<1x8x128xf32>
      %339 = vector.shape_cast %338 : vector<1x8x128xf32> to vector<8x128xf32>
      %340 = vector.shape_cast %337 : vector<8x128xf32> to vector<1x8x128xf32>
      tpu.vector_store %arg14[%c12_161, %c0_162, %c0_163], %340 {strides = array<i32>} : memref<16x8x128xf32, #tpu.memory_space<vmem>>, vector<1x8x128xf32>,
      %341 = vector.extract_strided_slice %105 {offsets = [0, 28], sizes = [8, 1], strides = [1, 1]} : vector<8x128xf32> to vector<8x1xf32>
      %342 = vector.broadcast %341 : vector<8x1xf32> to vector<8x128xf32>
      %343 = arith.mulf %337, %342 : vector<8x128xf32>
      %344 = arith.addf %326, %343 : vector<8x128xf32>
      %c13 = arith.constant 13 : index
      %c0_164 = arith.constant 0 : index
      %345 = vector.load %arg10[%c13, %c0_164] : memref<16x128xf32, #tpu.memory_space<vmem>>, vector<1x128xf32>
      %346 = vector.broadcast %345 : vector<1x128xf32> to vector<8x128xf32>
      %347 = arith.mulf %107, %346 : vector<8x128xf32>
      %348 = math.exp %347 : vector<8x128xf32>
      %c13_165 = arith.constant 13 : index
      %c0_166 = arith.constant 0 : index
      %c0_167 = arith.constant 0 : index
      %349 = vector.load %arg14[%c13_165, %c0_166, %c0_167] : memref<16x8x128xf32, #tpu.memory_space<vmem>>, vector<1x8x128xf32>
      %350 = vector.shape_cast %349 : vector<1x8x128xf32> to vector<8x128xf32>
      %351 = arith.mulf %348, %350 : vector<8x128xf32>
      %352 = vector.extract_strided_slice %105 {offsets = [0, 13], sizes = [8, 1], strides = [1, 1]} : vector<8x128xf32> to vector<8x1xf32>
      %353 = vector.broadcast %352 : vector<8x1xf32> to vector<8x128xf32>
      %354 = arith.mulf %353, %109 : vector<8x128xf32>
      %355 = arith.addf %351, %354 : vector<8x128xf32>
      %c13_168 = arith.constant 13 : index
      %c0_169 = arith.constant 0 : index
      %c0_170 = arith.constant 0 : index
      %356 = vector.load %arg14[%c13_168, %c0_169, %c0_170] : memref<16x8x128xf32, #tpu.memory_space<vmem>>, vector<1x8x128xf32>
      %357 = vector.shape_cast %356 : vector<1x8x128xf32> to vector<8x128xf32>
      %358 = vector.shape_cast %355 : vector<8x128xf32> to vector<1x8x128xf32>
      tpu.vector_store %arg14[%c13_168, %c0_169, %c0_170], %358 {strides = array<i32>} : memref<16x8x128xf32, #tpu.memory_space<vmem>>, vector<1x8x128xf32>,
      %359 = vector.extract_strided_slice %105 {offsets = [0, 29], sizes = [8, 1], strides = [1, 1]} : vector<8x128xf32> to vector<8x1xf32>
      %360 = vector.broadcast %359 : vector<8x1xf32> to vector<8x128xf32>
      %361 = arith.mulf %355, %360 : vector<8x128xf32>
      %362 = arith.addf %344, %361 : vector<8x128xf32>
      %c14 = arith.constant 14 : index
      %c0_171 = arith.constant 0 : index
      %363 = vector.load %arg10[%c14, %c0_171] : memref<16x128xf32, #tpu.memory_space<vmem>>, vector<1x128xf32>
      %364 = vector.broadcast %363 : vector<1x128xf32> to vector<8x128xf32>
      %365 = arith.mulf %107, %364 : vector<8x128xf32>
      %366 = math.exp %365 : vector<8x128xf32>
      %c14_172 = arith.constant 14 : index
      %c0_173 = arith.constant 0 : index
      %c0_174 = arith.constant 0 : index
      %367 = vector.load %arg14[%c14_172, %c0_173, %c0_174] : memref<16x8x128xf32, #tpu.memory_space<vmem>>, vector<1x8x128xf32>
      %368 = vector.shape_cast %367 : vector<1x8x128xf32> to vector<8x128xf32>
      %369 = arith.mulf %366, %368 : vector<8x128xf32>
      %370 = vector.extract_strided_slice %105 {offsets = [0, 14], sizes = [8, 1], strides = [1, 1]} : vector<8x128xf32> to vector<8x1xf32>
      %371 = vector.broadcast %370 : vector<8x1xf32> to vector<8x128xf32>
      %372 = arith.mulf %371, %109 : vector<8x128xf32>
      %373 = arith.addf %369, %372 : vector<8x128xf32>
      %c14_175 = arith.constant 14 : index
      %c0_176 = arith.constant 0 : index
      %c0_177 = arith.constant 0 : index
      %374 = vector.load %arg14[%c14_175, %c0_176, %c0_177] : memref<16x8x128xf32, #tpu.memory_space<vmem>>, vector<1x8x128xf32>
      %375 = vector.shape_cast %374 : vector<1x8x128xf32> to vector<8x128xf32>
      %376 = vector.shape_cast %373 : vector<8x128xf32> to vector<1x8x128xf32>
      tpu.vector_store %arg14[%c14_175, %c0_176, %c0_177], %376 {strides = array<i32>} : memref<16x8x128xf32, #tpu.memory_space<vmem>>, vector<1x8x128xf32>,
      %377 = vector.extract_strided_slice %105 {offsets = [0, 30], sizes = [8, 1], strides = [1, 1]} : vector<8x128xf32> to vector<8x1xf32>
      %378 = vector.broadcast %377 : vector<8x1xf32> to vector<8x128xf32>
      %379 = arith.mulf %373, %378 : vector<8x128xf32>
      %380 = arith.addf %362, %379 : vector<8x128xf32>
      %c15 = arith.constant 15 : index
      %c0_178 = arith.constant 0 : index
      %381 = vector.load %arg10[%c15, %c0_178] : memref<16x128xf32, #tpu.memory_space<vmem>>, vector<1x128xf32>
      %382 = vector.broadcast %381 : vector<1x128xf32> to vector<8x128xf32>
      %383 = arith.mulf %107, %382 : vector<8x128xf32>
      %384 = math.exp %383 : vector<8x128xf32>
      %c15_179 = arith.constant 15 : index
      %c0_180 = arith.constant 0 : index
      %c0_181 = arith.constant 0 : index
      %385 = vector.load %arg14[%c15_179, %c0_180, %c0_181] : memref<16x8x128xf32, #tpu.memory_space<vmem>>, vector<1x8x128xf32>
      %386 = vector.shape_cast %385 : vector<1x8x128xf32> to vector<8x128xf32>
      %387 = arith.mulf %384, %386 : vector<8x128xf32>
      %388 = vector.extract_strided_slice %105 {offsets = [0, 15], sizes = [8, 1], strides = [1, 1]} : vector<8x128xf32> to vector<8x1xf32>
      %389 = vector.broadcast %388 : vector<8x1xf32> to vector<8x128xf32>
      %390 = arith.mulf %389, %109 : vector<8x128xf32>
      %391 = arith.addf %387, %390 : vector<8x128xf32>
      %c15_182 = arith.constant 15 : index
      %c0_183 = arith.constant 0 : index
      %c0_184 = arith.constant 0 : index
      %392 = vector.load %arg14[%c15_182, %c0_183, %c0_184] : memref<16x8x128xf32, #tpu.memory_space<vmem>>, vector<1x8x128xf32>
      %393 = vector.shape_cast %392 : vector<1x8x128xf32> to vector<8x128xf32>
      %394 = vector.shape_cast %391 : vector<8x128xf32> to vector<1x8x128xf32>
      tpu.vector_store %arg14[%c15_182, %c0_183, %c0_184], %394 {strides = array<i32>} : memref<16x8x128xf32, #tpu.memory_space<vmem>>, vector<1x8x128xf32>,
      %395 = vector.extract_strided_slice %105 {offsets = [0, 31], sizes = [8, 1], strides = [1, 1]} : vector<8x128xf32> to vector<8x1xf32>
      %396 = vector.broadcast %395 : vector<8x1xf32> to vector<8x128xf32>
      %397 = arith.mulf %391, %396 : vector<8x128xf32>
      %398 = arith.addf %380, %397 : vector<8x128xf32>
      %399 = arith.index_cast %103 : i32 to index
      %c0_185 = arith.constant 0 : index
      %400 = vector.load %arg19[%399, %c0_185] : memref<64x128xf32, #tpu.memory_space<vmem>>, vector<8x128xf32>
      tpu.vector_store %arg19[%399, %c0_185], %398 {strides = array<i32>} : memref<64x128xf32, #tpu.memory_space<vmem>>, vector<8x128xf32>,
    }
    %c8_i32_45 = arith.constant 8 : i32
    %c0_46 = arith.constant 0 : index
    %c0_47 = arith.constant 0 : index
    %80 = vector.load %arg20[%c0_46, %c0_47] : memref<64x128xf32, #tpu.memory_space<vmem>>, vector<64x128xf32>
    %c0_48 = arith.constant 0 : index
    %c0_49 = arith.constant 0 : index
    %81 = vector.load %arg19[%c0_48, %c0_49] : memref<64x128xf32, #tpu.memory_space<vmem>>, vector<64x128xf32>
    %82 = arith.negf %80 : vector<64x128xf32>
    %83 = math.exp %82 : vector<64x128xf32>
    %cst_50 = arith.constant 1.000000e+00 : f32
    %84 = vector.broadcast %cst_50 : f32 to vector<64x128xf32>
    %85 = arith.addf %84, %83 : vector<64x128xf32>
    %86 = arith.divf %84, %85 : vector<64x128xf32>
    %87 = arith.mulf %80, %86 : vector<64x128xf32>
    %88 = arith.mulf %81, %87 : vector<64x128xf32>
    %c0_51 = arith.constant 0 : index
    %c0_52 = arith.constant 0 : index
    %89 = vector.load %arg11[%c0_51, %c0_52] : memref<128x64xf32, #tpu.memory_space<vmem>>, vector<128x64xf32>
    %cst_53 = arith.constant dense<0.000000e+00> : vector<64x64xf32>
    %90 = tpu.matmul %88, %89, %cst_53 {dimension_numbers = #tpu.dot_dimension_numbers<[1], [0], [0], [1], [0, 0, 1, 1], [], []>} : vector<64x128xf32>, vector<128x64xf32>, vector<64x64xf32> -> vector<64x64xf32>
    %c0_54 = arith.constant 0 : index
    %c0_55 = arith.constant 0 : index
    %91 = vector.load %arg12[%c0_54, %c0_55] : memref<1x64xf32, #tpu.memory_space<vmem>>, vector<1x64xf32>
    %92 = vector.broadcast %91 : vector<1x64xf32> to vector<64x64xf32>
    %93 = arith.addf %90, %92 : vector<64x64xf32>
    %c0_56 = arith.constant 0 : index
    %c0_57 = arith.constant 0 : index
    %c0_58 = arith.constant 0 : index
    %94 = vector.load %arg2[%c0_56, %c0_57, %c0_58] : memref<1x64x64xf32, #tpu.memory_space<vmem>>, vector<1x64x64xf32>
    %95 = vector.shape_cast %94 : vector<1x64x64xf32> to vector<64x64xf32>
    %96 = arith.addf %93, %95 : vector<64x64xf32>
    %c0_59 = arith.constant 0 : index
    %c0_60 = arith.constant 0 : index
    %c0_61 = arith.constant 0 : index
    %97 = vector.load %arg13[%c0_59, %c0_60, %c0_61] : memref<1x64x64xf32, #tpu.memory_space<vmem>>, vector<1x64x64xf32>
    %98 = vector.shape_cast %97 : vector<1x64x64xf32> to vector<64x64xf32>
    %99 = vector.shape_cast %96 : vector<64x64xf32> to vector<1x64x64xf32>
    tpu.vector_store %arg13[%c0_59, %c0_60, %c0_61], %99 {strides = array<i32>} : memref<1x64x64xf32, #tpu.memory_space<vmem>>, vector<1x64x64xf32>,
    return
  }
  func.func @transform_0(%arg0: i32, %arg1: i32) -> (i32, i32, i32) {
    %c0_i32 = arith.constant 0 : i32
    %c0_i32_0 = arith.constant 0 : i32
    return %arg0, %arg1, %c0_i32 : i32, i32, i32
  }
  func.func @transform_1(%arg0: i32, %arg1: i32) -> (i32, i32) {
    %c0_i32 = arith.constant 0 : i32
    %c0_i32_0 = arith.constant 0 : i32
    %c0_i32_1 = arith.constant 0 : i32
    return %c0_i32, %c0_i32_0 : i32, i32
  }
  func.func @transform_2(%arg0: i32, %arg1: i32) -> (i32, i32) {
    %c0_i32 = arith.constant 0 : i32
    %c0_i32_0 = arith.constant 0 : i32
    %c0_i32_1 = arith.constant 0 : i32
    return %c0_i32, %c0_i32_0 : i32, i32
  }
  func.func @transform_3(%arg0: i32, %arg1: i32) -> (i32, i32) {
    %c0_i32 = arith.constant 0 : i32
    %c0_i32_0 = arith.constant 0 : i32
    %c0_i32_1 = arith.constant 0 : i32
    return %c0_i32, %c0_i32_0 : i32, i32
  }
  func.func @transform_4(%arg0: i32, %arg1: i32) -> (i32, i32) {
    %c0_i32 = arith.constant 0 : i32
    %c0_i32_0 = arith.constant 0 : i32
    %c0_i32_1 = arith.constant 0 : i32
    return %c0_i32, %c0_i32_0 : i32, i32
  }
  func.func @transform_5(%arg0: i32, %arg1: i32) -> (i32, i32) {
    %c0_i32 = arith.constant 0 : i32
    %c0_i32_0 = arith.constant 0 : i32
    %c0_i32_1 = arith.constant 0 : i32
    return %c0_i32, %c0_i32_0 : i32, i32
  }
  func.func @transform_6(%arg0: i32, %arg1: i32) -> (i32, i32) {
    %c0_i32 = arith.constant 0 : i32
    %c0_i32_0 = arith.constant 0 : i32
    %c0_i32_1 = arith.constant 0 : i32
    return %c0_i32, %c0_i32_0 : i32, i32
  }
  func.func @transform_7(%arg0: i32, %arg1: i32) -> (i32, i32) {
    %c0_i32 = arith.constant 0 : i32
    %c0_i32_0 = arith.constant 0 : i32
    %c0_i32_1 = arith.constant 0 : i32
    return %c0_i32, %c0_i32_0 : i32, i32
  }
  func.func @transform_8(%arg0: i32, %arg1: i32) -> (i32, i32) {
    %c0_i32 = arith.constant 0 : i32
    %c0_i32_0 = arith.constant 0 : i32
    %c0_i32_1 = arith.constant 0 : i32
    return %c0_i32, %c0_i32_0 : i32, i32
  }
  func.func @transform_9(%arg0: i32, %arg1: i32) -> (i32, i32) {
    %c0_i32 = arith.constant 0 : i32
    %c0_i32_0 = arith.constant 0 : i32
    %c0_i32_1 = arith.constant 0 : i32
    return %c0_i32, %c0_i32_0 : i32, i32
  }
  func.func @transform_10(%arg0: i32, %arg1: i32) -> (i32, i32) {
    %c0_i32 = arith.constant 0 : i32
    %c0_i32_0 = arith.constant 0 : i32
    %c0_i32_1 = arith.constant 0 : i32
    return %c0_i32, %c0_i32_0 : i32, i32
  }
  func.func @transform_11(%arg0: i32, %arg1: i32) -> (i32, i32, i32) {
    %c0_i32 = arith.constant 0 : i32
    %c0_i32_0 = arith.constant 0 : i32
    return %arg0, %arg1, %c0_i32 : i32, i32, i32
  }
}

</mosaic_0001>

<bundles_post_ra>
// kernel: tpu_custom_call.1
= control target key start
LH: loop header
LB: loop body
LE: loop exit
PB: predicated region body
PF: predicated region fallthrough
CT: control target
= control target key end

     0   :  { %s2472_s17 = smov 0   ;;  %s2474_s18 = smov 0   ;;  %s3293_s0 = inlined_call_operand.vmem [shape: f32[2,128,64], index: 0, kind: input, shape index: {}]   ;;  %s3294_s1 = inlined_call_operand.vmem [shape: f32[1,64], index: 1, kind: input, shape index: {}]   ;;  %s3295_s2 = inlined_call_operand.vmem [shape: f32[64,256], index: 2, kind: input, shape index: {}]   ;;  %s3296_s3 = inlined_call_operand.vmem [shape: f32[1,256], index: 3, kind: input, shape index: {}]   ;;  %s3297_s4 = inlined_call_operand.vmem [shape: f32[3,128], index: 4, kind: input, shape index: {}]   ;;  %s3298_s5 = inlined_call_operand.vmem [shape: f32[1,128], index: 5, kind: input, shape index: {}]   ;;  %s3299_s6 = inlined_call_operand.vmem [shape: f32[128,256], index: 6, kind: input, shape index: {}]   ;;  %s3300_s7 = inlined_call_operand.vmem [shape: f32[1,128], index: 7, kind: input, shape index: {}]   ;;  %s3301_s8 = inlined_call_operand.vmem [shape: f32[16,128], index: 8, kind: input, shape index: {}]   ;;  %s3302_s9 = inlined_call_operand.vmem [shape: f32[128,64], index: 9, kind: input, shape index: {}]   ;;  %s3303_s10 = inlined_call_operand.vmem [shape: f32[1,64], index: 10, kind: input, shape index: {}]   ;;  %s3304_s11 = inlined_call_operand.vmem [shape: f32[2,128,64], index: 11, kind: output, shape index: {}]  }
   0x1   :  { %s2476_s19 = smov 0   ;;  %s2478_s20 = smov 0  }
   0x2   :  { %s2480_s21 = smov 0  }
   0x3 LB: > { %s30_s22 = sadd.s32 1, %s2364_s19  ;;  %s33_s23 = sadd.s32 1, %s2368_s20  ;;  %s2372_s21 = sphi %s2480_s21, %s21_s21   ;;  %s2368_s20 = sphi %s2478_s20, %s3308_s20   ;;  %s2364_s19 = sphi %s2476_s19, %s3307_s19   ;;  %s2360_s18 = sphi %s2474_s18, %s3306_s18   ;;  %s2356_s17 = sphi %s2472_s17, %s3305_s17  }
   0x4   : > { %p31_p0 = scmp.ge.s32.totalorder %s30_s22, 2  ;;  %p1945_p1 = scmp.ge.s32.totalorder %s2372_s21, 1 }
   0x5   : > { %p358_p2 = scmp.lt.s32.totalorder %s2372_s21, 5 }
   0x6   : > { %s3310_s22 = smov (%p31_p0, %s30_s22), 0  ;;  %s3312_s23 = smov (!%p31_p0, %s33_s23), %s2368_s20 }
   0x7   : > { %p359_p3 = pnand %p1945_p1, %p358_p2  ;;  %p35_p4 = scmp.ge.s32.totalorder %s3312_s23, 2 }
   0x8   : > { %s1946_s24 = sshll.u32 (!%p359_p3), %s2356_s17, 3  ;;  %p407_p5 = scmp.lt.s32.totalorder (!%p359_p3), %s2360_s18, 1 }
   0x9   : > { %s3314_s23 = smov (%p35_p4, %s3312_s23), 0  ;;  %362 = sbr.rel (%p359_p3) target bundleno = 1206 (0x4b6), region = 64 }
   0xa   : > { %p409_p6 = scmp.lt.s32.totalorder (!%p359_p3), %s1946_s24, 15  ;;  %p1961_p7 = scmp.ne.s32.totalorder (!%p359_p3), %s2356_s17, 0 }
   0xe   : > { %s3316_s18 = smov (!%p407_p5, %s2360_s18), 1  ;;  %s3318_s24 = smov (!%p409_p6, %s1946_s24), 15  ;;  %vm442_vm0 = vcmask 523264   ;;  %v530_v24 = vld [vmem:[%s3295_s2 + $0x78] sm:$0xff]  ;;  %v529_v25 = vld [vmem:[%s3295_s2 + $0x70] sm:$0xff]  ;;  %v528_v26 = vld [vmem:[%s3295_s2 + $0x68] sm:$0xff] }
   0xf   : > { %s1947_s25 = sshll.u32 %s3316_s18, 4  ;;  %583 = vmatprep.subr.mxu0 %v530_v24  ;;  %v527_v27 = vld [vmem:[%s3295_s2 + $0x60] sm:$0xff]  ;;  %v526_v28 = vld [vmem:[%s3295_s2 + $0x58] sm:$0xff]  ;;  %v525_v29 = vld [vmem:[%s3295_s2 + $0x50] sm:$0xff]  ;;  %v2378_v36 = vmov 0.0  }
  0x10   : > { %s412_s26 = sadd.s32 %s1947_s25, %s3318_s24  ;;  %584 = vmatpush1.msra.mxu0 %v529_v25  ;;  %v524_v30 = vld [vmem:[%s3295_s2 + $0x48] sm:$0xff]  ;;  %v523_v31 = vld [vmem:[%s3295_s2 + $0x40] sm:$0xff]  ;;  %v522_v32 = vld [vmem:[%s3295_s2 + $0x38] sm:$0xff]  ;;  %631 = vmatprep.mubr.f32.mxu0 %v2378_v36 }
  0x11   : > { %s1948_s27 = sshll.u32 %s412_s26, 3  ;;  %585 = vmatprep.subr.mxu0 %v528_v26  ;;  %v521_v33 = vld [vmem:[%s3295_s2 + $0x30] sm:$0xff]  ;;  %v520_v34 = vld [vmem:[%s3295_s2 + $0x28] sm:$0xff]  ;;  %v519_v35 = vld [vmem:[%s3295_s2 + $0x20] sm:$0xff] }
  0x12   : > { %s2508_s30 = scalar_lea.vmem %s3293_s0, %s1948_s27  ;;  %s2513_s14 = scalar_lea.vmem %s3304_s11, %s1948_s27  ;;  %586 = vmatpush1.msra.mxu0 %v527_v27  ;;  %v518_v37 = vld [vmem:[%s3295_s2 + $0x18] sm:$0xff]  ;;  %v517_v38 = vld [vmem:[%s3295_s2 + $0x10] sm:$0xff]  ;;  %v516_v39 = vld [vmem:[%s3295_s2 + $0x8] sm:$0xff] }
  0x13   : > { %v2516_v0 = vld [vmem:[%s2508_s30] sm:$0xff]  ;;  %v2519_v1 = vld [vmem:[%s2508_s30 + $0x8] sm:$0xff]  ;;  %v2522_v2 = vld [vmem:[%s2508_s30 + $0x10] sm:$0xff]  ;;  %587 = vmatprep.subr.mxu0 %v526_v28  ;;  %v533_v28 = vlaneseq }
  0x14   : > { %v434_v3 = vmul.f32 %v2516_v0, %v2516_v0  ;;  %v435_v4 = vmul.f32 %v2519_v1, %v2519_v1  ;;  %v436_v5 = vmul.f32 %v2522_v2, %v2522_v2  ;;  %v2531_v6 = vld [vmem:[%s2508_s30 + $0x18] sm:$0xff]  ;;  %v2536_v8 = vld [vmem:[%s2508_s30 + $0x20] sm:$0xff]  ;;  %v2539_v9 = vld [vmem:[%s2508_s30 + $0x28] sm:$0xff]  ;;  %588 = vmatpush1.msra.mxu0 %v525_v29 }
  0x15   : > { %v437_v7 = vmul.f32 %v2531_v6, %v2531_v6  ;;  %v438_v14 = vmul.f32 %v2536_v8, %v2536_v8  ;;  %v439_v15 = vmul.f32 %v2539_v9, %v2539_v9  ;;  %v2550_v16 = vld [vmem:[%s2508_s30 + $0x30] sm:$0xff]  ;;  %v2553_v17 = vld [vmem:[%s2508_s30 + $0x38] sm:$0xff]  ;;  %589 = vmatprep.subr.mxu0 %v524_v30  ;;  %v515_v40 = vld [vmem:[%s3295_s2] sm:$0xff]  ;;  %v534_v29 = vshrl.u32 %v533_v28, 7 }
  0x16   : > { %v443_v10 = vsel %vm442_vm0, %v434_v3, 0.0  ;;  %v449_v11 = vsel %vm442_vm0, %v436_v5, 0.0  ;;  %v446_v12 = vsel %vm442_vm0, %v435_v4, 0.0  ;;  %v440_v20 = vmul.f32 %v2550_v16, %v2550_v16  ;;  %590 = vmatpush1.msra.mxu0 %v523_v31  ;;  %v1952_v63 = vld [vmem:[%s3294_s1] ss:$0 sm:$0xff] }
  0x17   : > { %444 = vadd.xlane.f32.xlu0 %v443_v10  ;;  %450 = vadd.xlane.f32.xlu1 %v449_v11  ;;  %v452_v13 = vsel %vm442_vm0, %v437_v7, 0.0  ;;  %v455_v18 = vsel %vm442_vm0, %v438_v14, 0.0  ;;  %v458_v19 = vsel %vm442_vm0, %v439_v15, 0.0  ;;  %v441_v21 = vmul.f32 %v2553_v17, %v2553_v17  ;;  %v531_v30 = vld [vmem:[%s3296_s3] sm:$0x3] }
  0x18   : > { %v461_v22 = vsel %vm442_vm0, %v440_v20, 0.0  ;;  %591 = vmatprep.subr.mxu0 %v522_v32  ;;  %v539_v31 = vsub.s32 1, %v534_v29 }
  0x19   : > { %v464_v23 = vsel %vm442_vm0, %v441_v21, 0.0  ;;  %592 = vmatpush1.msra.mxu0 %v521_v33 }
  0x1a   : > { %593 = vmatprep.subr.mxu0 %v520_v34  ;;  %v540_v33 = vrot.slane %v531_v30, %v539_v31 }
  0x1b   : > { %447 = vadd.xlane.f32.xlu0 %v446_v12  ;;  %453 = vadd.xlane.f32.xlu1 %v452_v13 }
  0x1c   : > { %594 = vmatpush1.msra.mxu0 %v519_v35 }
  0x1d   : > { %595 = vmatprep.subr.mxu0 %v518_v37 }
  0x1e   : > { %596 = vmatpush1.msra.mxu0 %v517_v38 }
  0x1f   : > { %456 = vadd.xlane.f32.xlu0 %v455_v18  ;;  %459 = vadd.xlane.f32.xlu1 %v458_v19 }
  0x20   : > { %597 = vmatprep.subr.mxu0 %v516_v39 }
  0x21   : > { %598 = vmatpush1.msra.mxu0 %v515_v40 }
  0x23   : > { %462 = vadd.xlane.f32.xlu0 %v461_v22  ;;  %465 = vadd.xlane.f32.xlu1 %v464_v23 }
  0xa0   : > { %v445_v41 = vpop.xlane.xlu0 %444  ;;  %v451_v42 = vpop.xlane.xlu1 %450 }
  0xa1   : > { %v468_v43 = vmul.f32 0.015625, %v445_v41  ;;  %v470_v44 = vmul.f32 0.015625, %v451_v42 }
  0xa3   : > { %v476_v45 = vadd.f32 1e-05, %v468_v43  ;;  %v478_v46 = vadd.f32 1e-05, %v470_v44 }
  0xa4   : > { %v448_v47 = vpop.xlane.xlu0 %447  ;;  %v454_v48 = vpop.xlane.xlu1 %453 }
  0xa5   : > { %2153 = vrsqrt.f32 %v476_v45  ;;  %v469_v49 = vmul.f32 0.015625, %v448_v47  ;;  %v471_v50 = vmul.f32 0.015625, %v454_v48 }
  0xa6   : > { %2155 = vrsqrt.f32 %v478_v46 }
  0xa7   : > { %v477_v51 = vadd.f32 1e-05, %v469_v49  ;;  %v479_v52 = vadd.f32 1e-05, %v471_v50 }
  0xa8   : > { %v457_v53 = vpop.xlane.xlu0 %456  ;;  %v460_v54 = vpop.xlane.xlu1 %459 }
  0xa9   : > { %2157 = vrsqrt.f32 %v477_v51  ;;  %v472_v55 = vmul.f32 0.015625, %v457_v53  ;;  %v473_v57 = vmul.f32 0.015625, %v460_v54 }
  0xaa   : > { %2159 = vrsqrt.f32 %v479_v52 }
  0xab   : > { %v480_v56 = vadd.f32 1e-05, %v472_v55  ;;  %v481_v59 = vadd.f32 1e-05, %v473_v57 }
  0xac   : > { %v463_v58 = vpop.xlane.xlu0 %462  ;;  %v466_v61 = vpop.xlane.xlu1 %465 }
  0xad   : > { %2161 = vrsqrt.f32 %v480_v56  ;;  %v474_v60 = vmul.f32 0.015625, %v463_v58  ;;  %v475_v5 = vmul.f32 0.015625, %v466_v61 }
  0xae   : > { %2163 = vrsqrt.f32 %v481_v59 }
  0xaf   : > { %v482_v4 = vadd.f32 1e-05, %v474_v60  ;;  %v483_v13 = vadd.f32 1e-05, %v475_v5 }
  0xb1   : > { %2165 = vrsqrt.f32 %v482_v4 }
  0xb2   : > { %v2154_v62 = vpop.eup %2153  ;;  %2167 = vrsqrt.f32 %v483_v13 }
  0xb3   : > { %v492_v3 = vmul.f32 %v2154_v62, %v2516_v0  ;;  %v2156_v7 = vpop.eup %2155 }
  0xb4   : > { %v494_v14 = vmul.f32 %v2156_v7, %v2522_v2 }
  0xb5   : > { %v507_v10 = vmul.f32 %v1952_v63, %v492_v3 }
  0xb6   : > { %v2158_v11 = vpop.eup %2157  ;;  %v509_v0 = vmul.f32 %v1952_v63, %v494_v14 }
  0xb7   : > { %1953 = vmatmul.mubr.msk.f32.vlgmr.msra.gmra.mxu0 %vm442_vm0, %v507_v10  ;;  %v493_v12 = vmul.f32 %v2158_v11, %v2519_v1  ;;  %v2160_v15 = vpop.eup %2159 }
  0xb8   : > { %637 = vmatprep.mubr.f32.mxu0 %v2378_v36  ;;  %v495_v19 = vmul.f32 %v2160_v15, %v2531_v6 }
  0xb9   : > { %v508_v18 = vmul.f32 %v1952_v63, %v493_v12 }
  0xba   : > { %v2162_v20 = vpop.eup %2161  ;;  %v510_v21 = vmul.f32 %v1952_v63, %v495_v19 }
  0xbb   : > { %1954 = vmatmul.mubr.msk.f32.gmra.mxu0 %vm442_vm0, %v508_v18  ;;  %v496_v1 = vmul.f32 %v2162_v20, %v2536_v8  ;;  %v2164_v22 = vpop.eup %2163 }
  0xbc   : > { %643 = vmatprep.mubr.f32.mxu0 %v2378_v36  ;;  %v497_v23 = vmul.f32 %v2164_v22, %v2539_v9 }
  0xbd   : > { %v511_v2 = vmul.f32 %v1952_v63, %v496_v1 }
  0xbe   : > { %v2166_v24 = vpop.eup %2165  ;;  %v512_v6 = vmul.f32 %v1952_v63, %v497_v23 }
  0xbf   : > { %1955 = vmatmul.mubr.msk.f32.gmra.mxu0 %vm442_vm0, %v509_v0  ;;  %v498_v25 = vmul.f32 %v2166_v24, %v2550_v16  ;;  %v2168_v26 = vpop.eup %2167  ;;  %v535_v16 = vsub.s32 0, %v534_v29 }
  0xc0   : > { %649 = vmatprep.mubr.f32.mxu0 %v2378_v36  ;;  %v499_v27 = vmul.f32 %v2168_v26, %v2553_v17 }
  0xc1   : > { %v513_v8 = vmul.f32 %v1952_v63, %v498_v25  ;;  %v536_v32 = vrot.slane %v531_v30, %v535_v16 }
  0xc2   : > { %v514_v9 = vmul.f32 %v1952_v63, %v499_v27 }
  0xc3   : > { %1956 = vmatmul.mubr.msk.f32.gmra.mxu0 %vm442_vm0, %v510_v21 }
  0xc4   : > { %655 = vmatprep.mubr.f32.mxu0 %v2378_v36 }
  0xc7   : > { %1957 = vmatmul.mubr.msk.f32.gmra.mxu0 %vm442_vm0, %v511_v2 }
  0xc8   : > { %661 = vmatprep.mubr.f32.mxu0 %v2378_v36 }
  0xcb   : > { %1958 = vmatmul.mubr.msk.f32.gmra.mxu0 %vm442_vm0, %v512_v6 }
  0xcc   : > { %667 = vmatprep.mubr.f32.mxu0 %v2378_v36 }
  0xcf   : > { %1959 = vmatmul.mubr.msk.f32.gmra.mxu0 %vm442_vm0, %v513_v8 }
  0xd0   : > { %673 = vmatprep.mubr.f32.mxu0 %v2378_v36 }
  0xd3   : > { %1960 = vmatmul.mubr.msk.f32.gmra.mxu0 %vm442_vm0, %v514_v9 }
 0x177   : > { %v633_v17 = vpop.f32.mrf.mxu0 }
 0x178   : > { %v2641_v34 = vadd.f32 %v633_v17, %v536_v32 }
 0x179   : > { %v635_v35 = vpop.f32.mrf.mxu0 }
 0x17a   : > { %v636_v37 = vadd.f32 %v635_v35, %v540_v33 }
 0x17b   : > { %v639_v38 = vpop.f32.mrf.mxu0 }
 0x17c   : > { %680 = vst [vmem:[#allocation8 + $0x28] sm:$0xff] %v636_v37  ;;  %v2643_v39 = vadd.f32 %v639_v38, %v536_v32 }
 0x17d   : > { %v641_v40 = vpop.f32.mrf.mxu0 }
 0x17e   : > { %v642_v41 = vadd.f32 %v641_v40, %v540_v33 }
 0x17f   : > { %v645_v42 = vpop.f32.mrf.mxu0 }
 0x180   : > { %681 = vst [vmem:[#allocation8 + $0x38] sm:$0xff] %v642_v41  ;;  %v2645_v43 = vadd.f32 %v645_v42, %v536_v32 }
 0x181   : > { %v647_v44 = vpop.f32.mrf.mxu0 }
 0x182   : > { %v648_v45 = vadd.f32 %v647_v44, %v540_v33 }
 0x183   : > { %v651_v46 = vpop.f32.mrf.mxu0 }
 0x184   : > { %682 = vst [vmem:[#allocation8 + $0x10] sm:$0xff] %v648_v45  ;;  %v2647_v47 = vadd.f32 %v651_v46, %v536_v32 }
 0x185   : > { %v653_v48 = vpop.f32.mrf.mxu0 }
 0x186   : > { %v654_v49 = vadd.f32 %v653_v48, %v540_v33 }
 0x187   : > { %v657_v50 = vpop.f32.mrf.mxu0 }
 0x188   : > { %683 = vst [vmem:[#allocation8] sm:$0xff] %v654_v49  ;;  %v2649_v51 = vadd.f32 %v657_v50, %v536_v32 }
 0x189   : > { %v659_v52 = vpop.f32.mrf.mxu0 }
 0x18a   : > { %v660_v53 = vadd.f32 %v659_v52, %v540_v33 }
 0x18b   : > { %v663_v54 = vpop.f32.mrf.mxu0 }
 0x18c   : > { %684 = vst [vmem:[#allocation8 + $0x8] sm:$0xff] %v660_v53  ;;  %v2651_v55 = vadd.f32 %v663_v54, %v536_v32 }
 0x18d   : > { %v665_v56 = vpop.f32.mrf.mxu0 }
 0x18e   : > { %v666_v57 = vadd.f32 %v665_v56, %v540_v33 }
 0x18f   : > { %v669_v58 = vpop.f32.mrf.mxu0 }
 0x190   : > { %685 = vst [vmem:[#allocation8 + $0x18] sm:$0xff] %v666_v57  ;;  %v2653_v59 = vadd.f32 %v669_v58, %v536_v32 }
 0x191   : > { %v671_v60 = vpop.f32.mrf.mxu0 }
 0x192   : > { %v672_v61 = vadd.f32 %v671_v60, %v540_v33 }
 0x193   : > { %v675_v62 = vpop.f32.mrf.mxu0 }
 0x194   : > { %686 = vst [vmem:[#allocation8 + $0x30] sm:$0xff] %v672_v61  ;;  %v2655_v63 = vadd.f32 %v675_v62, %v536_v32  ;;  %691 = sbr.rel (%p1961_p7) target bundleno = 419 (0x1a3), region = 68 }
 0x195   : > { %v677_v3 = vpop.f32.mrf.mxu0 }
 0x196   : > { %v678_v4 = vadd.f32 %v677_v3, %v540_v33 }
 0x198   : > { %687 = vst [vmem:[#allocation8 + $0x20] sm:$0xff] %v678_v4 }
 0x199   : > { %v2379_v5 = vmov 0.0  }
 0x19a   : > { %692 = vst [vmem:[#allocation2 + $0x30] sm:$0xff] %v2379_v5  ;;  %693 = vst [vmem:[#allocation2] sm:$0xff] %v2379_v5 }
 0x19b   : > { %694 = vst [vmem:[#allocation2 + $0x58] sm:$0xff] %v2379_v5  ;;  %695 = vst [vmem:[#allocation2 + $0x18] sm:$0xff] %v2379_v5 }
 0x19c   : > { %696 = vst [vmem:[#allocation2 + $0x50] sm:$0xff] %v2379_v5  ;;  %697 = vst [vmem:[#allocation2 + $0x68] sm:$0xff] %v2379_v5 }
 0x19d   : > { %698 = vst [vmem:[#allocation2 + $0x8] sm:$0xff] %v2379_v5  ;;  %699 = vst [vmem:[#allocation2 + $0x48] sm:$0xff] %v2379_v5 }
 0x19e   : > { %700 = vst [vmem:[#allocation2 + $0x40] sm:$0xff] %v2379_v5  ;;  %701 = vst [vmem:[#allocation2 + $0x20] sm:$0xff] %v2379_v5 }
 0x19f   : > { %702 = vst [vmem:[#allocation2 + $0x10] sm:$0xff] %v2379_v5  ;;  %703 = vst [vmem:[#allocation2 + $0x38] sm:$0xff] %v2379_v5 }
 0x1a0   : > { %704 = vst [vmem:[#allocation2 + $0x60] sm:$0xff] %v2379_v5  ;;  %705 = vst [vmem:[#allocation2 + $0x70] sm:$0xff] %v2379_v5 }
 0x1a1   : > { %706 = vst [vmem:[#allocation2 + $0x78] sm:$0xff] %v2379_v5  ;;  %707 = vst [vmem:[#allocation2 + $0x28] sm:$0xff] %v2379_v5 }
 0x1a2   : > { %708 = vst [vmem:[#allocation3 + $0x28] sm:$0xff] %v2379_v5  ;;  %709 = vst [vmem:[#allocation3 + $0x8] sm:$0xff] %v2379_v5 }
 0x1a3 PF: > { %v902_v7 = vld [vmem:[%s3299_s6 + $0xf8] sm:$0xff]  ;;  %v901_v10 = vld [vmem:[%s3299_s6 + $0xf0] sm:$0xff]  ;;  %v900_v11 = vld [vmem:[%s3299_s6 + $0xe8] sm:$0xff]  ;;  %967 = vmatprep.mubr.f32.mxu1 %v2378_v36  ;;  %s2982_s25 = smov 0  }
 0x1a4   : > { %903 = vmatprep.subr.mxu1 %v902_v7  ;;  %v899_v12 = vld [vmem:[%s3299_s6 + $0xe0] sm:$0xff]  ;;  %v898_v13 = vld [vmem:[%s3299_s6 + $0xd8] sm:$0xff]  ;;  %v897_v14 = vld [vmem:[%s3299_s6 + $0xd0] sm:$0xff] }
 0x1a5   : > { %904 = vmatpush1.msra.mxu1 %v901_v10  ;;  %v896_v15 = vld [vmem:[%s3299_s6 + $0xc8] sm:$0xff]  ;;  %v895_v18 = vld [vmem:[%s3299_s6 + $0xc0] sm:$0xff]  ;;  %v894_v0 = vld [vmem:[%s3299_s6 + $0xb8] sm:$0xff] }
 0x1a6   : > { %905 = vmatprep.subr.mxu1 %v900_v11  ;;  %v893_v19 = vld [vmem:[%s3299_s6 + $0xb0] sm:$0xff]  ;;  %v892_v20 = vld [vmem:[%s3299_s6 + $0xa8] sm:$0xff]  ;;  %v891_v21 = vld [vmem:[%s3299_s6 + $0xa0] sm:$0xff] }
 0x1a7   : > { %906 = vmatpush1.msra.mxu1 %v899_v12  ;;  %v890_v1 = vld [vmem:[%s3299_s6 + $0x98] sm:$0xff]  ;;  %v889_v22 = vld [vmem:[%s3299_s6 + $0x90] sm:$0xff]  ;;  %v2704_v2 = vld [vmem:[%s3297_s4] ss:$0 sm:$0xff] }
 0x1a8   : > { %907 = vmatprep.subr.mxu1 %v898_v13  ;;  %v2709_v6 = vld [vmem:[%s3297_s4 + $0x1] ss:$0 sm:$0xff]  ;;  %v733_v25 = vmul.f32 %v2704_v2, %v2641_v34  ;;  %v734_v26 = vmul.f32 %v2704_v2, %v2643_v39  ;;  %v735_v8 = vmul.f32 %v2704_v2, %v2645_v43  ;;  %v736_v27 = vmul.f32 %v2704_v2, %v2647_v47  ;;  %v888_v9 = vld [vmem:[%s3299_s6 + $0x88] sm:$0xff]  ;;  %v2727_v16 = vld [vmem:[%s3297_s4 + $0x2] ss:$0 sm:$0xff] }
 0x1a9   : > { %908 = vmatpush1.msra.mxu1 %v897_v14  ;;  %v719_v23 = vld [vmem:[#allocation3 + $0x28] sm:$0xff]  ;;  %v754_v31 = vmul.f32 %v2709_v6, %v2641_v34  ;;  %v887_v32 = vld [vmem:[%s3299_s6 + $0x80] sm:$0xff]  ;;  %v782_v33 = vmul.f32 %v2727_v16, %v2641_v34  ;;  %v783_v17 = vmul.f32 %v2727_v16, %v2643_v39  ;;  %v755_v35 = vmul.f32 %v2709_v6, %v2643_v39  ;;  %v886_v38 = vld [vmem:[%s3299_s6 + $0x78] sm:$0xff] }
 0x1aa   : > { %909 = vmatprep.subr.mxu1 %v896_v15  ;;  %v720_v24 = vld [vmem:[#allocation3 + $0x8] sm:$0xff]  ;;  %v731_v28 = vmul.f32 %v2704_v2, %v719_v23  ;;  %813 = vst [vmem:[#allocation3 + $0x28] sm:$0xff] %v2653_v59  ;;  %v784_v37 = vmul.f32 %v2727_v16, %v2645_v43  ;;  %v756_v42 = vmul.f32 %v2709_v6, %v2645_v43  ;;  %v885_v39 = vld [vmem:[%s3299_s6 + $0x70] sm:$0xff]  ;;  %v2758_v44 = vld [vmem:[%s3298_s5] ss:$0 sm:$0xff] }
 0x1ab   : > { %910 = vmatpush1.msra.mxu1 %v895_v18  ;;  %v753_v29 = vmul.f32 %v2709_v6, %v720_v24  ;;  %v732_v30 = vmul.f32 %v2704_v2, %v720_v24  ;;  %814 = vst [vmem:[#allocation3 + $0x8] sm:$0xff] %v2655_v63  ;;  %v785_v34 = vmul.f32 %v2727_v16, %v2647_v47  ;;  %v884_v49 = vld [vmem:[%s3299_s6 + $0x68] sm:$0xff]  ;;  %v882_v61 = vld [vmem:[%s3299_s6 + $0x58] sm:$0xff]  ;;  %v879_v18 = vld [vmem:[%s3299_s6 + $0x40] sm:$0xff] }
 0x1ac   : > { %911 = vmatprep.subr.mxu1 %v894_v0  ;;  %v763_v45 = vadd.f32 %v755_v35, %v733_v25  ;;  %v757_v46 = vmul.f32 %v2709_v6, %v2647_v47  ;;  %v786_v43 = vmul.f32 %v2727_v16, %v2649_v51  ;;  %v758_v48 = vmul.f32 %v2709_v6, %v2649_v51  ;;  %v883_v47 = vld [vmem:[%s3299_s6 + $0x60] sm:$0xff]  ;;  %v880_v11 = vld [vmem:[%s3299_s6 + $0x48] sm:$0xff]  ;;  %v877_v25 = vld [vmem:[%s3299_s6 + $0x30] sm:$0xff] }
 0x1ad   : > { %912 = vmatpush1.msra.mxu1 %v893_v19  ;;  %v761_v40 = vadd.f32 %v753_v29, %v731_v28  ;;  %v762_v41 = vadd.f32 %v754_v31, %v732_v30  ;;  %v764_v53 = vadd.f32 %v756_v42, %v734_v26  ;;  %v787_v54 = vmul.f32 %v2727_v16, %v2651_v55  ;;  %v873_v28 = vld [vmem:[%s3299_s6 + $0x10] sm:$0xff]  ;;  %v871_v29 = vld [vmem:[%s3299_s6] sm:$0xff] }
 0x1ae   : > { %913 = vmatprep.subr.mxu1 %v892_v20  ;;  %v792_v56 = vadd.f32 %v784_v37, %v763_v45  ;;  %v765_v57 = vadd.f32 %v757_v46, %v735_v8  ;;  %v766_v58 = vadd.f32 %v758_v48, %v736_v27  ;;  %v737_v60 = vmul.f32 %v2704_v2, %v2649_v51  ;;  %v881_v51 = vld [vmem:[%s3299_s6 + $0x50] sm:$0xff] }
 0x1af   : > { %914 = vmatpush1.msra.mxu1 %v891_v21  ;;  %v790_v50 = vadd.f32 %v782_v33, %v761_v40  ;;  %v791_v52 = vadd.f32 %v783_v17, %v762_v41  ;;  %v793_v4 = vadd.f32 %v785_v34, %v764_v53  ;;  %v759_v5 = vmul.f32 %v2709_v6, %v2651_v55 }
 0x1b0   : > { %915 = vmatprep.subr.mxu1 %v890_v1  ;;  %v2791_v7 = vadd.f32 %v2758_v44, %v792_v56  ;;  %v794_v10 = vadd.f32 %v786_v43, %v765_v57  ;;  %v795_v15 = vadd.f32 %v787_v54, %v766_v58  ;;  %v788_v20 = vmul.f32 %v2727_v16, %v2653_v59  ;;  %v878_v1 = vld [vmem:[%s3299_s6 + $0x38] sm:$0xff] }
 0x1b1   : > { %916 = vmatpush1.msra.mxu1 %v889_v22  ;;  %v2780_v62 = vadd.f32 %v2758_v44, %v790_v50  ;;  %v2783_v3 = vadd.f32 %v2758_v44, %v791_v52  ;;  %v2799_v14 = vadd.f32 %v2758_v44, %v793_v4  ;;  %v767_v19 = vadd.f32 %v759_v5, %v737_v60 }
 0x1b2   : > { %917 = vmatprep.subr.mxu1 %v888_v9  ;;  %v1968_v0 = vmul.f32 -1.442695, %v2791_v7  ;;  %v738_v21 = vmul.f32 %v2704_v2, %v2651_v55  ;;  %v2814_v23 = vadd.f32 %v2758_v44, %v794_v10  ;;  %v760_v24 = vmul.f32 %v2709_v6, %v2653_v59  ;;  %v876_v55 = vld [vmem:[%s3299_s6 + $0x28] sm:$0xff]  ;;  %v875_v2 = vld [vmem:[%s3299_s6 + $0x20] sm:$0xff]  ;;  %v874_v6 = vld [vmem:[%s3299_s6 + $0x18] sm:$0xff] }
 0x1b3   : > { %918 = vmatpush1.msra.mxu1 %v887_v32  ;;  %v1966_v12 = vmul.f32 -1.442695, %v2780_v62  ;;  %v1967_v13 = vmul.f32 -1.442695, %v2783_v3  ;;  %v1969_v22 = vmul.f32 -1.442695, %v2799_v14  ;;  %v796_v26 = vadd.f32 %v788_v20, %v767_v19 }
 0x1b4   : > { %919 = vmatprep.subr.mxu1 %v886_v38  ;;  %v768_v8 = vadd.f32 %v760_v24, %v738_v21  ;;  %v789_v59 = vmul.f32 %v2727_v16, %v2655_v63  ;;  %v1970_v27 = vmul.f32 -1.442695, %v2814_v23  ;;  %v2834_v9 = vadd.f32 %v2758_v44, %v795_v15  ;;  %v872_v63 = vld [vmem:[%s3299_s6 + $0x8] sm:$0xff] }
 0x1b5   : > { %920 = vmatpush1.msra.mxu1 %v885_v39  ;;  %2169 = vpow2.f32 %v1966_v12  ;;  %v811_v16 = vadd.f32 %v2758_v44, %v796_v26  ;;  %v1974_v12 = vld [vmem:[%s3300_s7] ss:$0 sm:$0xff] }
 0x1b6   : > { %921 = vmatprep.subr.mxu1 %v884_v49  ;;  %2171 = vpow2.f32 %v1967_v13  ;;  %v797_v30 = vadd.f32 %v789_v59, %v768_v8  ;;  %v1971_v31 = vmul.f32 -1.442695, %v2834_v9 }
 0x1b7   : > { %922 = vmatpush1.msra.mxu1 %v883_v47  ;;  %2173 = vpow2.f32 %v1968_v0  ;;  %v1972_v32 = vmul.f32 -1.442695, %v811_v16 }
 0x1b8   : > { %923 = vmatprep.subr.mxu1 %v882_v61  ;;  %2175 = vpow2.f32 %v1969_v22  ;;  %v812_v33 = vadd.f32 %v2758_v44, %v797_v30 }
 0x1b9   : > { %924 = vmatpush1.msra.mxu1 %v881_v51  ;;  %2177 = vpow2.f32 %v1970_v27 }
 0x1ba   : > { %925 = vmatprep.subr.mxu1 %v880_v11  ;;  %2179 = vpow2.f32 %v1971_v31  ;;  %v1973_v41 = vmul.f32 -1.442695, %v812_v33 }
 0x1bb   : > { %926 = vmatpush1.msra.mxu1 %v879_v18  ;;  %2181 = vpow2.f32 %v1972_v32 }
 0x1bc   : > { %927 = vmatprep.subr.mxu1 %v878_v1 }
 0x1bd   : > { %928 = vmatpush1.msra.mxu1 %v877_v25 }
 0x1be   : > { %929 = vmatprep.subr.mxu1 %v876_v55 }
 0x1bf   : > { %930 = vmatpush1.msra.mxu1 %v875_v2 }
 0x1c0   : > { %931 = vmatprep.subr.mxu1 %v874_v6 }
 0x1c1   : > { %932 = vmatpush1.msra.mxu1 %v873_v28 }
 0x1c2   : > { %933 = vmatprep.subr.mxu1 %v872_v63  ;;  %v2170_v17 = vpop.eup %2169 }
 0x1c3   : > { %934 = vmatpush1.msra.mxu1 %v871_v29  ;;  %v2172_v35 = vpop.eup %2171  ;;  %v839_v37 = vadd.f32 1.0, %v2170_v17 }
 0x1c4   : > { %v2174_v38 = vpop.eup %2173  ;;  %v840_v40 = vadd.f32 1.0, %v2172_v35 }
 0x1c5   : > { %2183 = vrcp.f32 %v839_v37  ;;  %v841_v42 = vadd.f32 1.0, %v2174_v38  ;;  %v2176_v34 = vpop.eup %2175 }
 0x1c6   : > { %2185 = vrcp.f32 %v840_v40  ;;  %v842_v39 = vadd.f32 1.0, %v2176_v34  ;;  %v2178_v45 = vpop.eup %2177 }
 0x1c7   : > { %2187 = vpow2.f32 %v1973_v41  ;;  %v843_v46 = vadd.f32 1.0, %v2178_v45  ;;  %v2180_v43 = vpop.eup %2179 }
 0x1c8   : > { %2189 = vrcp.f32 %v841_v42  ;;  %v2182_v44 = vpop.eup %2181  ;;  %v844_v48 = vadd.f32 1.0, %v2180_v43 }
 0x1c9   : > { %2191 = vrcp.f32 %v842_v39  ;;  %v845_v47 = vadd.f32 1.0, %v2182_v44 }
 0x1ca   : > { %2193 = vrcp.f32 %v843_v46 }
 0x1cb   : > { %2195 = vrcp.f32 %v844_v48 }
 0x1cc   : > { %2197 = vrcp.f32 %v845_v47 }
 0x1d2   : > { %v2184_v49 = vpop.eup %2183 }
 0x1d3   : > { %v2186_v50 = vpop.eup %2185  ;;  %v2849_v52 = vmul.f32 %v2184_v49, %v2780_v62 }
 0x1d4   : > { %v2188_v53 = vpop.eup %2187  ;;  %v2853_v54 = vmul.f32 %v2186_v50, %v2783_v3 }
 0x1d5   : > { %968 = vmatmul.mubr.f32.vlgmr.msra.gmra.mxu1 %v2849_v52  ;;  %v2190_v56 = vpop.eup %2189  ;;  %v846_v58 = vadd.f32 1.0, %v2188_v53 }
 0x1d6   : > { %973 = vmatprep.mubr.f32.mxu1 %v2378_v36  ;;  %v2858_v57 = vmul.f32 %v2190_v56, %v2791_v7  ;;  %v2192_v60 = vpop.eup %2191 }
 0x1d7   : > { %v2863_v61 = vmul.f32 %v2192_v60, %v2799_v14  ;;  %2199 = vrcp.f32 %v846_v58  ;;  %v2194_v62 = vpop.eup %2193 }
 0x1d8   : > { %v2868_v3 = vmul.f32 %v2194_v62, %v2814_v23  ;;  %v2196_v4 = vpop.eup %2195 }
 0x1d9   : > { %974 = vmatmul.mubr.f32.gmra.mxu1 %v2853_v54  ;;  %v2873_v5 = vmul.f32 %v2196_v4, %v2834_v9  ;;  %v2198_v51 = vpop.eup %2197 }
 0x1da   : > { %979 = vmatprep.mubr.f32.mxu1 %v2378_v36  ;;  %v2877_v7 = vmul.f32 %v2198_v51, %v811_v16 }
 0x1dd   : > { %980 = vmatmul.mubr.f32.gmra.mxu1 %v2858_v57 }
 0x1de   : > { %985 = vmatprep.mubr.f32.mxu1 %v2378_v36 }
 0x1e1   : > { %986 = vmatmul.mubr.f32.gmra.mxu1 %v2863_v61 }
 0x1e2   : > { %991 = vmatprep.mubr.f32.mxu1 %v2378_v36 }
 0x1e4   : > { %v2200_v10 = vpop.eup %2199 }
 0x1e5   : > { %992 = vmatmul.mubr.f32.gmra.mxu1 %v2868_v3  ;;  %v2881_v11 = vmul.f32 %v2200_v10, %v812_v33 }
 0x1e6   : > { %997 = vmatprep.mubr.f32.mxu1 %v2378_v36 }
 0x1e9   : > { %998 = vmatmul.mubr.f32.gmra.mxu1 %v2873_v5 }
 0x1ea   : > { %1003 = vmatprep.mubr.f32.mxu1 %v2378_v36 }
 0x1ed   : > { %1004 = vmatmul.mubr.f32.gmra.mxu1 %v2877_v7 }
 0x1ee   : > { %1009 = vmatprep.mubr.f32.mxu1 %v2378_v36 }
 0x1f1   : > { %1010 = vmatmul.mubr.f32.gmra.mxu1 %v2881_v11 }
 0x295   : > { %v969_v13 = vpop.f32.mrf.mxu1 }
 0x296   : > { %v2888_v14 = vadd.f32 %v1974_v12, %v969_v13 }
 0x297   : > { %v971_v15 = vpop.f32.mrf.mxu1 }
 0x298   : > { %v1055_v18 = vand.u32 2147483647, %v2888_v14  ;;  %1199 = vst [vmem:[#allocation6] sm:$0xff] %v971_v15  ;;  %vm1039_vm2 = vcmp.ne.f32.partialorder %v2888_v14, %v2888_v14 }
 0x299   : > { %v975_v0 = vpop.f32.mrf.mxu1 }
 0x29a   : > { %v1063_v19 = vsub.f32 0.0, %v1055_v18  ;;  %v2891_v20 = vadd.f32 %v1974_v12, %v975_v0 }
 0x29b   : > { %v977_v21 = vpop.f32.mrf.mxu1 }
 0x29c   : > { %v1071_v1 = vmul.f32 1.442695, %v1063_v19  ;;  %v1056_v36 = vand.u32 2147483647, %v2891_v20  ;;  %1200 = vst [vmem:[#allocation6 + $0x8] sm:$0xff] %v977_v21  ;;  %vm1040_vm4 = vcmp.ne.f32.partialorder %v2891_v20, %v2891_v20 }
 0x29d   : > { %v981_v22 = vpop.f32.mrf.mxu1 }
 0x29e   : > { %2201 = vpow2.f32 %v1071_v1  ;;  %v1064_v23 = vsub.f32 0.0, %v1056_v36  ;;  %v2894_v24 = vadd.f32 %v1974_v12, %v981_v22 }
 0x29f   : > { %v983_v25 = vpop.f32.mrf.mxu1 }
 0x2a0   : > { %v1073_v55 = vmul.f32 1.442695, %v1064_v23  ;;  %v1057_v2 = vand.u32 2147483647, %v2894_v24  ;;  %1201 = vst [vmem:[#allocation6 + $0x10] sm:$0xff] %v983_v25  ;;  %v1031_v25 = vmax.f32 %v2888_v14, 0.0  ;;  %vm1041_vm6 = vcmp.ne.f32.partialorder %v2894_v24, %v2894_v24 }
 0x2a1   : > { %v987_v26 = vpop.f32.mrf.mxu1 }
 0x2a2   : > { %2203 = vpow2.f32 %v1073_v55  ;;  %v1065_v8 = vsub.f32 0.0, %v1057_v2  ;;  %v2897_v59 = vadd.f32 %v1974_v12, %v987_v26 }
 0x2a3   : > { %v989_v6 = vpop.f32.mrf.mxu1 }
 0x2a4   : > { %v1075_v27 = vmul.f32 1.442695, %v1065_v8  ;;  %v1058_v9 = vand.u32 2147483647, %v2897_v59  ;;  %1202 = vst [vmem:[#allocation6 + $0x18] sm:$0xff] %v989_v6  ;;  %vm1042_vm8 = vcmp.ne.f32.partialorder %v2897_v59, %v2897_v59 }
 0x2a5   : > { %v993_v28 = vpop.f32.mrf.mxu1 }
 0x2a6   : > { %2205 = vpow2.f32 %v1075_v27  ;;  %v1066_v63 = vsub.f32 0.0, %v1058_v9  ;;  %v2900_v29 = vadd.f32 %v1974_v12, %v993_v28  ;;  %v1032_v27 = vmax.f32 %v2891_v20, 0.0 }
 0x2a7   : > { %v995_v16 = vpop.f32.mrf.mxu1 }
 0x2a8   : > { %v1077_v30 = vmul.f32 1.442695, %v1066_v63  ;;  %v1059_v31 = vand.u32 2147483647, %v2900_v29  ;;  %1203 = vst [vmem:[#allocation6 + $0x20] sm:$0xff] %v995_v16  ;;  %vm1043_vm10 = vcmp.ne.f32.partialorder %v2900_v29, %v2900_v29 }
 0x2a9   : > { %v999_v32 = vpop.f32.mrf.mxu1 }
 0x2aa   : > { %2207 = vpow2.f32 %v1077_v30  ;;  %v1067_v33 = vsub.f32 0.0, %v1059_v31  ;;  %v2903_v17 = vadd.f32 %v1974_v12, %v999_v32 }
 0x2ab   : > { %v2202_v35 = vpop.eup %2201  ;;  %v1001_v37 = vpop.f32.mrf.mxu1 }
 0x2ac   : > { %v1087_v38 = vadd.f32 1.0, %v2202_v35  ;;  %v1079_v40 = vmul.f32 1.442695, %v1067_v33  ;;  %1204 = vst [vmem:[#allocation6 + $0x28] sm:$0xff] %v1001_v37  ;;  %v1060_v41 = vand.u32 2147483647, %v2903_v17  ;;  %vm1044_vm12 = vcmp.ne.f32.partialorder %v2903_v17, %v2903_v17 }
 0x2ad   : > { %v1005_v42 = vpop.f32.mrf.mxu1  ;;  %v1090_v58 = vmul.f32 -0.5, %v2202_v35  ;;  %v1093_v18 = vand.u32 2147483647, %v2202_v35 }
 0x2ae   : > { %2209 = vlog2.f32 %v1087_v38  ;;  %v2906_v34 = vadd.f32 %v1974_v12, %v1005_v42  ;;  %v1068_v45 = vsub.f32 0.0, %v1060_v41  ;;  %v1033_v41 = vmax.f32 %v2894_v24, 0.0 }
 0x2af   : > { %v2204_v39 = vpop.eup %2203  ;;  %2211 = vpow2.f32 %v1079_v40  ;;  %v1007_v46 = vpop.f32.mrf.mxu1  ;;  %v1091_v13 = vadd.f32 1.0, %v1090_v58  ;;  %vm1094_vm1 = vcmp.lt.f32.partialorder %v1093_v18, 0.0004427343 }
 0x2b0   : > { %v1096_v43 = vadd.f32 1.0, %v2204_v39  ;;  %1205 = vst [vmem:[#allocation6 + $0x30] sm:$0xff] %v1007_v46  ;;  %v1081_v44 = vmul.f32 1.442695, %v1068_v45  ;;  %v1061_v48 = vand.u32 2147483647, %v2906_v34  ;;  %vm1045_vm14 = vcmp.ne.f32.partialorder %v2906_v34, %v2906_v34 }
 0x2b1   : > { %v1011_v49 = vpop.f32.mrf.mxu1  ;;  %v1099_v15 = vmul.f32 -0.5, %v2204_v39  ;;  %v1092_v36 = vmul.f32 %v2202_v35, %v1091_v13  ;;  %v1102_v55 = vand.u32 2147483647, %v2204_v39 }
 0x2b2   : > { %2213 = vlog2.f32 %v1096_v43  ;;  %v2909_v50 = vadd.f32 %v1974_v12, %v1011_v49  ;;  %v1069_v47 = vsub.f32 0.0, %v1061_v48 }
 0x2b3   : > { %v2206_v53 = vpop.eup %2205  ;;  %2215 = vpow2.f32 %v1081_v44  ;;  %v1013_v56 = vpop.f32.mrf.mxu1  ;;  %v1100_v22 = vadd.f32 1.0, %v1099_v15  ;;  %vm1103_vm3 = vcmp.lt.f32.partialorder %v1102_v55, 0.0004427343 }
 0x2b4   : > { %v1105_v60 = vadd.f32 1.0, %v2206_v53  ;;  %1206 = vst [vmem:[#allocation6 + $0x38] sm:$0xff] %v1013_v56  ;;  %v1083_v62 = vmul.f32 1.442695, %v1069_v47  ;;  %v1062_v4 = vand.u32 2147483647, %v2909_v50 }
 0x2b5   : > { %v1108_v23 = vmul.f32 -0.5, %v2206_v53  ;;  %v1101_v63 = vmul.f32 %v2204_v39, %v1100_v22  ;;  %v1111_v32 = vand.u32 2147483647, %v2206_v53  ;;  %v1035_v22 = vmax.f32 %v2900_v29, 0.0 }
 0x2b6   : > { %2217 = vlog2.f32 %v1105_v60  ;;  %v1070_v10 = vsub.f32 0.0, %v1062_v4 }
 0x2b7   : > { %v2912_v51 = vpop.eup %2207  ;;  %2219 = vpow2.f32 %v1083_v62  ;;  %v1109_v16 = vadd.f32 1.0, %v1108_v23  ;;  %vm1112_vm5 = vcmp.lt.f32.partialorder %v1111_v32, 0.0004427343 }
 0x2b8   : > { %v1114_v12 = vadd.f32 1.0, %v2912_v51  ;;  %v1085_v0 = vmul.f32 1.442695, %v1070_v10  ;;  %v1117_v30 = vmul.f32 -0.5, %v2912_v51 }
 0x2b9   : > { %v1110_v39 = vmul.f32 %v2206_v53, %v1109_v16 }
 0x2ba   : > { %2221 = vlog2.f32 %v1114_v12  ;;  %v1118_v45 = vadd.f32 1.0, %v1117_v30 }
 0x2bb   : > { %v2210_v19 = vpop.eup %2209  ;;  %2223 = vpow2.f32 %v1085_v0 }
 0x2bc   : > { %v2915_v21 = vpop.eup %2211  ;;  %v1089_v1 = vmul.f32 0.6931472, %v2210_v19  ;;  %v1119_v60 = vmul.f32 %v2912_v51, %v1118_v45 }
 0x2bd   : > { %v1123_v2 = vadd.f32 1.0, %v2915_v21  ;;  %v1126_v46 = vmul.f32 -0.5, %v2915_v21  ;;  %v1129_v12 = vand.u32 2147483647, %v2915_v21 }
 0x2be   : > { %v1095_v26 = vsel %vm1094_vm1, %v1092_v36, %v1089_v1  ;;  %vm1046_vm1 = vcmp.ne.f32.partialorder %v2909_v50, %v2909_v50 }
 0x2bf   : > { %v2214_v8 = vpop.eup %2213  ;;  %v1159_v6 = vadd.f32 %v1095_v26, %v1031_v25  ;;  %2225 = vlog2.f32 %v1123_v2  ;;  %v1127_v62 = vadd.f32 1.0, %v1126_v46  ;;  %vm1130_vm9 = vcmp.lt.f32.partialorder %v1129_v12, 0.0004427343 }
 0x2c0   : > { %v2922_v9 = vpop.eup %2215  ;;  %v1098_v28 = vmul.f32 0.6931472, %v2214_v8 }
 0x2c1   : > { %v1167_v31 = vsel %vm1039_vm2, %v2888_v14, %v1159_v6  ;;  %v1132_v33 = vadd.f32 1.0, %v2922_v9  ;;  %v1138_v23 = vand.u32 2147483647, %v2922_v9  ;;  %v1036_v6 = vmax.f32 %v2903_v17, 0.0 }
 0x2c2   : > { %1175 = vst [vmem:[#allocation4] sm:$0xff] %v1167_v31  ;;  %v1183_v35 = vmul.f32 %v1167_v31, %v2849_v52  ;;  %v1104_v37 = vsel %vm1103_vm3, %v1101_v63, %v1098_v28  ;;  %v1120_v52 = vand.u32 2147483647, %v2912_v51 }
 0x2c3   : > { %v2218_v38 = vpop.eup %2217  ;;  %v1160_v40 = vadd.f32 %v1104_v37, %v1032_v27  ;;  %2227 = vlog2.f32 %v1132_v33  ;;  %vm1139_vm11 = vcmp.lt.f32.partialorder %v1138_v23, 0.0004427343  ;;  %v1037_v33 = vmax.f32 %v2906_v34, 0.0 }
 0x2c4   : > { %v2931_v42 = vpop.eup %2219  ;;  %1191 = vst [vmem:[#allocation5] sm:$0xff] %v1183_v35  ;;  %v1107_v14 = vmul.f32 0.6931472, %v2218_v38  ;;  %vm1121_vm7 = vcmp.lt.f32.partialorder %v1120_v52, 0.0004427343 }
 0x2c5   : > { %v1168_v43 = vsel %vm1040_vm4, %v2891_v20, %v1160_v40  ;;  %v1141_v44 = vadd.f32 1.0, %v2931_v42  ;;  %v1034_v20 = vmax.f32 %v2897_v59, 0.0  ;;  %v1144_v36 = vmul.f32 -0.5, %v2931_v42 }
 0x2c6   : > { %1176 = vst [vmem:[#allocation4 + $0x8] sm:$0xff] %v1168_v43  ;;  %v1184_v48 = vmul.f32 %v1168_v43, %v2853_v54  ;;  %v1113_v49 = vsel %vm1112_vm5, %v1110_v39, %v1107_v14  ;;  %v1135_v54 = vmul.f32 -0.5, %v2922_v9  ;;  %v1147_v27 = vand.u32 2147483647, %v2931_v42 }
 0x2c7   : > { %v2222_v47 = vpop.eup %2221  ;;  %v1161_v56 = vadd.f32 %v1113_v49, %v1033_v41  ;;  %2229 = vlog2.f32 %v1141_v44  ;;  %v1145_v26 = vadd.f32 1.0, %v1144_v36  ;;  %v1038_v14 = vmax.f32 %v2909_v50, 0.0 }
 0x2c8   : > { %v2940_v53 = vpop.eup %2223  ;;  %1192 = vst [vmem:[#allocation5 + $0x8] sm:$0xff] %v1184_v48  ;;  %v1116_v58 = vmul.f32 0.6931472, %v2222_v47  ;;  %v1136_v1 = vadd.f32 1.0, %v1135_v54  ;;  %vm1148_vm13 = vcmp.lt.f32.partialorder %v1147_v27, 0.0004427343 }
 0x2c9   : > { %v1169_v4 = vsel %vm1041_vm6, %v2894_v24, %v1161_v56  ;;  %v1150_v10 = vadd.f32 1.0, %v2940_v53  ;;  %v1128_v24 = vmul.f32 %v2915_v21, %v1127_v62  ;;  %v1153_v8 = vmul.f32 -0.5, %v2940_v53 }
 0x2ca   : > { %1177 = vst [vmem:[#allocation4 + $0x10] sm:$0xff] %v1169_v4  ;;  %v1185_v13 = vmul.f32 %v1169_v4, %v2858_v57  ;;  %v1122_v15 = vsel %vm1121_vm7, %v1119_v60, %v1116_v58  ;;  %v1137_v2 = vmul.f32 %v2922_v9, %v1136_v1  ;;  %v1146_v31 = vmul.f32 %v2931_v42, %v1145_v26 }
 0x2cb   : > { %v1162_v18 = vadd.f32 %v1122_v15, %v1034_v20  ;;  %2231 = vlog2.f32 %v1150_v10  ;;  %v1154_v32 = vadd.f32 1.0, %v1153_v8  ;;  %v1156_v35 = vand.u32 2147483647, %v2940_v53 }
 0x2cc   : > { %v2226_v0 = vpop.eup %2225  ;;  %1193 = vst [vmem:[#allocation5 + $0x10] sm:$0xff] %v1185_v13 }
 0x2cd   : > { %v1170_v51 = vsel %vm1042_vm8, %v2897_v59, %v1162_v18  ;;  %v1125_v19 = vmul.f32 0.6931472, %v2226_v0  ;;  %v1155_v42 = vmul.f32 %v2940_v53, %v1154_v32  ;;  %vm1157_vm15 = vcmp.lt.f32.partialorder %v1156_v35, 0.0004427343 }
 0x2ce   : > { %1178 = vst [vmem:[#allocation4 + $0x18] sm:$0xff] %v1170_v51  ;;  %v1186_v57 = vmul.f32 %v1170_v51, %v2863_v61 }
 0x2cf   : > { %v1131_v25 = vsel %vm1130_vm9, %v1128_v24, %v1125_v19 }
 0x2d0   : > { %v2228_v55 = vpop.eup %2227  ;;  %1194 = vst [vmem:[#allocation5 + $0x18] sm:$0xff] %v1186_v57  ;;  %v1163_v21 = vadd.f32 %v1131_v25, %v1035_v22 }
 0x2d1   : > { %v1134_v59 = vmul.f32 0.6931472, %v2228_v55 }
 0x2d2   : > { %v1171_v61 = vsel %vm1043_vm10, %v2900_v29, %v1163_v21 }
 0x2d3   : > { %1179 = vst [vmem:[#allocation4 + $0x20] sm:$0xff] %v1171_v61  ;;  %v1187_v28 = vmul.f32 %v1171_v61, %v2868_v3  ;;  %v1140_v63 = vsel %vm1139_vm11, %v1137_v2, %v1134_v59 }
 0x2d4   : > { %v2230_v16 = vpop.eup %2229  ;;  %v1164_v30 = vadd.f32 %v1140_v63, %v1036_v6 }
 0x2d5   : > { %1195 = vst [vmem:[#allocation5 + $0x20] sm:$0xff] %v1187_v28  ;;  %v1143_v9 = vmul.f32 0.6931472, %v2230_v16 }
 0x2d6   : > { %v1172_v29 = vsel %vm1044_vm12, %v2903_v17, %v1164_v30 }
 0x2d7   : > { %1180 = vst [vmem:[#allocation4 + $0x28] sm:$0xff] %v1172_v29  ;;  %v1188_v3 = vmul.f32 %v1172_v29, %v2873_v5  ;;  %v1149_v37 = vsel %vm1148_vm13, %v1146_v31, %v1143_v9 }
 0x2d8   : > { %v2232_v38 = vpop.eup %2231  ;;  %v1165_v40 = vadd.f32 %v1149_v37, %v1037_v33 }
 0x2d9   : > { %1196 = vst [vmem:[#allocation5 + $0x28] sm:$0xff] %v1188_v3  ;;  %v1152_v41 = vmul.f32 0.6931472, %v2232_v38 }
 0x2da   : > { %v1173_v17 = vsel %vm1045_vm14, %v2906_v34, %v1165_v40 }
 0x2db   : > { %1181 = vst [vmem:[#allocation4 + $0x30] sm:$0xff] %v1173_v17  ;;  %v1189_v39 = vmul.f32 %v1173_v17, %v2877_v7  ;;  %v1158_v45 = vsel %vm1157_vm15, %v1155_v42, %v1152_v41 }
 0x2dc   : > { %v1166_v5 = vadd.f32 %v1158_v45, %v1038_v14 }
 0x2dd   : > { %1197 = vst [vmem:[#allocation5 + $0x30] sm:$0xff] %v1189_v39 }
 0x2de   : > { %v1174_v46 = vsel %vm1046_vm1, %v2909_v50, %v1166_v5 }
 0x2df   : > { %1182 = vst [vmem:[#allocation4 + $0x38] sm:$0xff] %v1174_v46  ;;  %v1190_v43 = vmul.f32 %v1174_v46, %v2881_v11 }
 0x2e1   : > { %1198 = vst [vmem:[#allocation5 + $0x38] sm:$0xff] %v1190_v43 }
 0x2e2 LB: >> { %v2380_v7 = vmov 1   ;;  %v2381_v34 = vmov 0   ;;  %s2988_s26 = sshll.u32 %s2376_s25, 3  ;;  %v2382_v11 = vmov 17   ;;  %v2383_v52 = vmov 16   ;;  %v1253_v38 = vld [vmem:[#allocation2] sm:$0xff]  ;;  %s2376_s25 = sphi %s2982_s25, %s1212_s25  }
 0x2e3   : >> { %2235 = vset.pattern.permute.xlu1 %v2380_v7  ;;  %2233 = vset.pattern.permute.xlu0 %v2381_v34  ;;  %s1214_s27 = scalar_lea.vmem [#allocation6], %s2988_s26  ;;  %v2384_v44 = vmov 2   ;;  %v2385_v48 = vmov 18   ;;  %v2386_v49 = vmov 3   ;;  %v2387_v47 = vmov 4   ;;  %s1216_s28 = scalar_lea.vmem [#allocation4], %s2988_s26 }
 0x2e4   : >> { %v2991_v50 = vld [vmem:[%s1214_s27] sm:$0xff]  ;;  %v2388_v56 = vmov 19   ;;  %v2389_v53 = vmov 6   ;;  %v2390_v20 = vmov 20   ;;  %v2391_v58 = vmov 22   ;;  %v1228_v40 = vld [vmem:[#allocation2 + $0x30] sm:$0xff] }
 0x2e5   : >> { %1256 = vperm.xlu1 %2235, %v2991_v50   ;;  %1232 = vperm.xlu0 %2233, %v2991_v50   ;;  %v2392_v60 = vmov 5   ;;  %v2393_v62 = vmov 9   ;;  %v2394_v4 = vmov 21   ;;  %v2395_v54 = vmov 25   ;;  %v1977_v59 = vld [vmem:[%s3301_s8 + $0x1] ss:$0 sm:$0xff] }
 0x2e6   : >> { %v2396_v10 = vmov 7   ;;  %v2397_v13 = vmov 12   ;;  %v2398_v15 = vmov 8   ;;  %v2399_v12 = vmov 28   ;;  %v3024_v21 = vld [vmem:[%s1216_s28] sm:$0xff]  ;;  %s1218_s13 = scalar_lea.vmem [#allocation5], %s2988_s26 }
 0x2e7   : >> { %v2400_v18 = vmov 23   ;;  %v2401_v0 = vmov 15   ;;  %v2402_v24 = vmov 24   ;;  %v2403_v51 = vmov 31   ;;  %v1976_v2 = vld [vmem:[%s3301_s8] ss:$0 sm:$0xff] }
 0x2e8   : >> { %v2404_v19 = vmov 10   ;;  %v2405_v1 = vmov 11   ;;  %v2406_v36 = vmov 26   ;;  %v2407_v57 = vmov 27   ;;  %v1978_v27 = vld [vmem:[%s3301_s8 + $0x2] ss:$0 sm:$0xff] }
 0x2e9   : >> { %2236 = vset.pattern.permute.xlu1 %v2382_v11  ;;  %2234 = vset.pattern.permute.xlu0 %v2383_v52  ;;  %v2408_v22 = vmov 13   ;;  %v2409_v23 = vmov 14   ;;  %v2410_v25 = vmov 29   ;;  %v2411_v55 = vmov 30   ;;  %v1979_v63 = vld [vmem:[%s3301_s8 + $0x3] ss:$0 sm:$0xff] }
 0x2ea   : >> { %1263 = vperm.xlu1 %2236, %v2991_v50   ;;  %1239 = vperm.xlu0 %2234, %v2991_v50   ;;  %v1249_v26 = vmul.f32 %v1977_v59, %v3024_v21  ;;  %v1225_v8 = vmul.f32 %v1976_v2, %v3024_v21  ;;  %v1273_v28 = vmul.f32 %v1978_v27, %v3024_v21  ;;  %v1980_v16 = vld [vmem:[%s3301_s8 + $0x4] ss:$0 sm:$0xff]  ;;  %v1982_v32 = vld [vmem:[%s3301_s8 + $0x6] ss:$0 sm:$0xff]  ;;  %v1981_v43 = vld [vmem:[%s3301_s8 + $0x5] ss:$0 sm:$0xff] }
 0x2eb   : >> { %v1297_v9 = vmul.f32 %v1979_v63, %v3024_v21  ;;  %v1321_v31 = vmul.f32 %v1980_v16, %v3024_v21  ;;  %v1369_v3 = vmul.f32 %v1982_v32, %v3024_v21  ;;  %v3053_v41 = vld [vmem:[%s1218_s13] sm:$0xff]  ;;  %v1985_v7 = vld [vmem:[%s3301_s8 + $0x9] ss:$0 sm:$0xff]  ;;  %v1345_v11 = vmul.f32 %v1981_v43, %v3024_v21  ;;  %s1604_s15 = scalar_lea.vmem [#allocation7], %s2988_s26  ;;  %s1212_s25 = sadd.s32 1, %s2376_s25  }
 0x2ec   : >> { %v1250_v61 = vmul.f32 1.442695, %v1249_v26  ;;  %v1226_v6 = vmul.f32 1.442695, %v1225_v8  ;;  %v1274_v30 = vmul.f32 1.442695, %v1273_v28 }
 0x2ed   : >> { %v1298_v29 = vmul.f32 1.442695, %v1297_v9  ;;  %v1322_v33 = vmul.f32 1.442695, %v1321_v31  ;;  %v1370_v14 = vmul.f32 1.442695, %v1369_v3 }
 0x2ee   : >> { %2237 = vset.pattern.permute.xlu1 %v2384_v44  ;;  %2238 = vset.pattern.permute.xlu0 %v2385_v48  ;;  %2266 = vpow2.f32 %v1250_v61  ;;  %v1441_v48 = vmul.f32 %v1985_v7, %v3024_v21  ;;  %v1373_v2 = vld [vmem:[#allocation2 + $0x8] sm:$0xff]  ;;  %p1209_p8 = scmp.ge.s32.totalorder %s1212_s25, 8  }
 0x2ef   : >> { %1280 = vperm.xlu1 %2237, %v2991_v50   ;;  %1287 = vperm.xlu0 %2238, %v2991_v50   ;;  %2268 = vpow2.f32 %v1226_v6  ;;  %v1984_v26 = vld [vmem:[%s3301_s8 + $0x8] ss:$0 sm:$0xff]  ;;  %v1991_v31 = vld [vmem:[%s3301_s8 + $0xf] ss:$0 sm:$0xff]  ;;  %v1986_v7 = vld [vmem:[%s3301_s8 + $0xa] ss:$0 sm:$0xff] }
 0x2f0   : >> { %2270 = vpow2.f32 %v1274_v30  ;;  %v1417_v30 = vmul.f32 %v1984_v26, %v3024_v21  ;;  %v1585_v3 = vmul.f32 %v1991_v31, %v3024_v21 }
 0x2f1   : >> { %2272 = vpow2.f32 %v1298_v29 }
 0x2f2   : >> { %2274 = vpow2.f32 %v1322_v33  ;;  %v1418_v29 = vmul.f32 1.442695, %v1417_v30 }
 0x2f3   : >> { %2239 = vset.pattern.permute.xlu1 %v2386_v49  ;;  %2241 = vset.pattern.permute.xlu0 %v2387_v47  ;;  %2276 = vpow2.f32 %v1370_v14 }
 0x2f4   : >> { %1304 = vperm.xlu1 %2239, %v2991_v50   ;;  %1328 = vperm.xlu0 %2241, %v2991_v50  }
 0x2f8   : >> { %2240 = vset.pattern.permute.xlu1 %v2388_v56  ;;  %2244 = vset.pattern.permute.xlu0 %v2389_v53  ;;  %v1277_v53 = vld [vmem:[#allocation2 + $0x58] sm:$0xff] }
 0x2f9   : >> { %1311 = vperm.xlu1 %2240, %v2991_v50   ;;  %1376 = vperm.xlu0 %2244, %v2991_v50  }
 0x2fb   : >> { %v2267_v35 = vpop.eup %2266 }
 0x2fc   : >> { %v2269_v37 = vpop.eup %2268  ;;  %v1254_v42 = vmul.f32 %v2267_v35, %v1253_v38  ;;  %v1349_v38 = vld [vmem:[#allocation2 + $0x68] sm:$0xff] }
 0x2fd   : >> { %2242 = vset.pattern.permute.xlu1 %v2390_v20  ;;  %2247 = vset.pattern.permute.xlu0 %v2391_v58  ;;  %v1229_v17 = vmul.f32 %v2269_v37, %v1228_v40  ;;  %v2271_v49 = vpop.eup %2270  ;;  %v1346_v58 = vmul.f32 1.442695, %v1345_v11 }
 0x2fe   : >> { %1335 = vperm.xlu1 %2242, %v2991_v50   ;;  %1383 = vperm.xlu0 %2247, %v2991_v50  }
 0x2ff   : >> { %2278 = vpow2.f32 %v1346_v58 }
 0x302   : >> { %2243 = vset.pattern.permute.xlu1 %v2392_v60  ;;  %2250 = vset.pattern.permute.xlu0 %v2393_v62  ;;  %v1278_v60 = vmul.f32 %v2271_v49, %v1277_v53  ;;  %v1442_v62 = vmul.f32 1.442695, %v1441_v48  ;;  %v1397_v49 = vld [vmem:[#allocation2 + $0x48] sm:$0xff] }
 0x303   : >> { %1352 = vperm.xlu1 %2243, %v2991_v50   ;;  %1448 = vperm.xlu0 %2250, %v2991_v50   ;;  %v1987_v53 = vld [vmem:[%s3301_s8 + $0xb] ss:$0 sm:$0xff] }
 0x304   : >> { %2280 = vpow2.f32 %v1442_v62 }
 0x307   : >> { %2245 = vset.pattern.permute.xlu1 %v2394_v4  ;;  %2253 = vset.pattern.permute.xlu0 %v2395_v54  ;;  %v2273_v4 = vpop.eup %2272 }
 0x308   : >> { %1359 = vperm.xlu1 %2245, %v2991_v50   ;;  %1455 = vperm.xlu0 %2253, %v2991_v50  }
 0x30c   : >> { %2246 = vset.pattern.permute.xlu1 %v2396_v10  ;;  %2256 = vset.pattern.permute.xlu0 %v2397_v13  ;;  %v2275_v10 = vpop.eup %2274 }
 0x30d   : >> { %1400 = vperm.xlu1 %2246, %v2991_v50   ;;  %1520 = vperm.xlu0 %2256, %v2991_v50  }
 0x311   : >> { %2248 = vset.pattern.permute.xlu1 %v2398_v15  ;;  %2259 = vset.pattern.permute.xlu0 %v2399_v12  ;;  %v1301_v12 = vld [vmem:[#allocation2 + $0x18] sm:$0xff] }
 0x312   : >> { %1424 = vperm.xlu1 %2248, %v2991_v50   ;;  %1527 = vperm.xlu0 %2259, %v2991_v50  }
 0x316   : >> { %2249 = vset.pattern.permute.xlu1 %v2400_v18  ;;  %2262 = vset.pattern.permute.xlu0 %v2401_v0  ;;  %v1325_v18 = vld [vmem:[#allocation2 + $0x50] sm:$0xff]  ;;  %v1983_v0 = vld [vmem:[%s3301_s8 + $0x7] ss:$0 sm:$0xff] }
 0x317   : >> { %1407 = vperm.xlu1 %2249, %v2991_v50   ;;  %1592 = vperm.xlu0 %2262, %v2991_v50  }
 0x31b   : >> { %2251 = vset.pattern.permute.xlu1 %v2402_v24  ;;  %2265 = vset.pattern.permute.xlu0 %v2403_v51  ;;  %v1988_v24 = vld [vmem:[%s3301_s8 + $0xc] ss:$0 sm:$0xff] }
 0x31c   : >> { %1431 = vperm.xlu1 %2251, %v2991_v50  }
 0x320   : >> { %2252 = vset.pattern.permute.xlu1 %v2404_v19  ;;  %v1302_v19 = vmul.f32 %v2273_v4, %v1301_v12 }
 0x321   : >> { %1472 = vperm.xlu1 %2252, %v2991_v50  }
 0x325   : >> { %2254 = vset.pattern.permute.xlu1 %v2405_v1  ;;  %v1326_v1 = vmul.f32 %v2275_v10, %v1325_v18  ;;  %v1489_v10 = vmul.f32 %v1987_v53, %v3024_v21  ;;  %v1421_v18 = vld [vmem:[#allocation2 + $0x40] sm:$0xff] }
 0x326   : >> { %1496 = vperm.xlu1 %2254, %v2991_v50  }
 0x32a   : >> { %2255 = vset.pattern.permute.xlu1 %v2406_v36  ;;  %v1393_v36 = vmul.f32 %v1983_v0, %v3024_v21 }
 0x32b   : >> { %1479 = vperm.xlu1 %2255, %v2991_v50  }
 0x32c   : >> { %v1394_v6 = vmul.f32 1.442695, %v1393_v36  ;;  %v1490_v36 = vmul.f32 1.442695, %v1489_v10 }
 0x32e   : >> { %2282 = vpow2.f32 %v1394_v6 }
 0x32f   : >> { %2257 = vset.pattern.permute.xlu1 %v2407_v57 }
 0x330   : >> { %1503 = vperm.xlu1 %2257, %v2991_v50  }
 0x334   : >> { %2258 = vset.pattern.permute.xlu1 %v2408_v22 }
 0x335   : >> { %1544 = vperm.xlu1 %2258, %v2991_v50  }
 0x339   : >> { %2260 = vset.pattern.permute.xlu1 %v2409_v23  ;;  %v1513_v23 = vmul.f32 %v1988_v24, %v3024_v21 }
 0x33a   : >> { %1568 = vperm.xlu1 %2260, %v2991_v50  }
 0x33b   : >> { %v1514_v28 = vmul.f32 1.442695, %v1513_v23 }
 0x33d   : >> { %2284 = vpow2.f32 %v1514_v28  ;;  %v1989_v28 = vld [vmem:[%s3301_s8 + $0xd] ss:$0 sm:$0xff] }
 0x33e   : >> { %2261 = vset.pattern.permute.xlu1 %v2410_v25  ;;  %v2277_v25 = vpop.eup %2276  ;;  %2286 = vpow2.f32 %v1418_v29  ;;  %v1469_v29 = vld [vmem:[#allocation2 + $0x10] sm:$0xff] }
 0x33f   : >> { %1551 = vperm.xlu1 %2261, %v2991_v50   ;;  %v1374_v27 = vmul.f32 %v2277_v25, %v1373_v2  ;;  %v2279_v33 = vpop.eup %2278 }
 0x340   : >> { %v2281_v37 = vpop.eup %2280 }
 0x341   : >> { %v2283_v11 = vpop.eup %2282 }
 0x342   : >> { %v1398_v58 = vmul.f32 %v2283_v11, %v1397_v49 }
 0x343   : >> { %2263 = vset.pattern.permute.xlu1 %v2411_v55 }
 0x344   : >> { %1575 = vperm.xlu1 %2263, %v2991_v50  }
 0x348   : >> { %2264 = vset.pattern.permute.xlu1 %v2403_v51 }
 0x349   : >> { %1599 = vperm.xlu1 %2264, %v2991_v50  }
 0x34a   : >> { %v2285_v48 = vpop.eup %2284 }
 0x360   : >> { %v1257_v39 = vpop.permute.xlu1 %1256  ;;  %v1233_v45 = vpop.permute.xlu0 %1232 }
 0x361   : >> { %v1259_v5 = vmul.f32 %v1257_v39, %v3053_v41  ;;  %v1235_v46 = vmul.f32 %v1233_v45, %v3053_v41  ;;  %v1586_v39 = vmul.f32 1.442695, %v1585_v3 }
 0x363   : >> { %v1260_v34 = vadd.f32 %v1259_v5, %v1254_v42  ;;  %v1236_v50 = vadd.f32 %v1235_v46, %v1229_v17  ;;  %v1445_v42 = vld [vmem:[#allocation2 + $0x20] sm:$0xff]  ;;  %v1350_v17 = vmul.f32 %v2279_v33, %v1349_v38  ;;  %2288 = vpow2.f32 %v1586_v39  ;;  %v1990_v33 = vld [vmem:[%s3301_s8 + $0xe] ss:$0 sm:$0xff]  ;;  %v1493_v39 = vld [vmem:[#allocation2 + $0x38] sm:$0xff] }
 0x364   : >> { %v1446_v14 = vmul.f32 %v2281_v37, %v1445_v42  ;;  %v1561_v42 = vmul.f32 %v1990_v33, %v3024_v21  ;;  %v1697_v33 = vld [vmem:[%s3302_s9 + $0x58] sm:$0xff] (%p1209_p8) }
 0x365   : >> { %1261 = vst [vmem:[#allocation2] sm:$0xff] %v1260_v34  ;;  %v1264_v52 = vpop.permute.xlu1 %1263  ;;  %1237 = vst [vmem:[#allocation2 + $0x30] sm:$0xff] %v1236_v50  ;;  %v1240_v44 = vpop.permute.xlu0 %1239 }
 0x366   : >> { %v1266_v47 = vmul.f32 %v1264_v52, %v1260_v34  ;;  %v1242_v56 = vmul.f32 %v1240_v44, %v1236_v50  ;;  %v1465_v44 = vmul.f32 %v1986_v7, %v3024_v21 }
 0x368   : >> { %v3065_v20 = vadd.f32 %v1266_v47, %v1242_v56  ;;  %v1517_v56 = vld [vmem:[#allocation2 + $0x60] sm:$0xff] }
 0x369   : >> { %v1518_v62 = vmul.f32 %v2285_v48, %v1517_v56 }
 0x36a   : >> { %v1281_v54 = vpop.permute.xlu1 %1280  ;;  %v3068_v15 = vpop.permute.xlu0 %1287 }
 0x36b   : >> { %v1283_v13 = vmul.f32 %v1281_v54, %v3053_v41 }
 0x36d   : >> { %v3076_v51 = vadd.f32 %v1283_v13, %v1278_v60  ;;  %v1466_v60 = vmul.f32 1.442695, %v1465_v44  ;;  %v2287_v13 = vpop.eup %2286 }
 0x36f   : >> { %1285 = vst [vmem:[#allocation2 + $0x58] sm:$0xff] %v3076_v51  ;;  %v1305_v57 = vpop.permute.xlu1 %1304  ;;  %v1329_v22 = vpop.permute.xlu0 %1328  ;;  %2290 = vpow2.f32 %v1466_v60  ;;  %v1290_v11 = vmul.f32 %v3068_v15, %v3076_v51  ;;  %v1541_v15 = vld [vmem:[#allocation2 + $0x70] sm:$0xff] }
 0x370   : >> { %v1307_v55 = vmul.f32 %v1305_v57, %v3053_v41  ;;  %v1331_v59 = vmul.f32 %v1329_v22, %v3053_v41  ;;  %v2289_v22 = vpop.eup %2288  ;;  %2292 = vpow2.f32 %v1490_v36 }
 0x371   : >> { %v1291_v49 = vadd.f32 %v1290_v11, %v3065_v20  ;;  %v1695_v11 = vld [vmem:[%s3302_s9 + $0x48] sm:$0xff] (%p1209_p8) }
 0x372   : >> { %v3086_v8 = vadd.f32 %v1307_v55, %v1302_v19  ;;  %v3088_v61 = vadd.f32 %v1331_v59, %v1326_v1  ;;  %v1422_v1 = vmul.f32 %v2287_v13, %v1421_v18  ;;  %v1589_v55 = vld [vmem:[#allocation2 + $0x28] sm:$0xff] }
 0x373   : >> { %v1590_v2 = vmul.f32 %v2289_v22, %v1589_v55 }
 0x374   : >> { %1309 = vst [vmem:[#allocation2 + $0x18] sm:$0xff] %v3086_v8  ;;  %v3091_v63 = vpop.permute.xlu1 %1311  ;;  %1333 = vst [vmem:[#allocation2 + $0x50] sm:$0xff] %v3088_v61  ;;  %v1377_v16 = vpop.permute.xlu0 %1376 }
 0x375   : >> { %v1379_v9 = vmul.f32 %v1377_v16, %v3053_v41 }
 0x377   : >> { %v3099_v32 = vadd.f32 %v1379_v9, %v1374_v27  ;;  %v1537_v9 = vmul.f32 %v1989_v28, %v3024_v21  ;;  %v1314_v21 = vmul.f32 %v3091_v63, %v3086_v8 }
 0x379   : >> { %v3101_v35 = vpop.permute.xlu1 %1335  ;;  %1381 = vst [vmem:[#allocation2 + $0x8] sm:$0xff] %v3099_v32  ;;  %v3105_v40 = vpop.permute.xlu0 %1383  ;;  %v1538_v37 = vmul.f32 1.442695, %v1537_v9  ;;  %v1315_v53 = vadd.f32 %v1314_v21, %v1291_v49 }
 0x37a   : >> { %v1338_v56 = vmul.f32 %v3101_v35, %v3088_v61  ;;  %v1565_v35 = vld [vmem:[#allocation2 + $0x78] sm:$0xff] }
 0x37b   : >> { %2294 = vpow2.f32 %v1538_v37  ;;  %v3189_v37 = vld [vmem:[#allocation8 + $0x38] sm:$0xff] (%p1209_p8) }
 0x37c   : >> { %v2291_v31 = vpop.eup %2290  ;;  %v1339_v60 = vadd.f32 %v1338_v56, %v1315_v53  ;;  %v1694_v56 = vld [vmem:[%s3302_s9 + $0x40] sm:$0xff] (%p1209_p8)  ;;  %v1693_v53 = vld [vmem:[%s3302_s9 + $0x38] sm:$0xff] (%p1209_p8) }
 0x37d   : >> { %v1470_v3 = vmul.f32 %v2291_v31, %v1469_v29  ;;  %v1698_v31 = vld [vmem:[%s3302_s9 + $0x60] sm:$0xff] (%p1209_p8)  ;;  %v3183_v29 = vld [vmem:[#allocation8 + $0x28] sm:$0xff] (%p1209_p8) }
 0x37e   : >> { %v1353_v45 = vpop.permute.xlu1 %1352  ;;  %v1449_v5 = vpop.permute.xlu0 %1448 }
 0x37f   : >> { %v1355_v46 = vmul.f32 %v1353_v45, %v3053_v41  ;;  %v1451_v43 = vmul.f32 %v1449_v5, %v3053_v41 }
 0x381   : >> { %v3112_v34 = vadd.f32 %v1355_v46, %v1350_v17  ;;  %v3114_v50 = vadd.f32 %v1451_v43, %v1446_v14  ;;  %v2293_v17 = vpop.eup %2292  ;;  %v1562_v46 = vmul.f32 1.442695, %v1561_v42  ;;  %v1993_v42 = vmul.f32 (%p1209_p8), -1.442695, %v3189_v37 }
 0x382   : >> { %v1494_v5 = vmul.f32 %v2293_v17, %v1493_v39  ;;  %v1696_v39 = vld [vmem:[%s3302_s9 + $0x50] sm:$0xff] (%p1209_p8) }
 0x383   : >> { %1357 = vst [vmem:[#allocation2 + $0x68] sm:$0xff] %v3112_v34  ;;  %v3117_v52 = vpop.permute.xlu1 %1359  ;;  %1453 = vst [vmem:[#allocation2 + $0x20] sm:$0xff] %v3114_v50  ;;  %v3121_v47 = vpop.permute.xlu0 %1455  ;;  %2296 = vpow2.f32 %v1562_v46 }
 0x388   : >> { %v1401_v4 = vpop.permute.xlu1 %1400  ;;  %v1521_v54 = vpop.permute.xlu0 %1520 }
 0x389   : >> { %v1403_v12 = vmul.f32 %v1401_v4, %v3053_v41  ;;  %v1523_v0 = vmul.f32 %v1521_v54, %v3053_v41  ;;  %v2295_v4 = vpop.eup %2294  ;;  %v1386_v54 = vmul.f32 %v3105_v40, %v3099_v32 }
 0x38a   : >> { %v1542_v63 = vmul.f32 %v2295_v4, %v1541_v15 }
 0x38b   : >> { %v1404_v24 = vadd.f32 %v1403_v12, %v1398_v58  ;;  %v3129_v19 = vadd.f32 %v1523_v0, %v1518_v62  ;;  %v1362_v58 = vmul.f32 %v3117_v52, %v3112_v34 }
 0x38d   : >> { %v1425_v57 = vpop.permute.xlu1 %1424  ;;  %1405 = vst [vmem:[#allocation2 + $0x48] sm:$0xff] %v1404_v24  ;;  %1525 = vst [vmem:[#allocation2 + $0x60] sm:$0xff] %v3129_v19  ;;  %v3133_v25 = vpop.permute.xlu0 %1527  ;;  %v1363_v51 = vadd.f32 %v1362_v58, %v1339_v60  ;;  %v1692_v58 = vld [vmem:[%s3302_s9 + $0x30] sm:$0xff] (%p1209_p8)  ;;  %v1691_v60 = vld [vmem:[%s3302_s9 + $0x28] sm:$0xff] (%p1209_p8) }
 0x38e   : >> { %v1427_v23 = vmul.f32 %v1425_v57, %v3053_v41 }
 0x38f   : >> { %v1387_v20 = vadd.f32 %v1386_v54, %v1363_v51  ;;  %v1689_v51 = vld [vmem:[%s3302_s9 + $0x18] sm:$0xff] (%p1209_p8) }
 0x390   : >> { %v1428_v59 = vadd.f32 %v1427_v23, %v1422_v1  ;;  %v2297_v13 = vpop.eup %2296  ;;  %v1458_v1 = vmul.f32 %v3121_v47, %v3114_v50 }
 0x391   : >> { %v1566_v34 = vmul.f32 %v2297_v13, %v1565_v35  ;;  %v1688_v13 = vld [vmem:[%s3302_s9 + $0x10] sm:$0xff] (%p1209_p8) }
 0x392   : >> { %v1408_v26 = vpop.permute.xlu1 %1407  ;;  %1429 = vst [vmem:[#allocation2 + $0x40] sm:$0xff] %v1428_v59  ;;  %v1593_v6 = vpop.permute.xlu0 %1592 }
 0x393   : >> { %v1595_v27 = vmul.f32 %v1593_v6, %v3053_v41  ;;  %v1410_v8 = vmul.f32 %v1408_v26, %v1404_v24 }
 0x395   : >> { %v3139_v16 = vadd.f32 %v1595_v27, %v1590_v2  ;;  %v1411_v18 = vadd.f32 %v1410_v8, %v1387_v20  ;;  %v1530_v2 = vmul.f32 %v3133_v25, %v3129_v19  ;;  %v1701_v19 = vld [vmem:[%s3302_s9 + $0x78] sm:$0xff] (%p1209_p8)  ;;  %v1700_v25 = vld [vmem:[%s3302_s9 + $0x70] sm:$0xff] (%p1209_p8) }
 0x396   : > { %2027 = vmatprep.subr.mxu0 (%p1209_p8), %v1701_v19 }
 0x397   : >> { %v1432_v30 = vpop.permute.xlu1 %1431  ;;  %1597 = vst [vmem:[#allocation2 + $0x28] sm:$0xff] %v3139_v16  ;;  %2028 = vmatpush3.msra.mxu0 (%p1209_p8), %v1701_v19 }
 0x398   : >> { %v1434_v12 = vmul.f32 %v1432_v30, %v1428_v59  ;;  %2029 = vmatprep.subr.mxu0 (%p1209_p8), %v1700_v25 }
 0x399   : > { %2030 = vmatpush3.msra.mxu0 (%p1209_p8), %v1700_v25 }
 0x39a   : >> { %v1435_v52 = vadd.f32 %v1434_v12, %v1411_v18  ;;  %v1687_v18 = vld [vmem:[%s3302_s9 + $0x8] sm:$0xff] (%p1209_p8) }
 0x39c   : >> { %v1473_v38 = vpop.permute.xlu1 %1472  ;;  %v1459_v57 = vadd.f32 %v1458_v1, %v1435_v52 }
 0x39d   : >> { %v1475_v14 = vmul.f32 %v1473_v38, %v3053_v41  ;;  %v3191_v38 = vld [vmem:[#allocation8 + $0x10] sm:$0xff] (%p1209_p8) }
 0x39e   : > { %v1994_v17 = vmul.f32 (%p1209_p8), -1.442695, %v3191_v38 }
 0x39f   : >> { %v1476_v45 = vadd.f32 %v1475_v14, %v1470_v3  ;;  %v1992_v3 = vmul.f32 (%p1209_p8), -1.442695, %v3183_v29  ;;  %v3195_v14 = vld [vmem:[#allocation8] sm:$0xff] (%p1209_p8) }
 0x3a1   : >> { %v1497_v43 = vpop.permute.xlu1 %1496  ;;  %1477 = vst [vmem:[#allocation2 + $0x10] sm:$0xff] %v1476_v45  ;;  %2298 = vpow2.f32 (%p1209_p8), %v1992_v3 }
 0x3a2   : >> { %v1499_v7 = vmul.f32 %v1497_v43, %v3053_v41  ;;  %2300 = vpow2.f32 (%p1209_p8), %v1993_v42  ;;  %v3204_v43 = vld [vmem:[#allocation8 + $0x18] sm:$0xff] (%p1209_p8) }
 0x3a3   : > { %2302 = vpow2.f32 (%p1209_p8), %v1994_v17 }
 0x3a4   : >> { %v1500_v44 = vadd.f32 %v1499_v7, %v1494_v5  ;;  %v3201_v5 = vld [vmem:[#allocation8 + $0x8] sm:$0xff] (%p1209_p8)  ;;  %v3206_v7 = vld [vmem:[#allocation8 + $0x30] sm:$0xff] (%p1209_p8) }
 0x3a5   : > { %v1996_v46 = vmul.f32 (%p1209_p8), -1.442695, %v3201_v5  ;;  %v1998_v21 = vmul.f32 (%p1209_p8), -1.442695, %v3206_v7 }
 0x3a6   : >> { %v1480_v48 = vpop.permute.xlu1 %1479  ;;  %1501 = vst [vmem:[#allocation2 + $0x38] sm:$0xff] %v1500_v44 }
 0x3a7   : >> { %v1482_v40 = vmul.f32 %v1480_v48, %v1476_v45  ;;  %v1995_v45 = vmul.f32 (%p1209_p8), -1.442695, %v3195_v14  ;;  %v3213_v48 = vld [vmem:[#allocation8 + $0x20] sm:$0xff] (%p1209_p8) }
 0x3a8   : > { %v1999_v49 = vmul.f32 (%p1209_p8), -1.442695, %v3213_v48 }
 0x3a9   : >> { %v1483_v55 = vadd.f32 %v1482_v40, %v1459_v57  ;;  %2304 = vpow2.f32 (%p1209_p8), %v1995_v45 }
 0x3aa   : > { %2306 = vpow2.f32 (%p1209_p8), %v1996_v46 }
 0x3ab   : >> { %v1504_v62 = vpop.permute.xlu1 %1503 }
 0x3ac   : >> { %v1506_v22 = vmul.f32 %v1504_v62, %v1500_v44  ;;  %v1997_v44 = vmul.f32 (%p1209_p8), -1.442695, %v3204_v43  ;;  %v1690_v62 = vld [vmem:[%s3302_s9 + $0x20] sm:$0xff] (%p1209_p8) }
 0x3ae   : >> { %v1507_v59 = vadd.f32 %v1506_v22, %v1483_v55  ;;  %2308 = vpow2.f32 (%p1209_p8), %v1997_v44  ;;  %v2299_v4 = vpop.eup (%p1209_p8), %2298 }
 0x3af   : > { %2310 = vpow2.f32 (%p1209_p8), %v1998_v21  ;;  %v2301_v15 = vpop.eup (%p1209_p8), %2300  ;;  %v1646_v54 = vadd.f32 (%p1209_p8), 1.0, %v2299_v4 }
 0x3b0   : >> { %v1545_v10 = vpop.permute.xlu1 %1544  ;;  %v1531_v27 = vadd.f32 %v1530_v2, %v1507_v59  ;;  %2312 = vpow2.f32 (%p1209_p8), %v1999_v49  ;;  %v2303_v8 = vpop.eup (%p1209_p8), %2302 }
 0x3b1   : >> { %v1547_v61 = vmul.f32 %v1545_v10, %v3053_v41  ;;  %2314 = vrcp.f32 (%p1209_p8), %v1646_v54  ;;  %v1648_v20 = vadd.f32 (%p1209_p8), 1.0, %v2303_v8 }
 0x3b3   : >> { %v1548_v0 = vadd.f32 %v1547_v61, %v1542_v63  ;;  %v1647_v63 = vadd.f32 (%p1209_p8), 1.0, %v2301_v15  ;;  %v1816_v15 = vld [vmem:[%s2508_s30 + $0x10] sm:$0xff] (%p1209_p8) }
 0x3b5   : >> { %v1569_v36 = vpop.permute.xlu1 %1568  ;;  %1549 = vst [vmem:[#allocation2 + $0x70] sm:$0xff] %v1548_v0  ;;  %2316 = vrcp.f32 (%p1209_p8), %v1647_v63  ;;  %v1819_v63 = vld [vmem:[%s2508_s30 + $0x28] sm:$0xff] (%p1209_p8) }
 0x3b6   : >> { %v1571_v32 = vmul.f32 %v1569_v36, %v3053_v41  ;;  %v2305_v10 = vpop.eup (%p1209_p8), %2304  ;;  %2318 = vrcp.f32 (%p1209_p8), %v1648_v20  ;;  %v1686_v36 = vld [vmem:[%s3302_s9] sm:$0xff] (%p1209_p8) }
 0x3b7   : > { %v2307_v12 = vpop.eup (%p1209_p8), %2306  ;;  %v1649_v61 = vadd.f32 (%p1209_p8), 1.0, %v2305_v10 }
 0x3b8   : >> { %v1572_v24 = vadd.f32 %v1571_v32, %v1566_v34 }
 0x3b9   : > { %2320 = vrcp.f32 (%p1209_p8), %v1649_v61 }
 0x3ba   : >> { %v1552_v23 = vpop.permute.xlu1 %1551  ;;  %1573 = vst [vmem:[#allocation2 + $0x78] sm:$0xff] %v1572_v24 }
 0x3bb   : >> { %v1554_v26 = vmul.f32 %v1552_v23, %v1548_v0  ;;  %v2309_v35 = vpop.eup (%p1209_p8), %2308  ;;  %v1650_v0 = vadd.f32 (%p1209_p8), 1.0, %v2307_v12  ;;  %v1818_v12 = vld [vmem:[%s2508_s30 + $0x20] sm:$0xff] (%p1209_p8) }
 0x3bc   : > { %v2311_v34 = vpop.eup (%p1209_p8), %2310  ;;  %v1651_v52 = vadd.f32 (%p1209_p8), 1.0, %v2309_v35 }
 0x3bd   : >> { %v1555_v47 = vadd.f32 %v1554_v26, %v1531_v27  ;;  %v2313_v1 = vpop.eup (%p1209_p8), %2312  ;;  %2322 = vrcp.f32 (%p1209_p8), %v1650_v0  ;;  %v1652_v32 = vadd.f32 (%p1209_p8), 1.0, %v2311_v34  ;;  %v1821_v0 = vld [vmem:[%s2508_s30 + $0x38] sm:$0xff] (%p1209_p8) }
 0x3be   : > { %2324 = vrcp.f32 (%p1209_p8), %v1651_v52  ;;  %v1653_v40 = vadd.f32 (%p1209_p8), 1.0, %v2313_v1 }
 0x3bf   : >> { %v1576_v6 = vpop.permute.xlu1 %1575  ;;  %2326 = vrcp.f32 (%p1209_p8), %v1652_v32 }
 0x3c0   : >> { %v1578_v50 = vmul.f32 %v1576_v6, %v1572_v24  ;;  %2328 = vrcp.f32 (%p1209_p8), %v1653_v40  ;;  %v2315_v24 = vpop.eup (%p1209_p8), %2314 }
 0x3c1   : > { %v1670_v23 = vmul.f32 (%p1209_p8), %v2315_v24, %v3183_v29 }
 0x3c2   : >> { %v1579_v30 = vadd.f32 %v1578_v50, %v1555_v47  ;;  %v2317_v22 = vpop.eup (%p1209_p8), %2316 }
 0x3c3   : > { %v2319_v59 = vpop.eup (%p1209_p8), %2318  ;;  %v1671_v2 = vmul.f32 (%p1209_p8), %v2317_v22, %v3189_v37 }
 0x3c4   : >> { %v1600_v28 = vpop.permute.xlu1 %1599  ;;  %v1672_v50 = vmul.f32 (%p1209_p8), %v2319_v59, %v3191_v38 }
 0x3c5   : >> { %v1602_v41 = vmul.f32 %v1600_v28, %v3139_v16  ;;  %1211 = sbr.rel (!%p1209_p8) target bundleno = 738 (0x2e2), region = 124  ;;  %v1699_v16 = vld [vmem:[%s3302_s9 + $0x68] sm:$0xff] (%p1209_p8) }
 0x3c6   : > { %2031 = vmatprep.subr.mxu0 (%p1209_p8), %v1699_v16  ;;  %v2321_v6 = vpop.eup (%p1209_p8), %2320 }
 0x3c7   : >> { %v1603_v9 = vadd.f32 %v1602_v41, %v1579_v30  ;;  %2032 = vmatpush3.msra.mxu0 (%p1209_p8), %v1699_v16  ;;  %v1673_v41 = vmul.f32 (%p1209_p8), %v2321_v6, %v3195_v14 }
 0x3c8   : > { %2033 = vmatprep.subr.mxu0 (%p1209_p8), %v1698_v31 }
 0x3c9   : >> { %1605 = vst [vmem:[%s1604_s15] sm:$0xff] %v1603_v9  ;;  %2034 = vmatpush3.msra.mxu0 (%p1209_p8), %v1698_v31 }
 0x3ca   : > { %2035 = vmatprep.subr.mxu0 %v1697_v33  ;;  %v2323_v28 = vpop.eup %2322 }
 0x3cb   : > { %2036 = vmatpush3.msra.mxu0 %v1697_v33  ;;  %v2325_v19 = vpop.eup %2324  ;;  %v1674_v16 = vmul.f32 %v2323_v28, %v3201_v5 }
 0x3cc   : > { %2037 = vmatprep.subr.mxu0 %v1696_v39  ;;  %v2327_v31 = vpop.eup %2326  ;;  %v1675_v33 = vmul.f32 %v2325_v19, %v3204_v43  ;;  %v2000_v43 = vld [vmem:[%s3303_s10] ss:$0 sm:$0xff] }
 0x3cd   : > { %2038 = vmatpush3.msra.mxu0 %v1696_v39  ;;  %v2329_v3 = vpop.eup %2328  ;;  %v1676_v42 = vmul.f32 %v2327_v31, %v3206_v7 }
 0x3ce   : > { %2039 = vmatprep.subr.mxu0 %v1695_v11  ;;  %v1677_v39 = vmul.f32 %v2329_v3, %v3213_v48  ;;  %v1814_v48 = vld [vmem:[%s2508_s30] sm:$0xff] }
 0x3cf   : > { %2040 = vmatpush3.msra.mxu0 %v1695_v11  ;;  %v1815_v11 = vld [vmem:[%s2508_s30 + $0x8] sm:$0xff] }
 0x3d0   : > { %2041 = vmatprep.subr.mxu0 %v1694_v56  ;;  %v1614_v57 = vld [vmem:[#allocation7] sm:$0xff]  ;;  %v1615_v55 = vld [vmem:[#allocation7 + $0x8] sm:$0xff]  ;;  %v1616_v26 = vld [vmem:[#allocation7 + $0x10] sm:$0xff] }
 0x3d1   : > { %2042 = vmatpush3.msra.mxu0 %v1694_v56  ;;  %v1678_v27 = vmul.f32 %v1670_v23, %v1614_v57  ;;  %v1617_v47 = vld [vmem:[#allocation7 + $0x18] sm:$0xff]  ;;  %v1679_v30 = vmul.f32 %v1671_v2, %v1615_v55  ;;  %v1618_v9 = vld [vmem:[#allocation7 + $0x20] sm:$0xff]  ;;  %v1680_v25 = vmul.f32 %v1672_v50, %v1616_v26  ;;  %v1619_v38 = vld [vmem:[#allocation7 + $0x28] sm:$0xff] }
 0x3d2   : > { %2043 = vmatprep.subr.mxu0 %v1693_v53  ;;  %v1681_v29 = vmul.f32 %v1673_v41, %v1617_v47  ;;  %v1682_v37 = vmul.f32 %v1674_v16, %v1618_v9  ;;  %v1620_v17 = vld [vmem:[#allocation7 + $0x30] sm:$0xff]  ;;  %v1683_v14 = vmul.f32 %v1675_v33, %v1619_v38  ;;  %v1621_v5 = vld [vmem:[#allocation7 + $0x38] sm:$0xff] }
 0x3d3   : > { %2044 = vmatpush3.msra.mxu0 %v1693_v53  ;;  %2059 = vmatprep.mubr.f32.mxu0 %v1678_v27  ;;  %v1684_v45 = vmul.f32 %v1676_v42, %v1620_v17  ;;  %v1685_v46 = vmul.f32 %v1677_v39, %v1621_v5 }
 0x3d4   : > { %2045 = vmatprep.subr.mxu0 %v1692_v58 }
 0x3d5   : > { %2046 = vmatpush3.msra.mxu0 %v1692_v58  ;;  %v1817_v58 = vld [vmem:[%s2508_s30 + $0x18] sm:$0xff] }
 0x3d6   : > { %2047 = vmatprep.subr.mxu0 %v1691_v60 }
 0x3d7   : > { %2048 = vmatpush3.msra.mxu0 %v1691_v60 }
 0x3d8   : > { %2049 = vmatprep.subr.mxu0 %v1690_v62 }
 0x3d9   : > { %2050 = vmatpush3.msra.mxu0 %v1690_v62 }
 0x3da   : > { %2051 = vmatprep.subr.mxu0 %v1689_v51 }
 0x3db   : > { %2052 = vmatpush3.msra.mxu0 %v1689_v51 }
 0x3dc   : > { %2053 = vmatprep.subr.mxu0 %v1688_v13 }
 0x3dd   : > { %2054 = vmatpush3.msra.mxu0 %v1688_v13 }
 0x3de   : > { %2055 = vmatprep.subr.mxu0 %v1687_v18 }
 0x3df   : > { %2056 = vmatpush3.msra.mxu0 %v1687_v18 }
 0x3e0   : > { %2057 = vmatprep.subr.mxu0 %v1686_v36 }
 0x3e1   : > { %2058 = vmatpush3.msra.mxu0 %v1686_v36  ;;  %v1820_v36 = vld [vmem:[%s2508_s30 + $0x30] sm:$0xff] }
 0x3e2   : > { %2060 = vmatmul.mubr.f32.vlgmr.msra.gmra.mxu0 %v1679_v30 }
 0x3e3   : > { %2062 = vmatprep.mubr.f32.mxu0 %v1680_v25 }
 0x3e6   : > { %2063 = vmatmul.mubr.f32.gmra.mxu0 %v1681_v29 }
 0x3e7   : > { %2065 = vmatprep.mubr.f32.mxu0 %v1682_v37 }
 0x3ea   : > { %2066 = vmatmul.mubr.f32.gmra.mxu0 %v1683_v14 }
 0x3eb   : > { %2068 = vmatprep.mubr.f32.mxu0 %v1684_v45 }
 0x3ee   : > { %2069 = vmatmul.mubr.f32.gmra.mxu0 %v1685_v46 }
 0x4a2   : > { %v2061_v7 = vpop.f32.mrf.mxu0 }
 0x4a3   : > { %v1781_v44 = vadd.f32 %v2061_v7, %v2000_v43 }
 0x4a4   : > { %v1775_v21 = vpop.f32.mrf.mxu0 }
 0x4a5   : > { %v1823_v49 = vadd.f32 %v1815_v11, %v1781_v44  ;;  %v1776_v56 = vadd.f32 %v2000_v43, %v1775_v21 }
 0x4a6   : > { %v2064_v53 = vpop.f32.mrf.mxu0 }
 0x4a7   : > { %1831 = vst.msk [vmem:[%s2513_s14 + $0x8] sm:$0xff] %vm442_vm0, %v1823_v49  ;;  %v1822_v60 = vadd.f32 %v1814_v48, %v1776_v56  ;;  %v1791_v62 = vadd.f32 %v2064_v53, %v2000_v43 }
 0x4a8   : > { %v1785_v4 = vpop.f32.mrf.mxu0 }
 0x4a9   : > { %1830 = vst.msk [vmem:[%s2513_s14] sm:$0xff] %vm442_vm0, %v1822_v60  ;;  %v1825_v51 = vadd.f32 %v1817_v58, %v1791_v62  ;;  %v1786_v54 = vadd.f32 %v2000_v43, %v1785_v4 }
 0x4aa   : > { %v2067_v8 = vpop.f32.mrf.mxu0 }
 0x4ab   : > { %1833 = vst.msk [vmem:[%s2513_s14 + $0x18] sm:$0xff] %vm442_vm0, %v1825_v51  ;;  %v1824_v10 = vadd.f32 %v1816_v15, %v1786_v54  ;;  %v1801_v13 = vadd.f32 %v2067_v8, %v2000_v43 }
 0x4ac   : > { %v1795_v20 = vpop.f32.mrf.mxu0 }
 0x4ad   : > { %1832 = vst.msk [vmem:[%s2513_s14 + $0x10] sm:$0xff] %vm442_vm0, %v1824_v10  ;;  %v1827_v61 = vadd.f32 %v1819_v63, %v1801_v13  ;;  %v1796_v35 = vadd.f32 %v2000_v43, %v1795_v20 }
 0x4ae   : > { %v2070_v18 = vpop.f32.mrf.mxu0 }
 0x4af   : > { %1835 = vst.msk [vmem:[%s2513_s14 + $0x28] sm:$0xff] %vm442_vm0, %v1827_v61  ;;  %v1826_v34 = vadd.f32 %v1818_v12, %v1796_v35  ;;  %v1811_v52 = vadd.f32 %v2070_v18, %v2000_v43 }
 0x4b0   : > { %v1805_v1 = vpop.f32.mrf.mxu0 }
 0x4b1   : > { %1834 = vst.msk [vmem:[%s2513_s14 + $0x20] sm:$0xff] %vm442_vm0, %v1826_v34  ;;  %v1829_v32 = vadd.f32 %v1821_v0, %v1811_v52  ;;  %v1806_v40 = vadd.f32 %v2000_v43, %v1805_v1 }
 0x4b3   : > { %1837 = vst.msk [vmem:[%s2513_s14 + $0x38] sm:$0xff] %vm442_vm0, %v1829_v32  ;;  %v1828_v24 = vadd.f32 %v1820_v36, %v1806_v40 }
 0x4b5   : > { %1836 = vst.msk [vmem:[%s2513_s14 + $0x30] sm:$0xff] %vm442_vm0, %v1828_v24 }
 0x4b6 PF: > { %s21_s21 = sadd.s32 1, %s2372_s21   ;;  %s3305_s17 = smov %s2364_s19 }
 0x4b7   : > { %p18_p9 = scmp.ge.s32.totalorder %s21_s21, 6   ;;  %s3306_s18 = smov %s2368_s20 }
 0x4b8   : > { %s3307_s19 = smov %s3310_s22  ;;  %s3308_s20 = smov %s3314_s23 }
 0x4b9   :  { %20 = sbr.rel (!%p18_p9) target bundleno = 3 (0x3), region = 135 }

// kernel: tpu_custom_call.1
= control target key start
LH: loop header
LB: loop body
LE: loop exit
PB: predicated region body
PF: predicated region fallthrough
CT: control target
= control target key end

     0   :  { %s2472_s17 = smov 0   ;;  %s2474_s18 = smov 0   ;;  %s3293_s0 = inlined_call_operand.vmem [shape: f32[2,128,64], index: 0, kind: input, shape index: {}]   ;;  %s3294_s1 = inlined_call_operand.vmem [shape: f32[1,64], index: 1, kind: input, shape index: {}]   ;;  %s3295_s2 = inlined_call_operand.vmem [shape: f32[64,256], index: 2, kind: input, shape index: {}]   ;;  %s3296_s3 = inlined_call_operand.vmem [shape: f32[1,256], index: 3, kind: input, shape index: {}]   ;;  %s3297_s4 = inlined_call_operand.vmem [shape: f32[3,128], index: 4, kind: input, shape index: {}]   ;;  %s3298_s5 = inlined_call_operand.vmem [shape: f32[1,128], index: 5, kind: input, shape index: {}]   ;;  %s3299_s6 = inlined_call_operand.vmem [shape: f32[128,256], index: 6, kind: input, shape index: {}]   ;;  %s3300_s7 = inlined_call_operand.vmem [shape: f32[1,128], index: 7, kind: input, shape index: {}]   ;;  %s3301_s8 = inlined_call_operand.vmem [shape: f32[16,128], index: 8, kind: input, shape index: {}]   ;;  %s3302_s9 = inlined_call_operand.vmem [shape: f32[128,64], index: 9, kind: input, shape index: {}]   ;;  %s3303_s10 = inlined_call_operand.vmem [shape: f32[1,64], index: 10, kind: input, shape index: {}]   ;;  %s3304_s11 = inlined_call_operand.vmem [shape: f32[2,128,64], index: 11, kind: output, shape index: {}]  }
   0x1   :  { %s2476_s19 = smov 0   ;;  %s2478_s20 = smov 0  }
   0x2   :  { %s2480_s21 = smov 0  }
   0x3 LB: > { %s30_s22 = sadd.s32 1, %s2364_s19  ;;  %s33_s23 = sadd.s32 1, %s2368_s20  ;;  %s2372_s21 = sphi %s2480_s21, %s21_s21   ;;  %s2368_s20 = sphi %s2478_s20, %s3308_s20   ;;  %s2364_s19 = sphi %s2476_s19, %s3307_s19   ;;  %s2360_s18 = sphi %s2474_s18, %s3306_s18   ;;  %s2356_s17 = sphi %s2472_s17, %s3305_s17  }
   0x4   : > { %p31_p0 = scmp.ge.s32.totalorder %s30_s22, 2  ;;  %p1945_p1 = scmp.ge.s32.totalorder %s2372_s21, 1 }
   0x5   : > { %p358_p2 = scmp.lt.s32.totalorder %s2372_s21, 5 }
   0x6   : > { %s3310_s22 = smov (%p31_p0, %s30_s22), 0  ;;  %s3312_s23 = smov (!%p31_p0, %s33_s23), %s2368_s20 }
   0x7   : > { %p359_p3 = pnand %p1945_p1, %p358_p2  ;;  %p35_p4 = scmp.ge.s32.totalorder %s3312_s23, 2 }
   0x8   : > { %s1946_s24 = sshll.u32 (!%p359_p3), %s2356_s17, 3  ;;  %p407_p5 = scmp.lt.s32.totalorder (!%p359_p3), %s2360_s18, 1 }
   0x9   : > { %s3314_s23 = smov (%p35_p4, %s3312_s23), 0  ;;  %362 = sbr.rel (%p359_p3) target bundleno = 1206 (0x4b6), region = 64 }
   0xa   : > { %p409_p6 = scmp.lt.s32.totalorder (!%p359_p3), %s1946_s24, 15  ;;  %p1961_p7 = scmp.ne.s32.totalorder (!%p359_p3), %s2356_s17, 0 }
   0xe   : > { %s3316_s18 = smov (!%p407_p5, %s2360_s18), 1  ;;  %s3318_s24 = smov (!%p409_p6, %s1946_s24), 15  ;;  %vm442_vm0 = vcmask 523264   ;;  %v530_v24 = vld [vmem:[%s3295_s2 + $0x78] sm:$0xff]  ;;  %v529_v25 = vld [vmem:[%s3295_s2 + $0x70] sm:$0xff]  ;;  %v528_v26 = vld [vmem:[%s3295_s2 + $0x68] sm:$0xff] }
   0xf   : > { %s1947_s25 = sshll.u32 %s3316_s18, 4  ;;  %583 = vmatprep.subr.mxu0 %v530_v24  ;;  %v527_v27 = vld [vmem:[%s3295_s2 + $0x60] sm:$0xff]  ;;  %v526_v28 = vld [vmem:[%s3295_s2 + $0x58] sm:$0xff]  ;;  %v525_v29 = vld [vmem:[%s3295_s2 + $0x50] sm:$0xff]  ;;  %v2378_v36 = vmov 0.0  }
  0x10   : > { %s412_s26 = sadd.s32 %s1947_s25, %s3318_s24  ;;  %584 = vmatpush1.msra.mxu0 %v529_v25  ;;  %v524_v30 = vld [vmem:[%s3295_s2 + $0x48] sm:$0xff]  ;;  %v523_v31 = vld [vmem:[%s3295_s2 + $0x40] sm:$0xff]  ;;  %v522_v32 = vld [vmem:[%s3295_s2 + $0x38] sm:$0xff]  ;;  %631 = vmatprep.mubr.f32.mxu0 %v2378_v36 }
  0x11   : > { %s1948_s27 = sshll.u32 %s412_s26, 3  ;;  %585 = vmatprep.subr.mxu0 %v528_v26  ;;  %v521_v33 = vld [vmem:[%s3295_s2 + $0x30] sm:$0xff]  ;;  %v520_v34 = vld [vmem:[%s3295_s2 + $0x28] sm:$0xff]  ;;  %v519_v35 = vld [vmem:[%s3295_s2 + $0x20] sm:$0xff] }
  0x12   : > { %s2508_s30 = scalar_lea.vmem %s3293_s0, %s1948_s27  ;;  %s2513_s14 = scalar_lea.vmem %s3304_s11, %s1948_s27  ;;  %586 = vmatpush1.msra.mxu0 %v527_v27  ;;  %v518_v37 = vld [vmem:[%s3295_s2 + $0x18] sm:$0xff]  ;;  %v517_v38 = vld [vmem:[%s3295_s2 + $0x10] sm:$0xff]  ;;  %v516_v39 = vld [vmem:[%s3295_s2 + $0x8] sm:$0xff] }
  0x13   : > { %v2516_v0 = vld [vmem:[%s2508_s30] sm:$0xff]  ;;  %v2519_v1 = vld [vmem:[%s2508_s30 + $0x8] sm:$0xff]  ;;  %v2522_v2 = vld [vmem:[%s2508_s30 + $0x10] sm:$0xff]  ;;  %587 = vmatprep.subr.mxu0 %v526_v28  ;;  %v533_v28 = vlaneseq }
  0x14   : > { %v434_v3 = vmul.f32 %v2516_v0, %v2516_v0  ;;  %v435_v4 = vmul.f32 %v2519_v1, %v2519_v1  ;;  %v436_v5 = vmul.f32 %v2522_v2, %v2522_v2  ;;  %v2531_v6 = vld [vmem:[%s2508_s30 + $0x18] sm:$0xff]  ;;  %v2536_v8 = vld [vmem:[%s2508_s30 + $0x20] sm:$0xff]  ;;  %v2539_v9 = vld [vmem:[%s2508_s30 + $0x28] sm:$0xff]  ;;  %588 = vmatpush1.msra.mxu0 %v525_v29 }
  0x15   : > { %v437_v7 = vmul.f32 %v2531_v6, %v2531_v6  ;;  %v438_v14 = vmul.f32 %v2536_v8, %v2536_v8  ;;  %v439_v15 = vmul.f32 %v2539_v9, %v2539_v9  ;;  %v2550_v16 = vld [vmem:[%s2508_s30 + $0x30] sm:$0xff]  ;;  %v2553_v17 = vld [vmem:[%s2508_s30 + $0x38] sm:$0xff]  ;;  %589 = vmatprep.subr.mxu0 %v524_v30  ;;  %v515_v40 = vld [vmem:[%s3295_s2] sm:$0xff]  ;;  %v534_v29 = vshrl.u32 %v533_v28, 7 }
  0x16   : > { %v443_v10 = vsel %vm442_vm0, %v434_v3, 0.0  ;;  %v449_v11 = vsel %vm442_vm0, %v436_v5, 0.0  ;;  %v446_v12 = vsel %vm442_vm0, %v435_v4, 0.0  ;;  %v440_v20 = vmul.f32 %v2550_v16, %v2550_v16  ;;  %590 = vmatpush1.msra.mxu0 %v523_v31  ;;  %v1952_v63 = vld [vmem:[%s3294_s1] ss:$0 sm:$0xff] }
  0x17   : > { %444 = vadd.xlane.f32.xlu0 %v443_v10  ;;  %450 = vadd.xlane.f32.xlu1 %v449_v11  ;;  %v452_v13 = vsel %vm442_vm0, %v437_v7, 0.0  ;;  %v455_v18 = vsel %vm442_vm0, %v438_v14, 0.0  ;;  %v458_v19 = vsel %vm442_vm0, %v439_v15, 0.0  ;;  %v441_v21 = vmul.f32 %v2553_v17, %v2553_v17  ;;  %v531_v30 = vld [vmem:[%s3296_s3] sm:$0x3] }
  0x18   : > { %v461_v22 = vsel %vm442_vm0, %v440_v20, 0.0  ;;  %591 = vmatprep.subr.mxu0 %v522_v32  ;;  %v539_v31 = vsub.s32 1, %v534_v29 }
  0x19   : > { %v464_v23 = vsel %vm442_vm0, %v441_v21, 0.0  ;;  %592 = vmatpush1.msra.mxu0 %v521_v33 }
  0x1a   : > { %593 = vmatprep.subr.mxu0 %v520_v34  ;;  %v540_v33 = vrot.slane %v531_v30, %v539_v31 }
  0x1b   : > { %447 = vadd.xlane.f32.xlu0 %v446_v12  ;;  %453 = vadd.xlane.f32.xlu1 %v452_v13 }
  0x1c   : > { %594 = vmatpush1.msra.mxu0 %v519_v35 }
  0x1d   : > { %595 = vmatprep.subr.mxu0 %v518_v37 }
  0x1e   : > { %596 = vmatpush1.msra.mxu0 %v517_v38 }
  0x1f   : > { %456 = vadd.xlane.f32.xlu0 %v455_v18  ;;  %459 = vadd.xlane.f32.xlu1 %v458_v19 }
  0x20   : > { %597 = vmatprep.subr.mxu0 %v516_v39 }
  0x21   : > { %598 = vmatpush1.msra.mxu0 %v515_v40 }
  0x23   : > { %462 = vadd.xlane.f32.xlu0 %v461_v22  ;;  %465 = vadd.xlane.f32.xlu1 %v464_v23 }
  0xa0   : > { %v445_v41 = vpop.xlane.xlu0 %444  ;;  %v451_v42 = vpop.xlane.xlu1 %450 }
  0xa1   : > { %v468_v43 = vmul.f32 0.015625, %v445_v41  ;;  %v470_v44 = vmul.f32 0.015625, %v451_v42 }
  0xa3   : > { %v476_v45 = vadd.f32 1e-05, %v468_v43  ;;  %v478_v46 = vadd.f32 1e-05, %v470_v44 }
  0xa4   : > { %v448_v47 = vpop.xlane.xlu0 %447  ;;  %v454_v48 = vpop.xlane.xlu1 %453 }
  0xa5   : > { %2153 = vrsqrt.f32 %v476_v45  ;;  %v469_v49 = vmul.f32 0.015625, %v448_v47  ;;  %v471_v50 = vmul.f32 0.015625, %v454_v48 }
  0xa6   : > { %2155 = vrsqrt.f32 %v478_v46 }
  0xa7   : > { %v477_v51 = vadd.f32 1e-05, %v469_v49  ;;  %v479_v52 = vadd.f32 1e-05, %v471_v50 }
  0xa8   : > { %v457_v53 = vpop.xlane.xlu0 %456  ;;  %v460_v54 = vpop.xlane.xlu1 %459 }
  0xa9   : > { %2157 = vrsqrt.f32 %v477_v51  ;;  %v472_v55 = vmul.f32 0.015625, %v457_v53  ;;  %v473_v57 = vmul.f32 0.015625, %v460_v54 }
  0xaa   : > { %2159 = vrsqrt.f32 %v479_v52 }
  0xab   : > { %v480_v56 = vadd.f32 1e-05, %v472_v55  ;;  %v481_v59 = vadd.f32 1e-05, %v473_v57 }
  0xac   : > { %v463_v58 = vpop.xlane.xlu0 %462  ;;  %v466_v61 = vpop.xlane.xlu1 %465 }
  0xad   : > { %2161 = vrsqrt.f32 %v480_v56  ;;  %v474_v60 = vmul.f32 0.015625, %v463_v58  ;;  %v475_v5 = vmul.f32 0.015625, %v466_v61 }
  0xae   : > { %2163 = vrsqrt.f32 %v481_v59 }
  0xaf   : > { %v482_v4 = vadd.f32 1e-05, %v474_v60  ;;  %v483_v13 = vadd.f32 1e-05, %v475_v5 }
  0xb1   : > { %2165 = vrsqrt.f32 %v482_v4 }
  0xb2   : > { %v2154_v62 = vpop.eup %2153  ;;  %2167 = vrsqrt.f32 %v483_v13 }
  0xb3   : > { %v492_v3 = vmul.f32 %v2154_v62, %v2516_v0  ;;  %v2156_v7 = vpop.eup %2155 }
  0xb4   : > { %v494_v14 = vmul.f32 %v2156_v7, %v2522_v2 }
  0xb5   : > { %v507_v10 = vmul.f32 %v1952_v63, %v492_v3 }
  0xb6   : > { %v2158_v11 = vpop.eup %2157  ;;  %v509_v0 = vmul.f32 %v1952_v63, %v494_v14 }
  0xb7   : > { %1953 = vmatmul.mubr.msk.f32.vlgmr.msra.gmra.mxu0 %vm442_vm0, %v507_v10  ;;  %v493_v12 = vmul.f32 %v2158_v11, %v2519_v1  ;;  %v2160_v15 = vpop.eup %2159 }
  0xb8   : > { %637 = vmatprep.mubr.f32.mxu0 %v2378_v36  ;;  %v495_v19 = vmul.f32 %v2160_v15, %v2531_v6 }
  0xb9   : > { %v508_v18 = vmul.f32 %v1952_v63, %v493_v12 }
  0xba   : > { %v2162_v20 = vpop.eup %2161  ;;  %v510_v21 = vmul.f32 %v1952_v63, %v495_v19 }
  0xbb   : > { %1954 = vmatmul.mubr.msk.f32.gmra.mxu0 %vm442_vm0, %v508_v18  ;;  %v496_v1 = vmul.f32 %v2162_v20, %v2536_v8  ;;  %v2164_v22 = vpop.eup %2163 }
  0xbc   : > { %643 = vmatprep.mubr.f32.mxu0 %v2378_v36  ;;  %v497_v23 = vmul.f32 %v2164_v22, %v2539_v9 }
  0xbd   : > { %v511_v2 = vmul.f32 %v1952_v63, %v496_v1 }
  0xbe   : > { %v2166_v24 = vpop.eup %2165  ;;  %v512_v6 = vmul.f32 %v1952_v63, %v497_v23 }
  0xbf   : > { %1955 = vmatmul.mubr.msk.f32.gmra.mxu0 %vm442_vm0, %v509_v0  ;;  %v498_v25 = vmul.f32 %v2166_v24, %v2550_v16  ;;  %v2168_v26 = vpop.eup %2167  ;;  %v535_v16 = vsub.s32 0, %v534_v29 }
  0xc0   : > { %649 = vmatprep.mubr.f32.mxu0 %v2378_v36  ;;  %v499_v27 = vmul.f32 %v2168_v26, %v2553_v17 }
  0xc1   : > { %v513_v8 = vmul.f32 %v1952_v63, %v498_v25  ;;  %v536_v32 = vrot.slane %v531_v30, %v535_v16 }
  0xc2   : > { %v514_v9 = vmul.f32 %v1952_v63, %v499_v27 }
  0xc3   : > { %1956 = vmatmul.mubr.msk.f32.gmra.mxu0 %vm442_vm0, %v510_v21 }
  0xc4   : > { %655 = vmatprep.mubr.f32.mxu0 %v2378_v36 }
  0xc7   : > { %1957 = vmatmul.mubr.msk.f32.gmra.mxu0 %vm442_vm0, %v511_v2 }
  0xc8   : > { %661 = vmatprep.mubr.f32.mxu0 %v2378_v36 }
  0xcb   : > { %1958 = vmatmul.mubr.msk.f32.gmra.mxu0 %vm442_vm0, %v512_v6 }
  0xcc   : > { %667 = vmatprep.mubr.f32.mxu0 %v2378_v36 }
  0xcf   : > { %1959 = vmatmul.mubr.msk.f32.gmra.mxu0 %vm442_vm0, %v513_v8 }
  0xd0   : > { %673 = vmatprep.mubr.f32.mxu0 %v2378_v36 }
  0xd3   : > { %1960 = vmatmul.mubr.msk.f32.gmra.mxu0 %vm442_vm0, %v514_v9 }
 0x177   : > { %v633_v17 = vpop.f32.mrf.mxu0 }
 0x178   : > { %v2641_v34 = vadd.f32 %v633_v17, %v536_v32 }
 0x179   : > { %v635_v35 = vpop.f32.mrf.mxu0 }
 0x17a   : > { %v636_v37 = vadd.f32 %v635_v35, %v540_v33 }
 0x17b   : > { %v639_v38 = vpop.f32.mrf.mxu0 }
 0x17c   : > { %680 = vst [vmem:[#allocation8 + $0x28] sm:$0xff] %v636_v37  ;;  %v2643_v39 = vadd.f32 %v639_v38, %v536_v32 }
 0x17d   : > { %v641_v40 = vpop.f32.mrf.mxu0 }
 0x17e   : > { %v642_v41 = vadd.f32 %v641_v40, %v540_v33 }
 0x17f   : > { %v645_v42 = vpop.f32.mrf.mxu0 }
 0x180   : > { %681 = vst [vmem:[#allocation8 + $0x38] sm:$0xff] %v642_v41  ;;  %v2645_v43 = vadd.f32 %v645_v42, %v536_v32 }
 0x181   : > { %v647_v44 = vpop.f32.mrf.mxu0 }
 0x182   : > { %v648_v45 = vadd.f32 %v647_v44, %v540_v33 }
 0x183   : > { %v651_v46 = vpop.f32.mrf.mxu0 }
 0x184   : > { %682 = vst [vmem:[#allocation8 + $0x10] sm:$0xff] %v648_v45  ;;  %v2647_v47 = vadd.f32 %v651_v46, %v536_v32 }
 0x185   : > { %v653_v48 = vpop.f32.mrf.mxu0 }
 0x186   : > { %v654_v49 = vadd.f32 %v653_v48, %v540_v33 }
 0x187   : > { %v657_v50 = vpop.f32.mrf.mxu0 }
 0x188   : > { %683 = vst [vmem:[#allocation8] sm:$0xff] %v654_v49  ;;  %v2649_v51 = vadd.f32 %v657_v50, %v536_v32 }
 0x189   : > { %v659_v52 = vpop.f32.mrf.mxu0 }
 0x18a   : > { %v660_v53 = vadd.f32 %v659_v52, %v540_v33 }
 0x18b   : > { %v663_v54 = vpop.f32.mrf.mxu0 }
 0x18c   : > { %684 = vst [vmem:[#allocation8 + $0x8] sm:$0xff] %v660_v53  ;;  %v2651_v55 = vadd.f32 %v663_v54, %v536_v32 }
 0x18d   : > { %v665_v56 = vpop.f32.mrf.mxu0 }
 0x18e   : > { %v666_v57 = vadd.f32 %v665_v56, %v540_v33 }
 0x18f   : > { %v669_v58 = vpop.f32.mrf.mxu0 }
 0x190   : > { %685 = vst [vmem:[#allocation8 + $0x18] sm:$0xff] %v666_v57  ;;  %v2653_v59 = vadd.f32 %v669_v58, %v536_v32 }
 0x191   : > { %v671_v60 = vpop.f32.mrf.mxu0 }
 0x192   : > { %v672_v61 = vadd.f32 %v671_v60, %v540_v33 }
 0x193   : > { %v675_v62 = vpop.f32.mrf.mxu0 }
 0x194   : > { %686 = vst [vmem:[#allocation8 + $0x30] sm:$0xff] %v672_v61  ;;  %v2655_v63 = vadd.f32 %v675_v62, %v536_v32  ;;  %691 = sbr.rel (%p1961_p7) target bundleno = 419 (0x1a3), region = 68 }
 0x195   : > { %v677_v3 = vpop.f32.mrf.mxu0 }
 0x196   : > { %v678_v4 = vadd.f32 %v677_v3, %v540_v33 }
 0x198   : > { %687 = vst [vmem:[#allocation8 + $0x20] sm:$0xff] %v678_v4 }
 0x199   : > { %v2379_v5 = vmov 0.0  }
 0x19a   : > { %692 = vst [vmem:[#allocation2 + $0x30] sm:$0xff] %v2379_v5  ;;  %693 = vst [vmem:[#allocation2] sm:$0xff] %v2379_v5 }
 0x19b   : > { %694 = vst [vmem:[#allocation2 + $0x58] sm:$0xff] %v2379_v5  ;;  %695 = vst [vmem:[#allocation2 + $0x18] sm:$0xff] %v2379_v5 }
 0x19c   : > { %696 = vst [vmem:[#allocation2 + $0x50] sm:$0xff] %v2379_v5  ;;  %697 = vst [vmem:[#allocation2 + $0x68] sm:$0xff] %v2379_v5 }
 0x19d   : > { %698 = vst [vmem:[#allocation2 + $0x8] sm:$0xff] %v2379_v5  ;;  %699 = vst [vmem:[#allocation2 + $0x48] sm:$0xff] %v2379_v5 }
 0x19e   : > { %700 = vst [vmem:[#allocation2 + $0x40] sm:$0xff] %v2379_v5  ;;  %701 = vst [vmem:[#allocation2 + $0x20] sm:$0xff] %v2379_v5 }
 0x19f   : > { %702 = vst [vmem:[#allocation2 + $0x10] sm:$0xff] %v2379_v5  ;;  %703 = vst [vmem:[#allocation2 + $0x38] sm:$0xff] %v2379_v5 }
 0x1a0   : > { %704 = vst [vmem:[#allocation2 + $0x60] sm:$0xff] %v2379_v5  ;;  %705 = vst [vmem:[#allocation2 + $0x70] sm:$0xff] %v2379_v5 }
 0x1a1   : > { %706 = vst [vmem:[#allocation2 + $0x78] sm:$0xff] %v2379_v5  ;;  %707 = vst [vmem:[#allocation2 + $0x28] sm:$0xff] %v2379_v5 }
 0x1a2   : > { %708 = vst [vmem:[#allocation3 + $0x28] sm:$0xff] %v2379_v5  ;;  %709 = vst [vmem:[#allocation3 + $0x8] sm:$0xff] %v2379_v5 }
 0x1a3 PF: > { %v902_v7 = vld [vmem:[%s3299_s6 + $0xf8] sm:$0xff]  ;;  %v901_v10 = vld [vmem:[%s3299_s6 + $0xf0] sm:$0xff]  ;;  %v900_v11 = vld [vmem:[%s3299_s6 + $0xe8] sm:$0xff]  ;;  %967 = vmatprep.mubr.f32.mxu1 %v2378_v36  ;;  %s2982_s25 = smov 0  }
 0x1a4   : > { %903 = vmatprep.subr.mxu1 %v902_v7  ;;  %v899_v12 = vld [vmem:[%s3299_s6 + $0xe0] sm:$0xff]  ;;  %v898_v13 = vld [vmem:[%s3299_s6 + $0xd8] sm:$0xff]  ;;  %v897_v14 = vld [vmem:[%s3299_s6 + $0xd0] sm:$0xff] }
 0x1a5   : > { %904 = vmatpush1.msra.mxu1 %v901_v10  ;;  %v896_v15 = vld [vmem:[%s3299_s6 + $0xc8] sm:$0xff]  ;;  %v895_v18 = vld [vmem:[%s3299_s6 + $0xc0] sm:$0xff]  ;;  %v894_v0 = vld [vmem:[%s3299_s6 + $0xb8] sm:$0xff] }
 0x1a6   : > { %905 = vmatprep.subr.mxu1 %v900_v11  ;;  %v893_v19 = vld [vmem:[%s3299_s6 + $0xb0] sm:$0xff]  ;;  %v892_v20 = vld [vmem:[%s3299_s6 + $0xa8] sm:$0xff]  ;;  %v891_v21 = vld [vmem:[%s3299_s6 + $0xa0] sm:$0xff] }
 0x1a7   : > { %906 = vmatpush1.msra.mxu1 %v899_v12  ;;  %v890_v1 = vld [vmem:[%s3299_s6 + $0x98] sm:$0xff]  ;;  %v889_v22 = vld [vmem:[%s3299_s6 + $0x90] sm:$0xff]  ;;  %v2704_v2 = vld [vmem:[%s3297_s4] ss:$0 sm:$0xff] }
 0x1a8   : > { %907 = vmatprep.subr.mxu1 %v898_v13  ;;  %v2709_v6 = vld [vmem:[%s3297_s4 + $0x1] ss:$0 sm:$0xff]  ;;  %v733_v25 = vmul.f32 %v2704_v2, %v2641_v34  ;;  %v734_v26 = vmul.f32 %v2704_v2, %v2643_v39  ;;  %v735_v8 = vmul.f32 %v2704_v2, %v2645_v43  ;;  %v736_v27 = vmul.f32 %v2704_v2, %v2647_v47  ;;  %v888_v9 = vld [vmem:[%s3299_s6 + $0x88] sm:$0xff]  ;;  %v2727_v16 = vld [vmem:[%s3297_s4 + $0x2] ss:$0 sm:$0xff] }
 0x1a9   : > { %908 = vmatpush1.msra.mxu1 %v897_v14  ;;  %v719_v23 = vld [vmem:[#allocation3 + $0x28] sm:$0xff]  ;;  %v754_v31 = vmul.f32 %v2709_v6, %v2641_v34  ;;  %v887_v32 = vld [vmem:[%s3299_s6 + $0x80] sm:$0xff]  ;;  %v782_v33 = vmul.f32 %v2727_v16, %v2641_v34  ;;  %v783_v17 = vmul.f32 %v2727_v16, %v2643_v39  ;;  %v755_v35 = vmul.f32 %v2709_v6, %v2643_v39  ;;  %v886_v38 = vld [vmem:[%s3299_s6 + $0x78] sm:$0xff] }
 0x1aa   : > { %909 = vmatprep.subr.mxu1 %v896_v15  ;;  %v720_v24 = vld [vmem:[#allocation3 + $0x8] sm:$0xff]  ;;  %v731_v28 = vmul.f32 %v2704_v2, %v719_v23  ;;  %813 = vst [vmem:[#allocation3 + $0x28] sm:$0xff] %v2653_v59  ;;  %v784_v37 = vmul.f32 %v2727_v16, %v2645_v43  ;;  %v756_v42 = vmul.f32 %v2709_v6, %v2645_v43  ;;  %v885_v39 = vld [vmem:[%s3299_s6 + $0x70] sm:$0xff]  ;;  %v2758_v44 = vld [vmem:[%s3298_s5] ss:$0 sm:$0xff] }
 0x1ab   : > { %910 = vmatpush1.msra.mxu1 %v895_v18  ;;  %v753_v29 = vmul.f32 %v2709_v6, %v720_v24  ;;  %v732_v30 = vmul.f32 %v2704_v2, %v720_v24  ;;  %814 = vst [vmem:[#allocation3 + $0x8] sm:$0xff] %v2655_v63  ;;  %v785_v34 = vmul.f32 %v2727_v16, %v2647_v47  ;;  %v884_v49 = vld [vmem:[%s3299_s6 + $0x68] sm:$0xff]  ;;  %v882_v61 = vld [vmem:[%s3299_s6 + $0x58] sm:$0xff]  ;;  %v879_v18 = vld [vmem:[%s3299_s6 + $0x40] sm:$0xff] }
 0x1ac   : > { %911 = vmatprep.subr.mxu1 %v894_v0  ;;  %v763_v45 = vadd.f32 %v755_v35, %v733_v25  ;;  %v757_v46 = vmul.f32 %v2709_v6, %v2647_v47  ;;  %v786_v43 = vmul.f32 %v2727_v16, %v2649_v51  ;;  %v758_v48 = vmul.f32 %v2709_v6, %v2649_v51  ;;  %v883_v47 = vld [vmem:[%s3299_s6 + $0x60] sm:$0xff]  ;;  %v880_v11 = vld [vmem:[%s3299_s6 + $0x48] sm:$0xff]  ;;  %v877_v25 = vld [vmem:[%s3299_s6 + $0x30] sm:$0xff] }
 0x1ad   : > { %912 = vmatpush1.msra.mxu1 %v893_v19  ;;  %v761_v40 = vadd.f32 %v753_v29, %v731_v28  ;;  %v762_v41 = vadd.f32 %v754_v31, %v732_v30  ;;  %v764_v53 = vadd.f32 %v756_v42, %v734_v26  ;;  %v787_v54 = vmul.f32 %v2727_v16, %v2651_v55  ;;  %v873_v28 = vld [vmem:[%s3299_s6 + $0x10] sm:$0xff]  ;;  %v871_v29 = vld [vmem:[%s3299_s6] sm:$0xff] }
 0x1ae   : > { %913 = vmatprep.subr.mxu1 %v892_v20  ;;  %v792_v56 = vadd.f32 %v784_v37, %v763_v45  ;;  %v765_v57 = vadd.f32 %v757_v46, %v735_v8  ;;  %v766_v58 = vadd.f32 %v758_v48, %v736_v27  ;;  %v737_v60 = vmul.f32 %v2704_v2, %v2649_v51  ;;  %v881_v51 = vld [vmem:[%s3299_s6 + $0x50] sm:$0xff] }
 0x1af   : > { %914 = vmatpush1.msra.mxu1 %v891_v21  ;;  %v790_v50 = vadd.f32 %v782_v33, %v761_v40  ;;  %v791_v52 = vadd.f32 %v783_v17, %v762_v41  ;;  %v793_v4 = vadd.f32 %v785_v34, %v764_v53  ;;  %v759_v5 = vmul.f32 %v2709_v6, %v2651_v55 }
 0x1b0   : > { %915 = vmatprep.subr.mxu1 %v890_v1  ;;  %v2791_v7 = vadd.f32 %v2758_v44, %v792_v56  ;;  %v794_v10 = vadd.f32 %v786_v43, %v765_v57  ;;  %v795_v15 = vadd.f32 %v787_v54, %v766_v58  ;;  %v788_v20 = vmul.f32 %v2727_v16, %v2653_v59  ;;  %v878_v1 = vld [vmem:[%s3299_s6 + $0x38] sm:$0xff] }
 0x1b1   : > { %916 = vmatpush1.msra.mxu1 %v889_v22  ;;  %v2780_v62 = vadd.f32 %v2758_v44, %v790_v50  ;;  %v2783_v3 = vadd.f32 %v2758_v44, %v791_v52  ;;  %v2799_v14 = vadd.f32 %v2758_v44, %v793_v4  ;;  %v767_v19 = vadd.f32 %v759_v5, %v737_v60 }
 0x1b2   : > { %917 = vmatprep.subr.mxu1 %v888_v9  ;;  %v1968_v0 = vmul.f32 -1.442695, %v2791_v7  ;;  %v738_v21 = vmul.f32 %v2704_v2, %v2651_v55  ;;  %v2814_v23 = vadd.f32 %v2758_v44, %v794_v10  ;;  %v760_v24 = vmul.f32 %v2709_v6, %v2653_v59  ;;  %v876_v55 = vld [vmem:[%s3299_s6 + $0x28] sm:$0xff]  ;;  %v875_v2 = vld [vmem:[%s3299_s6 + $0x20] sm:$0xff]  ;;  %v874_v6 = vld [vmem:[%s3299_s6 + $0x18] sm:$0xff] }
 0x1b3   : > { %918 = vmatpush1.msra.mxu1 %v887_v32  ;;  %v1966_v12 = vmul.f32 -1.442695, %v2780_v62  ;;  %v1967_v13 = vmul.f32 -1.442695, %v2783_v3  ;;  %v1969_v22 = vmul.f32 -1.442695, %v2799_v14  ;;  %v796_v26 = vadd.f32 %v788_v20, %v767_v19 }
 0x1b4   : > { %919 = vmatprep.subr.mxu1 %v886_v38  ;;  %v768_v8 = vadd.f32 %v760_v24, %v738_v21  ;;  %v789_v59 = vmul.f32 %v2727_v16, %v2655_v63  ;;  %v1970_v27 = vmul.f32 -1.442695, %v2814_v23  ;;  %v2834_v9 = vadd.f32 %v2758_v44, %v795_v15  ;;  %v872_v63 = vld [vmem:[%s3299_s6 + $0x8] sm:$0xff] }
 0x1b5   : > { %920 = vmatpush1.msra.mxu1 %v885_v39  ;;  %2169 = vpow2.f32 %v1966_v12  ;;  %v811_v16 = vadd.f32 %v2758_v44, %v796_v26  ;;  %v1974_v12 = vld [vmem:[%s3300_s7] ss:$0 sm:$0xff] }
 0x1b6   : > { %921 = vmatprep.subr.mxu1 %v884_v49  ;;  %2171 = vpow2.f32 %v1967_v13  ;;  %v797_v30 = vadd.f32 %v789_v59, %v768_v8  ;;  %v1971_v31 = vmul.f32 -1.442695, %v2834_v9 }
 0x1b7   : > { %922 = vmatpush1.msra.mxu1 %v883_v47  ;;  %2173 = vpow2.f32 %v1968_v0  ;;  %v1972_v32 = vmul.f32 -1.442695, %v811_v16 }
 0x1b8   : > { %923 = vmatprep.subr.mxu1 %v882_v61  ;;  %2175 = vpow2.f32 %v1969_v22  ;;  %v812_v33 = vadd.f32 %v2758_v44, %v797_v30 }
 0x1b9   : > { %924 = vmatpush1.msra.mxu1 %v881_v51  ;;  %2177 = vpow2.f32 %v1970_v27 }
 0x1ba   : > { %925 = vmatprep.subr.mxu1 %v880_v11  ;;  %2179 = vpow2.f32 %v1971_v31  ;;  %v1973_v41 = vmul.f32 -1.442695, %v812_v33 }
 0x1bb   : > { %926 = vmatpush1.msra.mxu1 %v879_v18  ;;  %2181 = vpow2.f32 %v1972_v32 }
 0x1bc   : > { %927 = vmatprep.subr.mxu1 %v878_v1 }
 0x1bd   : > { %928 = vmatpush1.msra.mxu1 %v877_v25 }
 0x1be   : > { %929 = vmatprep.subr.mxu1 %v876_v55 }
 0x1bf   : > { %930 = vmatpush1.msra.mxu1 %v875_v2 }
 0x1c0   : > { %931 = vmatprep.subr.mxu1 %v874_v6 }
 0x1c1   : > { %932 = vmatpush1.msra.mxu1 %v873_v28 }
 0x1c2   : > { %933 = vmatprep.subr.mxu1 %v872_v63  ;;  %v2170_v17 = vpop.eup %2169 }
 0x1c3   : > { %934 = vmatpush1.msra.mxu1 %v871_v29  ;;  %v2172_v35 = vpop.eup %2171  ;;  %v839_v37 = vadd.f32 1.0, %v2170_v17 }
 0x1c4   : > { %v2174_v38 = vpop.eup %2173  ;;  %v840_v40 = vadd.f32 1.0, %v2172_v35 }
 0x1c5   : > { %2183 = vrcp.f32 %v839_v37  ;;  %v841_v42 = vadd.f32 1.0, %v2174_v38  ;;  %v2176_v34 = vpop.eup %2175 }
 0x1c6   : > { %2185 = vrcp.f32 %v840_v40  ;;  %v842_v39 = vadd.f32 1.0, %v2176_v34  ;;  %v2178_v45 = vpop.eup %2177 }
 0x1c7   : > { %2187 = vpow2.f32 %v1973_v41  ;;  %v843_v46 = vadd.f32 1.0, %v2178_v45  ;;  %v2180_v43 = vpop.eup %2179 }
 0x1c8   : > { %2189 = vrcp.f32 %v841_v42  ;;  %v2182_v44 = vpop.eup %2181  ;;  %v844_v48 = vadd.f32 1.0, %v2180_v43 }
 0x1c9   : > { %2191 = vrcp.f32 %v842_v39  ;;  %v845_v47 = vadd.f32 1.0, %v2182_v44 }
 0x1ca   : > { %2193 = vrcp.f32 %v843_v46 }
 0x1cb   : > { %2195 = vrcp.f32 %v844_v48 }
 0x1cc   : > { %2197 = vrcp.f32 %v845_v47 }
 0x1d2   : > { %v2184_v49 = vpop.eup %2183 }
 0x1d3   : > { %v2186_v50 = vpop.eup %2185  ;;  %v2849_v52 = vmul.f32 %v2184_v49, %v2780_v62 }
 0x1d4   : > { %v2188_v53 = vpop.eup %2187  ;;  %v2853_v54 = vmul.f32 %v2186_v50, %v2783_v3 }
 0x1d5   : > { %968 = vmatmul.mubr.f32.vlgmr.msra.gmra.mxu1 %v2849_v52  ;;  %v2190_v56 = vpop.eup %2189  ;;  %v846_v58 = vadd.f32 1.0, %v2188_v53 }
 0x1d6   : > { %973 = vmatprep.mubr.f32.mxu1 %v2378_v36  ;;  %v2858_v57 = vmul.f32 %v2190_v56, %v2791_v7  ;;  %v2192_v60 = vpop.eup %2191 }
 0x1d7   : > { %v2863_v61 = vmul.f32 %v2192_v60, %v2799_v14  ;;  %2199 = vrcp.f32 %v846_v58  ;;  %v2194_v62 = vpop.eup %2193 }
 0x1d8   : > { %v2868_v3 = vmul.f32 %v2194_v62, %v2814_v23  ;;  %v2196_v4 = vpop.eup %2195 }
 0x1d9   : > { %974 = vmatmul.mubr.f32.gmra.mxu1 %v2853_v54  ;;  %v2873_v5 = vmul.f32 %v2196_v4, %v2834_v9  ;;  %v2198_v51 = vpop.eup %2197 }
 0x1da   : > { %979 = vmatprep.mubr.f32.mxu1 %v2378_v36  ;;  %v2877_v7 = vmul.f32 %v2198_v51, %v811_v16 }
 0x1dd   : > { %980 = vmatmul.mubr.f32.gmra.mxu1 %v2858_v57 }
 0x1de   : > { %985 = vmatprep.mubr.f32.mxu1 %v2378_v36 }
 0x1e1   : > { %986 = vmatmul.mubr.f32.gmra.mxu1 %v2863_v61 }
 0x1e2   : > { %991 = vmatprep.mubr.f32.mxu1 %v2378_v36 }
 0x1e4   : > { %v2200_v10 = vpop.eup %2199 }
 0x1e5   : > { %992 = vmatmul.mubr.f32.gmra.mxu1 %v2868_v3  ;;  %v2881_v11 = vmul.f32 %v2200_v10, %v812_v33 }
 0x1e6   : > { %997 = vmatprep.mubr.f32.mxu1 %v2378_v36 }
 0x1e9   : > { %998 = vmatmul.mubr.f32.gmra.mxu1 %v2873_v5 }
 0x1ea   : > { %1003 = vmatprep.mubr.f32.mxu1 %v2378_v36 }
 0x1ed   : > { %1004 = vmatmul.mubr.f32.gmra.mxu1 %v2877_v7 }
 0x1ee   : > { %1009 = vmatprep.mubr.f32.mxu1 %v2378_v36 }
 0x1f1   : > { %1010 = vmatmul.mubr.f32.gmra.mxu1 %v2881_v11 }
 0x295   : > { %v969_v13 = vpop.f32.mrf.mxu1 }
 0x296   : > { %v2888_v14 = vadd.f32 %v1974_v12, %v969_v13 }
 0x297   : > { %v971_v15 = vpop.f32.mrf.mxu1 }
 0x298   : > { %v1055_v18 = vand.u32 2147483647, %v2888_v14  ;;  %1199 = vst [vmem:[#allocation6] sm:$0xff] %v971_v15  ;;  %vm1039_vm2 = vcmp.ne.f32.partialorder %v2888_v14, %v2888_v14 }
 0x299   : > { %v975_v0 = vpop.f32.mrf.mxu1 }
 0x29a   : > { %v1063_v19 = vsub.f32 0.0, %v1055_v18  ;;  %v2891_v20 = vadd.f32 %v1974_v12, %v975_v0 }
 0x29b   : > { %v977_v21 = vpop.f32.mrf.mxu1 }
 0x29c   : > { %v1071_v1 = vmul.f32 1.442695, %v1063_v19  ;;  %v1056_v36 = vand.u32 2147483647, %v2891_v20  ;;  %1200 = vst [vmem:[#allocation6 + $0x8] sm:$0xff] %v977_v21  ;;  %vm1040_vm4 = vcmp.ne.f32.partialorder %v2891_v20, %v2891_v20 }
 0x29d   : > { %v981_v22 = vpop.f32.mrf.mxu1 }
 0x29e   : > { %2201 = vpow2.f32 %v1071_v1  ;;  %v1064_v23 = vsub.f32 0.0, %v1056_v36  ;;  %v2894_v24 = vadd.f32 %v1974_v12, %v981_v22 }
 0x29f   : > { %v983_v25 = vpop.f32.mrf.mxu1 }
 0x2a0   : > { %v1073_v55 = vmul.f32 1.442695, %v1064_v23  ;;  %v1057_v2 = vand.u32 2147483647, %v2894_v24  ;;  %1201 = vst [vmem:[#allocation6 + $0x10] sm:$0xff] %v983_v25  ;;  %v1031_v25 = vmax.f32 %v2888_v14, 0.0  ;;  %vm1041_vm6 = vcmp.ne.f32.partialorder %v2894_v24, %v2894_v24 }
 0x2a1   : > { %v987_v26 = vpop.f32.mrf.mxu1 }
 0x2a2   : > { %2203 = vpow2.f32 %v1073_v55  ;;  %v1065_v8 = vsub.f32 0.0, %v1057_v2  ;;  %v2897_v59 = vadd.f32 %v1974_v12, %v987_v26 }
 0x2a3   : > { %v989_v6 = vpop.f32.mrf.mxu1 }
 0x2a4   : > { %v1075_v27 = vmul.f32 1.442695, %v1065_v8  ;;  %v1058_v9 = vand.u32 2147483647, %v2897_v59  ;;  %1202 = vst [vmem:[#allocation6 + $0x18] sm:$0xff] %v989_v6  ;;  %vm1042_vm8 = vcmp.ne.f32.partialorder %v2897_v59, %v2897_v59 }
 0x2a5   : > { %v993_v28 = vpop.f32.mrf.mxu1 }
 0x2a6   : > { %2205 = vpow2.f32 %v1075_v27  ;;  %v1066_v63 = vsub.f32 0.0, %v1058_v9  ;;  %v2900_v29 = vadd.f32 %v1974_v12, %v993_v28  ;;  %v1032_v27 = vmax.f32 %v2891_v20, 0.0 }
 0x2a7   : > { %v995_v16 = vpop.f32.mrf.mxu1 }
 0x2a8   : > { %v1077_v30 = vmul.f32 1.442695, %v1066_v63  ;;  %v1059_v31 = vand.u32 2147483647, %v2900_v29  ;;  %1203 = vst [vmem:[#allocation6 + $0x20] sm:$0xff] %v995_v16  ;;  %vm1043_vm10 = vcmp.ne.f32.partialorder %v2900_v29, %v2900_v29 }
 0x2a9   : > { %v999_v32 = vpop.f32.mrf.mxu1 }
 0x2aa   : > { %2207 = vpow2.f32 %v1077_v30  ;;  %v1067_v33 = vsub.f32 0.0, %v1059_v31  ;;  %v2903_v17 = vadd.f32 %v1974_v12, %v999_v32 }
 0x2ab   : > { %v2202_v35 = vpop.eup %2201  ;;  %v1001_v37 = vpop.f32.mrf.mxu1 }
 0x2ac   : > { %v1087_v38 = vadd.f32 1.0, %v2202_v35  ;;  %v1079_v40 = vmul.f32 1.442695, %v1067_v33  ;;  %1204 = vst [vmem:[#allocation6 + $0x28] sm:$0xff] %v1001_v37  ;;  %v1060_v41 = vand.u32 2147483647, %v2903_v17  ;;  %vm1044_vm12 = vcmp.ne.f32.partialorder %v2903_v17, %v2903_v17 }
 0x2ad   : > { %v1005_v42 = vpop.f32.mrf.mxu1  ;;  %v1090_v58 = vmul.f32 -0.5, %v2202_v35  ;;  %v1093_v18 = vand.u32 2147483647, %v2202_v35 }
 0x2ae   : > { %2209 = vlog2.f32 %v1087_v38  ;;  %v2906_v34 = vadd.f32 %v1974_v12, %v1005_v42  ;;  %v1068_v45 = vsub.f32 0.0, %v1060_v41  ;;  %v1033_v41 = vmax.f32 %v2894_v24, 0.0 }
 0x2af   : > { %v2204_v39 = vpop.eup %2203  ;;  %2211 = vpow2.f32 %v1079_v40  ;;  %v1007_v46 = vpop.f32.mrf.mxu1  ;;  %v1091_v13 = vadd.f32 1.0, %v1090_v58  ;;  %vm1094_vm1 = vcmp.lt.f32.partialorder %v1093_v18, 0.0004427343 }
 0x2b0   : > { %v1096_v43 = vadd.f32 1.0, %v2204_v39  ;;  %1205 = vst [vmem:[#allocation6 + $0x30] sm:$0xff] %v1007_v46  ;;  %v1081_v44 = vmul.f32 1.442695, %v1068_v45  ;;  %v1061_v48 = vand.u32 2147483647, %v2906_v34  ;;  %vm1045_vm14 = vcmp.ne.f32.partialorder %v2906_v34, %v2906_v34 }
 0x2b1   : > { %v1011_v49 = vpop.f32.mrf.mxu1  ;;  %v1099_v15 = vmul.f32 -0.5, %v2204_v39  ;;  %v1092_v36 = vmul.f32 %v2202_v35, %v1091_v13  ;;  %v1102_v55 = vand.u32 2147483647, %v2204_v39 }
 0x2b2   : > { %2213 = vlog2.f32 %v1096_v43  ;;  %v2909_v50 = vadd.f32 %v1974_v12, %v1011_v49  ;;  %v1069_v47 = vsub.f32 0.0, %v1061_v48 }
 0x2b3   : > { %v2206_v53 = vpop.eup %2205  ;;  %2215 = vpow2.f32 %v1081_v44  ;;  %v1013_v56 = vpop.f32.mrf.mxu1  ;;  %v1100_v22 = vadd.f32 1.0, %v1099_v15  ;;  %vm1103_vm3 = vcmp.lt.f32.partialorder %v1102_v55, 0.0004427343 }
 0x2b4   : > { %v1105_v60 = vadd.f32 1.0, %v2206_v53  ;;  %1206 = vst [vmem:[#allocation6 + $0x38] sm:$0xff] %v1013_v56  ;;  %v1083_v62 = vmul.f32 1.442695, %v1069_v47  ;;  %v1062_v4 = vand.u32 2147483647, %v2909_v50 }
 0x2b5   : > { %v1108_v23 = vmul.f32 -0.5, %v2206_v53  ;;  %v1101_v63 = vmul.f32 %v2204_v39, %v1100_v22  ;;  %v1111_v32 = vand.u32 2147483647, %v2206_v53  ;;  %v1035_v22 = vmax.f32 %v2900_v29, 0.0 }
 0x2b6   : > { %2217 = vlog2.f32 %v1105_v60  ;;  %v1070_v10 = vsub.f32 0.0, %v1062_v4 }
 0x2b7   : > { %v2912_v51 = vpop.eup %2207  ;;  %2219 = vpow2.f32 %v1083_v62  ;;  %v1109_v16 = vadd.f32 1.0, %v1108_v23  ;;  %vm1112_vm5 = vcmp.lt.f32.partialorder %v1111_v32, 0.0004427343 }
 0x2b8   : > { %v1114_v12 = vadd.f32 1.0, %v2912_v51  ;;  %v1085_v0 = vmul.f32 1.442695, %v1070_v10  ;;  %v1117_v30 = vmul.f32 -0.5, %v2912_v51 }
 0x2b9   : > { %v1110_v39 = vmul.f32 %v2206_v53, %v1109_v16 }
 0x2ba   : > { %2221 = vlog2.f32 %v1114_v12  ;;  %v1118_v45 = vadd.f32 1.0, %v1117_v30 }
 0x2bb   : > { %v2210_v19 = vpop.eup %2209  ;;  %2223 = vpow2.f32 %v1085_v0 }
 0x2bc   : > { %v2915_v21 = vpop.eup %2211  ;;  %v1089_v1 = vmul.f32 0.6931472, %v2210_v19  ;;  %v1119_v60 = vmul.f32 %v2912_v51, %v1118_v45 }
 0x2bd   : > { %v1123_v2 = vadd.f32 1.0, %v2915_v21  ;;  %v1126_v46 = vmul.f32 -0.5, %v2915_v21  ;;  %v1129_v12 = vand.u32 2147483647, %v2915_v21 }
 0x2be   : > { %v1095_v26 = vsel %vm1094_vm1, %v1092_v36, %v1089_v1  ;;  %vm1046_vm1 = vcmp.ne.f32.partialorder %v2909_v50, %v2909_v50 }
 0x2bf   : > { %v2214_v8 = vpop.eup %2213  ;;  %v1159_v6 = vadd.f32 %v1095_v26, %v1031_v25  ;;  %2225 = vlog2.f32 %v1123_v2  ;;  %v1127_v62 = vadd.f32 1.0, %v1126_v46  ;;  %vm1130_vm9 = vcmp.lt.f32.partialorder %v1129_v12, 0.0004427343 }
 0x2c0   : > { %v2922_v9 = vpop.eup %2215  ;;  %v1098_v28 = vmul.f32 0.6931472, %v2214_v8 }
 0x2c1   : > { %v1167_v31 = vsel %vm1039_vm2, %v2888_v14, %v1159_v6  ;;  %v1132_v33 = vadd.f32 1.0, %v2922_v9  ;;  %v1138_v23 = vand.u32 2147483647, %v2922_v9  ;;  %v1036_v6 = vmax.f32 %v2903_v17, 0.0 }
 0x2c2   : > { %1175 = vst [vmem:[#allocation4] sm:$0xff] %v1167_v31  ;;  %v1183_v35 = vmul.f32 %v1167_v31, %v2849_v52  ;;  %v1104_v37 = vsel %vm1103_vm3, %v1101_v63, %v1098_v28  ;;  %v1120_v52 = vand.u32 2147483647, %v2912_v51 }
 0x2c3   : > { %v2218_v38 = vpop.eup %2217  ;;  %v1160_v40 = vadd.f32 %v1104_v37, %v1032_v27  ;;  %2227 = vlog2.f32 %v1132_v33  ;;  %vm1139_vm11 = vcmp.lt.f32.partialorder %v1138_v23, 0.0004427343  ;;  %v1037_v33 = vmax.f32 %v2906_v34, 0.0 }
 0x2c4   : > { %v2931_v42 = vpop.eup %2219  ;;  %1191 = vst [vmem:[#allocation5] sm:$0xff] %v1183_v35  ;;  %v1107_v14 = vmul.f32 0.6931472, %v2218_v38  ;;  %vm1121_vm7 = vcmp.lt.f32.partialorder %v1120_v52, 0.0004427343 }
 0x2c5   : > { %v1168_v43 = vsel %vm1040_vm4, %v2891_v20, %v1160_v40  ;;  %v1141_v44 = vadd.f32 1.0, %v2931_v42  ;;  %v1034_v20 = vmax.f32 %v2897_v59, 0.0  ;;  %v1144_v36 = vmul.f32 -0.5, %v2931_v42 }
 0x2c6   : > { %1176 = vst [vmem:[#allocation4 + $0x8] sm:$0xff] %v1168_v43  ;;  %v1184_v48 = vmul.f32 %v1168_v43, %v2853_v54  ;;  %v1113_v49 = vsel %vm1112_vm5, %v1110_v39, %v1107_v14  ;;  %v1135_v54 = vmul.f32 -0.5, %v2922_v9  ;;  %v1147_v27 = vand.u32 2147483647, %v2931_v42 }
 0x2c7   : > { %v2222_v47 = vpop.eup %2221  ;;  %v1161_v56 = vadd.f32 %v1113_v49, %v1033_v41  ;;  %2229 = vlog2.f32 %v1141_v44  ;;  %v1145_v26 = vadd.f32 1.0, %v1144_v36  ;;  %v1038_v14 = vmax.f32 %v2909_v50, 0.0 }
 0x2c8   : > { %v2940_v53 = vpop.eup %2223  ;;  %1192 = vst [vmem:[#allocation5 + $0x8] sm:$0xff] %v1184_v48  ;;  %v1116_v58 = vmul.f32 0.6931472, %v2222_v47  ;;  %v1136_v1 = vadd.f32 1.0, %v1135_v54  ;;  %vm1148_vm13 = vcmp.lt.f32.partialorder %v1147_v27, 0.0004427343 }
 0x2c9   : > { %v1169_v4 = vsel %vm1041_vm6, %v2894_v24, %v1161_v56  ;;  %v1150_v10 = vadd.f32 1.0, %v2940_v53  ;;  %v1128_v24 = vmul.f32 %v2915_v21, %v1127_v62  ;;  %v1153_v8 = vmul.f32 -0.5, %v2940_v53 }
 0x2ca   : > { %1177 = vst [vmem:[#allocation4 + $0x10] sm:$0xff] %v1169_v4  ;;  %v1185_v13 = vmul.f32 %v1169_v4, %v2858_v57  ;;  %v1122_v15 = vsel %vm1121_vm7, %v1119_v60, %v1116_v58  ;;  %v1137_v2 = vmul.f32 %v2922_v9, %v1136_v1  ;;  %v1146_v31 = vmul.f32 %v2931_v42, %v1145_v26 }
 0x2cb   : > { %v1162_v18 = vadd.f32 %v1122_v15, %v1034_v20  ;;  %2231 = vlog2.f32 %v1150_v10  ;;  %v1154_v32 = vadd.f32 1.0, %v1153_v8  ;;  %v1156_v35 = vand.u32 2147483647, %v2940_v53 }
 0x2cc   : > { %v2226_v0 = vpop.eup %2225  ;;  %1193 = vst [vmem:[#allocation5 + $0x10] sm:$0xff] %v1185_v13 }
 0x2cd   : > { %v1170_v51 = vsel %vm1042_vm8, %v2897_v59, %v1162_v18  ;;  %v1125_v19 = vmul.f32 0.6931472, %v2226_v0  ;;  %v1155_v42 = vmul.f32 %v2940_v53, %v1154_v32  ;;  %vm1157_vm15 = vcmp.lt.f32.partialorder %v1156_v35, 0.0004427343 }
 0x2ce   : > { %1178 = vst [vmem:[#allocation4 + $0x18] sm:$0xff] %v1170_v51  ;;  %v1186_v57 = vmul.f32 %v1170_v51, %v2863_v61 }
 0x2cf   : > { %v1131_v25 = vsel %vm1130_vm9, %v1128_v24, %v1125_v19 }
 0x2d0   : > { %v2228_v55 = vpop.eup %2227  ;;  %1194 = vst [vmem:[#allocation5 + $0x18] sm:$0xff] %v1186_v57  ;;  %v1163_v21 = vadd.f32 %v1131_v25, %v1035_v22 }
 0x2d1   : > { %v1134_v59 = vmul.f32 0.6931472, %v2228_v55 }
 0x2d2   : > { %v1171_v61 = vsel %vm1043_vm10, %v2900_v29, %v1163_v21 }
 0x2d3   : > { %1179 = vst [vmem:[#allocation4 + $0x20] sm:$0xff] %v1171_v61  ;;  %v1187_v28 = vmul.f32 %v1171_v61, %v2868_v3  ;;  %v1140_v63 = vsel %vm1139_vm11, %v1137_v2, %v1134_v59 }
 0x2d4   : > { %v2230_v16 = vpop.eup %2229  ;;  %v1164_v30 = vadd.f32 %v1140_v63, %v1036_v6 }
 0x2d5   : > { %1195 = vst [vmem:[#allocation5 + $0x20] sm:$0xff] %v1187_v28  ;;  %v1143_v9 = vmul.f32 0.6931472, %v2230_v16 }
 0x2d6   : > { %v1172_v29 = vsel %vm1044_vm12, %v2903_v17, %v1164_v30 }
 0x2d7   : > { %1180 = vst [vmem:[#allocation4 + $0x28] sm:$0xff] %v1172_v29  ;;  %v1188_v3 = vmul.f32 %v1172_v29, %v2873_v5  ;;  %v1149_v37 = vsel %vm1148_vm13, %v1146_v31, %v1143_v9 }
 0x2d8   : > { %v2232_v38 = vpop.eup %2231  ;;  %v1165_v40 = vadd.f32 %v1149_v37, %v1037_v33 }
 0x2d9   : > { %1196 = vst [vmem:[#allocation5 + $0x28] sm:$0xff] %v1188_v3  ;;  %v1152_v41 = vmul.f32 0.6931472, %v2232_v38 }
 0x2da   : > { %v1173_v17 = vsel %vm1045_vm14, %v2906_v34, %v1165_v40 }
 0x2db   : > { %1181 = vst [vmem:[#allocation4 + $0x30] sm:$0xff] %v1173_v17  ;;  %v1189_v39 = vmul.f32 %v1173_v17, %v2877_v7  ;;  %v1158_v45 = vsel %vm1157_vm15, %v1155_v42, %v1152_v41 }
 0x2dc   : > { %v1166_v5 = vadd.f32 %v1158_v45, %v1038_v14 }
 0x2dd   : > { %1197 = vst [vmem:[#allocation5 + $0x30] sm:$0xff] %v1189_v39 }
 0x2de   : > { %v1174_v46 = vsel %vm1046_vm1, %v2909_v50, %v1166_v5 }
 0x2df   : > { %1182 = vst [vmem:[#allocation4 + $0x38] sm:$0xff] %v1174_v46  ;;  %v1190_v43 = vmul.f32 %v1174_v46, %v2881_v11 }
 0x2e1   : > { %1198 = vst [vmem:[#allocation5 + $0x38] sm:$0xff] %v1190_v43 }
 0x2e2 LB: >> { %v2380_v7 = vmov 1   ;;  %v2381_v34 = vmov 0   ;;  %s2988_s26 = sshll.u32 %s2376_s25, 3  ;;  %v2382_v11 = vmov 17   ;;  %v2383_v52 = vmov 16   ;;  %v1253_v38 = vld [vmem:[#allocation2] sm:$0xff]  ;;  %s2376_s25 = sphi %s2982_s25, %s1212_s25  }
 0x2e3   : >> { %2235 = vset.pattern.permute.xlu1 %v2380_v7  ;;  %2233 = vset.pattern.permute.xlu0 %v2381_v34  ;;  %s1214_s27 = scalar_lea.vmem [#allocation6], %s2988_s26  ;;  %v2384_v44 = vmov 2   ;;  %v2385_v48 = vmov 18   ;;  %v2386_v49 = vmov 3   ;;  %v2387_v47 = vmov 4   ;;  %s1216_s28 = scalar_lea.vmem [#allocation4], %s2988_s26 }
 0x2e4   : >> { %v2991_v50 = vld [vmem:[%s1214_s27] sm:$0xff]  ;;  %v2388_v56 = vmov 19   ;;  %v2389_v53 = vmov 6   ;;  %v2390_v20 = vmov 20   ;;  %v2391_v58 = vmov 22   ;;  %v1228_v40 = vld [vmem:[#allocation2 + $0x30] sm:$0xff] }
 0x2e5   : >> { %1256 = vperm.xlu1 %2235, %v2991_v50   ;;  %1232 = vperm.xlu0 %2233, %v2991_v50   ;;  %v2392_v60 = vmov 5   ;;  %v2393_v62 = vmov 9   ;;  %v2394_v4 = vmov 21   ;;  %v2395_v54 = vmov 25   ;;  %v1977_v59 = vld [vmem:[%s3301_s8 + $0x1] ss:$0 sm:$0xff] }
 0x2e6   : >> { %v2396_v10 = vmov 7   ;;  %v2397_v13 = vmov 12   ;;  %v2398_v15 = vmov 8   ;;  %v2399_v12 = vmov 28   ;;  %v3024_v21 = vld [vmem:[%s1216_s28] sm:$0xff]  ;;  %s1218_s13 = scalar_lea.vmem [#allocation5], %s2988_s26 }
 0x2e7   : >> { %v2400_v18 = vmov 23   ;;  %v2401_v0 = vmov 15   ;;  %v2402_v24 = vmov 24   ;;  %v2403_v51 = vmov 31   ;;  %v1976_v2 = vld [vmem:[%s3301_s8] ss:$0 sm:$0xff] }
 0x2e8   : >> { %v2404_v19 = vmov 10   ;;  %v2405_v1 = vmov 11   ;;  %v2406_v36 = vmov 26   ;;  %v2407_v57 = vmov 27   ;;  %v1978_v27 = vld [vmem:[%s3301_s8 + $0x2] ss:$0 sm:$0xff] }
 0x2e9   : >> { %2236 = vset.pattern.permute.xlu1 %v2382_v11  ;;  %2234 = vset.pattern.permute.xlu0 %v2383_v52  ;;  %v2408_v22 = vmov 13   ;;  %v2409_v23 = vmov 14   ;;  %v2410_v25 = vmov 29   ;;  %v2411_v55 = vmov 30   ;;  %v1979_v63 = vld [vmem:[%s3301_s8 + $0x3] ss:$0 sm:$0xff] }
 0x2ea   : >> { %1263 = vperm.xlu1 %2236, %v2991_v50   ;;  %1239 = vperm.xlu0 %2234, %v2991_v50   ;;  %v1249_v26 = vmul.f32 %v1977_v59, %v3024_v21  ;;  %v1225_v8 = vmul.f32 %v1976_v2, %v3024_v21  ;;  %v1273_v28 = vmul.f32 %v1978_v27, %v3024_v21  ;;  %v1980_v16 = vld [vmem:[%s3301_s8 + $0x4] ss:$0 sm:$0xff]  ;;  %v1982_v32 = vld [vmem:[%s3301_s8 + $0x6] ss:$0 sm:$0xff]  ;;  %v1981_v43 = vld [vmem:[%s3301_s8 + $0x5] ss:$0 sm:$0xff] }
 0x2eb   : >> { %v1297_v9 = vmul.f32 %v1979_v63, %v3024_v21  ;;  %v1321_v31 = vmul.f32 %v1980_v16, %v3024_v21  ;;  %v1369_v3 = vmul.f32 %v1982_v32, %v3024_v21  ;;  %v3053_v41 = vld [vmem:[%s1218_s13] sm:$0xff]  ;;  %v1985_v7 = vld [vmem:[%s3301_s8 + $0x9] ss:$0 sm:$0xff]  ;;  %v1345_v11 = vmul.f32 %v1981_v43, %v3024_v21  ;;  %s1604_s15 = scalar_lea.vmem [#allocation7], %s2988_s26  ;;  %s1212_s25 = sadd.s32 1, %s2376_s25  }
 0x2ec   : >> { %v1250_v61 = vmul.f32 1.442695, %v1249_v26  ;;  %v1226_v6 = vmul.f32 1.442695, %v1225_v8  ;;  %v1274_v30 = vmul.f32 1.442695, %v1273_v28 }
 0x2ed   : >> { %v1298_v29 = vmul.f32 1.442695, %v1297_v9  ;;  %v1322_v33 = vmul.f32 1.442695, %v1321_v31  ;;  %v1370_v14 = vmul.f32 1.442695, %v1369_v3 }
 0x2ee   : >> { %2237 = vset.pattern.permute.xlu1 %v2384_v44  ;;  %2238 = vset.pattern.permute.xlu0 %v2385_v48  ;;  %2266 = vpow2.f32 %v1250_v61  ;;  %v1441_v48 = vmul.f32 %v1985_v7, %v3024_v21  ;;  %v1373_v2 = vld [vmem:[#allocation2 + $0x8] sm:$0xff]  ;;  %p1209_p8 = scmp.ge.s32.totalorder %s1212_s25, 8  }
 0x2ef   : >> { %1280 = vperm.xlu1 %2237, %v2991_v50   ;;  %1287 = vperm.xlu0 %2238, %v2991_v50   ;;  %2268 = vpow2.f32 %v1226_v6  ;;  %v1984_v26 = vld [vmem:[%s3301_s8 + $0x8] ss:$0 sm:$0xff]  ;;  %v1991_v31 = vld [vmem:[%s3301_s8 + $0xf] ss:$0 sm:$0xff]  ;;  %v1986_v7 = vld [vmem:[%s3301_s8 + $0xa] ss:$0 sm:$0xff] }
 0x2f0   : >> { %2270 = vpow2.f32 %v1274_v30  ;;  %v1417_v30 = vmul.f32 %v1984_v26, %v3024_v21  ;;  %v1585_v3 = vmul.f32 %v1991_v31, %v3024_v21 }
 0x2f1   : >> { %2272 = vpow2.f32 %v1298_v29 }
 0x2f2   : >> { %2274 = vpow2.f32 %v1322_v33  ;;  %v1418_v29 = vmul.f32 1.442695, %v1417_v30 }
 0x2f3   : >> { %2239 = vset.pattern.permute.xlu1 %v2386_v49  ;;  %2241 = vset.pattern.permute.xlu0 %v2387_v47  ;;  %2276 = vpow2.f32 %v1370_v14 }
 0x2f4   : >> { %1304 = vperm.xlu1 %2239, %v2991_v50   ;;  %1328 = vperm.xlu0 %2241, %v2991_v50  }
 0x2f8   : >> { %2240 = vset.pattern.permute.xlu1 %v2388_v56  ;;  %2244 = vset.pattern.permute.xlu0 %v2389_v53  ;;  %v1277_v53 = vld [vmem:[#allocation2 + $0x58] sm:$0xff] }
 0x2f9   : >> { %1311 = vperm.xlu1 %2240, %v2991_v50   ;;  %1376 = vperm.xlu0 %2244, %v2991_v50  }
 0x2fb   : >> { %v2267_v35 = vpop.eup %2266 }
 0x2fc   : >> { %v2269_v37 = vpop.eup %2268  ;;  %v1254_v42 = vmul.f32 %v2267_v35, %v1253_v38  ;;  %v1349_v38 = vld [vmem:[#allocation2 + $0x68] sm:$0xff] }
 0x2fd   : >> { %2242 = vset.pattern.permute.xlu1 %v2390_v20  ;;  %2247 = vset.pattern.permute.xlu0 %v2391_v58  ;;  %v1229_v17 = vmul.f32 %v2269_v37, %v1228_v40  ;;  %v2271_v49 = vpop.eup %2270  ;;  %v1346_v58 = vmul.f32 1.442695, %v1345_v11 }
 0x2fe   : >> { %1335 = vperm.xlu1 %2242, %v2991_v50   ;;  %1383 = vperm.xlu0 %2247, %v2991_v50  }
 0x2ff   : >> { %2278 = vpow2.f32 %v1346_v58 }
 0x302   : >> { %2243 = vset.pattern.permute.xlu1 %v2392_v60  ;;  %2250 = vset.pattern.permute.xlu0 %v2393_v62  ;;  %v1278_v60 = vmul.f32 %v2271_v49, %v1277_v53  ;;  %v1442_v62 = vmul.f32 1.442695, %v1441_v48  ;;  %v1397_v49 = vld [vmem:[#allocation2 + $0x48] sm:$0xff] }
 0x303   : >> { %1352 = vperm.xlu1 %2243, %v2991_v50   ;;  %1448 = vperm.xlu0 %2250, %v2991_v50   ;;  %v1987_v53 = vld [vmem:[%s3301_s8 + $0xb] ss:$0 sm:$0xff] }
 0x304   : >> { %2280 = vpow2.f32 %v1442_v62 }
 0x307   : >> { %2245 = vset.pattern.permute.xlu1 %v2394_v4  ;;  %2253 = vset.pattern.permute.xlu0 %v2395_v54  ;;  %v2273_v4 = vpop.eup %2272 }
 0x308   : >> { %1359 = vperm.xlu1 %2245, %v2991_v50   ;;  %1455 = vperm.xlu0 %2253, %v2991_v50  }
 0x30c   : >> { %2246 = vset.pattern.permute.xlu1 %v2396_v10  ;;  %2256 = vset.pattern.permute.xlu0 %v2397_v13  ;;  %v2275_v10 = vpop.eup %2274 }
 0x30d   : >> { %1400 = vperm.xlu1 %2246, %v2991_v50   ;;  %1520 = vperm.xlu0 %2256, %v2991_v50  }
 0x311   : >> { %2248 = vset.pattern.permute.xlu1 %v2398_v15  ;;  %2259 = vset.pattern.permute.xlu0 %v2399_v12  ;;  %v1301_v12 = vld [vmem:[#allocation2 + $0x18] sm:$0xff] }
 0x312   : >> { %1424 = vperm.xlu1 %2248, %v2991_v50   ;;  %1527 = vperm.xlu0 %2259, %v2991_v50  }
 0x316   : >> { %2249 = vset.pattern.permute.xlu1 %v2400_v18  ;;  %2262 = vset.pattern.permute.xlu0 %v2401_v0  ;;  %v1325_v18 = vld [vmem:[#allocation2 + $0x50] sm:$0xff]  ;;  %v1983_v0 = vld [vmem:[%s3301_s8 + $0x7] ss:$0 sm:$0xff] }
 0x317   : >> { %1407 = vperm.xlu1 %2249, %v2991_v50   ;;  %1592 = vperm.xlu0 %2262, %v2991_v50  }
 0x31b   : >> { %2251 = vset.pattern.permute.xlu1 %v2402_v24  ;;  %2265 = vset.pattern.permute.xlu0 %v2403_v51  ;;  %v1988_v24 = vld [vmem:[%s3301_s8 + $0xc] ss:$0 sm:$0xff] }
 0x31c   : >> { %1431 = vperm.xlu1 %2251, %v2991_v50  }
 0x320   : >> { %2252 = vset.pattern.permute.xlu1 %v2404_v19  ;;  %v1302_v19 = vmul.f32 %v2273_v4, %v1301_v12 }
 0x321   : >> { %1472 = vperm.xlu1 %2252, %v2991_v50  }
 0x325   : >> { %2254 = vset.pattern.permute.xlu1 %v2405_v1  ;;  %v1326_v1 = vmul.f32 %v2275_v10, %v1325_v18  ;;  %v1489_v10 = vmul.f32 %v1987_v53, %v3024_v21  ;;  %v1421_v18 = vld [vmem:[#allocation2 + $0x40] sm:$0xff] }
 0x326   : >> { %1496 = vperm.xlu1 %2254, %v2991_v50  }
 0x32a   : >> { %2255 = vset.pattern.permute.xlu1 %v2406_v36  ;;  %v1393_v36 = vmul.f32 %v1983_v0, %v3024_v21 }
 0x32b   : >> { %1479 = vperm.xlu1 %2255, %v2991_v50  }
 0x32c   : >> { %v1394_v6 = vmul.f32 1.442695, %v1393_v36  ;;  %v1490_v36 = vmul.f32 1.442695, %v1489_v10 }
 0x32e   : >> { %2282 = vpow2.f32 %v1394_v6 }
 0x32f   : >> { %2257 = vset.pattern.permute.xlu1 %v2407_v57 }
 0x330   : >> { %1503 = vperm.xlu1 %2257, %v2991_v50  }
 0x334   : >> { %2258 = vset.pattern.permute.xlu1 %v2408_v22 }
 0x335   : >> { %1544 = vperm.xlu1 %2258, %v2991_v50  }
 0x339   : >> { %2260 = vset.pattern.permute.xlu1 %v2409_v23  ;;  %v1513_v23 = vmul.f32 %v1988_v24, %v3024_v21 }
 0x33a   : >> { %1568 = vperm.xlu1 %2260, %v2991_v50  }
 0x33b   : >> { %v1514_v28 = vmul.f32 1.442695, %v1513_v23 }
 0x33d   : >> { %2284 = vpow2.f32 %v1514_v28  ;;  %v1989_v28 = vld [vmem:[%s3301_s8 + $0xd] ss:$0 sm:$0xff] }
 0x33e   : >> { %2261 = vset.pattern.permute.xlu1 %v2410_v25  ;;  %v2277_v25 = vpop.eup %2276  ;;  %2286 = vpow2.f32 %v1418_v29  ;;  %v1469_v29 = vld [vmem:[#allocation2 + $0x10] sm:$0xff] }
 0x33f   : >> { %1551 = vperm.xlu1 %2261, %v2991_v50   ;;  %v1374_v27 = vmul.f32 %v2277_v25, %v1373_v2  ;;  %v2279_v33 = vpop.eup %2278 }
 0x340   : >> { %v2281_v37 = vpop.eup %2280 }
 0x341   : >> { %v2283_v11 = vpop.eup %2282 }
 0x342   : >> { %v1398_v58 = vmul.f32 %v2283_v11, %v1397_v49 }
 0x343   : >> { %2263 = vset.pattern.permute.xlu1 %v2411_v55 }
 0x344   : >> { %1575 = vperm.xlu1 %2263, %v2991_v50  }
 0x348   : >> { %2264 = vset.pattern.permute.xlu1 %v2403_v51 }
 0x349   : >> { %1599 = vperm.xlu1 %2264, %v2991_v50  }
 0x34a   : >> { %v2285_v48 = vpop.eup %2284 }
 0x360   : >> { %v1257_v39 = vpop.permute.xlu1 %1256  ;;  %v1233_v45 = vpop.permute.xlu0 %1232 }
 0x361   : >> { %v1259_v5 = vmul.f32 %v1257_v39, %v3053_v41  ;;  %v1235_v46 = vmul.f32 %v1233_v45, %v3053_v41  ;;  %v1586_v39 = vmul.f32 1.442695, %v1585_v3 }
 0x363   : >> { %v1260_v34 = vadd.f32 %v1259_v5, %v1254_v42  ;;  %v1236_v50 = vadd.f32 %v1235_v46, %v1229_v17  ;;  %v1445_v42 = vld [vmem:[#allocation2 + $0x20] sm:$0xff]  ;;  %v1350_v17 = vmul.f32 %v2279_v33, %v1349_v38  ;;  %2288 = vpow2.f32 %v1586_v39  ;;  %v1990_v33 = vld [vmem:[%s3301_s8 + $0xe] ss:$0 sm:$0xff]  ;;  %v1493_v39 = vld [vmem:[#allocation2 + $0x38] sm:$0xff] }
 0x364   : >> { %v1446_v14 = vmul.f32 %v2281_v37, %v1445_v42  ;;  %v1561_v42 = vmul.f32 %v1990_v33, %v3024_v21  ;;  %v1697_v33 = vld [vmem:[%s3302_s9 + $0x58] sm:$0xff] (%p1209_p8) }
 0x365   : >> { %1261 = vst [vmem:[#allocation2] sm:$0xff] %v1260_v34  ;;  %v1264_v52 = vpop.permute.xlu1 %1263  ;;  %1237 = vst [vmem:[#allocation2 + $0x30] sm:$0xff] %v1236_v50  ;;  %v1240_v44 = vpop.permute.xlu0 %1239 }
 0x366   : >> { %v1266_v47 = vmul.f32 %v1264_v52, %v1260_v34  ;;  %v1242_v56 = vmul.f32 %v1240_v44, %v1236_v50  ;;  %v1465_v44 = vmul.f32 %v1986_v7, %v3024_v21 }
 0x368   : >> { %v3065_v20 = vadd.f32 %v1266_v47, %v1242_v56  ;;  %v1517_v56 = vld [vmem:[#allocation2 + $0x60] sm:$0xff] }
 0x369   : >> { %v1518_v62 = vmul.f32 %v2285_v48, %v1517_v56 }
 0x36a   : >> { %v1281_v54 = vpop.permute.xlu1 %1280  ;;  %v3068_v15 = vpop.permute.xlu0 %1287 }
 0x36b   : >> { %v1283_v13 = vmul.f32 %v1281_v54, %v3053_v41 }
 0x36d   : >> { %v3076_v51 = vadd.f32 %v1283_v13, %v1278_v60  ;;  %v1466_v60 = vmul.f32 1.442695, %v1465_v44  ;;  %v2287_v13 = vpop.eup %2286 }
 0x36f   : >> { %1285 = vst [vmem:[#allocation2 + $0x58] sm:$0xff] %v3076_v51  ;;  %v1305_v57 = vpop.permute.xlu1 %1304  ;;  %v1329_v22 = vpop.permute.xlu0 %1328  ;;  %2290 = vpow2.f32 %v1466_v60  ;;  %v1290_v11 = vmul.f32 %v3068_v15, %v3076_v51  ;;  %v1541_v15 = vld [vmem:[#allocation2 + $0x70] sm:$0xff] }
 0x370   : >> { %v1307_v55 = vmul.f32 %v1305_v57, %v3053_v41  ;;  %v1331_v59 = vmul.f32 %v1329_v22, %v3053_v41  ;;  %v2289_v22 = vpop.eup %2288  ;;  %2292 = vpow2.f32 %v1490_v36 }
 0x371   : >> { %v1291_v49 = vadd.f32 %v1290_v11, %v3065_v20  ;;  %v1695_v11 = vld [vmem:[%s3302_s9 + $0x48] sm:$0xff] (%p1209_p8) }
 0x372   : >> { %v3086_v8 = vadd.f32 %v1307_v55, %v1302_v19  ;;  %v3088_v61 = vadd.f32 %v1331_v59, %v1326_v1  ;;  %v1422_v1 = vmul.f32 %v2287_v13, %v1421_v18  ;;  %v1589_v55 = vld [vmem:[#allocation2 + $0x28] sm:$0xff] }
 0x373   : >> { %v1590_v2 = vmul.f32 %v2289_v22, %v1589_v55 }
 0x374   : >> { %1309 = vst [vmem:[#allocation2 + $0x18] sm:$0xff] %v3086_v8  ;;  %v3091_v63 = vpop.permute.xlu1 %1311  ;;  %1333 = vst [vmem:[#allocation2 + $0x50] sm:$0xff] %v3088_v61  ;;  %v1377_v16 = vpop.permute.xlu0 %1376 }
 0x375   : >> { %v1379_v9 = vmul.f32 %v1377_v16, %v3053_v41 }
 0x377   : >> { %v3099_v32 = vadd.f32 %v1379_v9, %v1374_v27  ;;  %v1537_v9 = vmul.f32 %v1989_v28, %v3024_v21  ;;  %v1314_v21 = vmul.f32 %v3091_v63, %v3086_v8 }
 0x379   : >> { %v3101_v35 = vpop.permute.xlu1 %1335  ;;  %1381 = vst [vmem:[#allocation2 + $0x8] sm:$0xff] %v3099_v32  ;;  %v3105_v40 = vpop.permute.xlu0 %1383  ;;  %v1538_v37 = vmul.f32 1.442695, %v1537_v9  ;;  %v1315_v53 = vadd.f32 %v1314_v21, %v1291_v49 }
 0x37a   : >> { %v1338_v56 = vmul.f32 %v3101_v35, %v3088_v61  ;;  %v1565_v35 = vld [vmem:[#allocation2 + $0x78] sm:$0xff] }
 0x37b   : >> { %2294 = vpow2.f32 %v1538_v37  ;;  %v3189_v37 = vld [vmem:[#allocation8 + $0x38] sm:$0xff] (%p1209_p8) }
 0x37c   : >> { %v2291_v31 = vpop.eup %2290  ;;  %v1339_v60 = vadd.f32 %v1338_v56, %v1315_v53  ;;  %v1694_v56 = vld [vmem:[%s3302_s9 + $0x40] sm:$0xff] (%p1209_p8)  ;;  %v1693_v53 = vld [vmem:[%s3302_s9 + $0x38] sm:$0xff] (%p1209_p8) }
 0x37d   : >> { %v1470_v3 = vmul.f32 %v2291_v31, %v1469_v29  ;;  %v1698_v31 = vld [vmem:[%s3302_s9 + $0x60] sm:$0xff] (%p1209_p8)  ;;  %v3183_v29 = vld [vmem:[#allocation8 + $0x28] sm:$0xff] (%p1209_p8) }
 0x37e   : >> { %v1353_v45 = vpop.permute.xlu1 %1352  ;;  %v1449_v5 = vpop.permute.xlu0 %1448 }
 0x37f   : >> { %v1355_v46 = vmul.f32 %v1353_v45, %v3053_v41  ;;  %v1451_v43 = vmul.f32 %v1449_v5, %v3053_v41 }
 0x381   : >> { %v3112_v34 = vadd.f32 %v1355_v46, %v1350_v17  ;;  %v3114_v50 = vadd.f32 %v1451_v43, %v1446_v14  ;;  %v2293_v17 = vpop.eup %2292  ;;  %v1562_v46 = vmul.f32 1.442695, %v1561_v42  ;;  %v1993_v42 = vmul.f32 (%p1209_p8), -1.442695, %v3189_v37 }
 0x382   : >> { %v1494_v5 = vmul.f32 %v2293_v17, %v1493_v39  ;;  %v1696_v39 = vld [vmem:[%s3302_s9 + $0x50] sm:$0xff] (%p1209_p8) }
 0x383   : >> { %1357 = vst [vmem:[#allocation2 + $0x68] sm:$0xff] %v3112_v34  ;;  %v3117_v52 = vpop.permute.xlu1 %1359  ;;  %1453 = vst [vmem:[#allocation2 + $0x20] sm:$0xff] %v3114_v50  ;;  %v3121_v47 = vpop.permute.xlu0 %1455  ;;  %2296 = vpow2.f32 %v1562_v46 }
 0x388   : >> { %v1401_v4 = vpop.permute.xlu1 %1400  ;;  %v1521_v54 = vpop.permute.xlu0 %1520 }
 0x389   : >> { %v1403_v12 = vmul.f32 %v1401_v4, %v3053_v41  ;;  %v1523_v0 = vmul.f32 %v1521_v54, %v3053_v41  ;;  %v2295_v4 = vpop.eup %2294  ;;  %v1386_v54 = vmul.f32 %v3105_v40, %v3099_v32 }
 0x38a   : >> { %v1542_v63 = vmul.f32 %v2295_v4, %v1541_v15 }
 0x38b   : >> { %v1404_v24 = vadd.f32 %v1403_v12, %v1398_v58  ;;  %v3129_v19 = vadd.f32 %v1523_v0, %v1518_v62  ;;  %v1362_v58 = vmul.f32 %v3117_v52, %v3112_v34 }
 0x38d   : >> { %v1425_v57 = vpop.permute.xlu1 %1424  ;;  %1405 = vst [vmem:[#allocation2 + $0x48] sm:$0xff] %v1404_v24  ;;  %1525 = vst [vmem:[#allocation2 + $0x60] sm:$0xff] %v3129_v19  ;;  %v3133_v25 = vpop.permute.xlu0 %1527  ;;  %v1363_v51 = vadd.f32 %v1362_v58, %v1339_v60  ;;  %v1692_v58 = vld [vmem:[%s3302_s9 + $0x30] sm:$0xff] (%p1209_p8)  ;;  %v1691_v60 = vld [vmem:[%s3302_s9 + $0x28] sm:$0xff] (%p1209_p8) }
 0x38e   : >> { %v1427_v23 = vmul.f32 %v1425_v57, %v3053_v41 }
 0x38f   : >> { %v1387_v20 = vadd.f32 %v1386_v54, %v1363_v51  ;;  %v1689_v51 = vld [vmem:[%s3302_s9 + $0x18] sm:$0xff] (%p1209_p8) }
 0x390   : >> { %v1428_v59 = vadd.f32 %v1427_v23, %v1422_v1  ;;  %v2297_v13 = vpop.eup %2296  ;;  %v1458_v1 = vmul.f32 %v3121_v47, %v3114_v50 }
 0x391   : >> { %v1566_v34 = vmul.f32 %v2297_v13, %v1565_v35  ;;  %v1688_v13 = vld [vmem:[%s3302_s9 + $0x10] sm:$0xff] (%p1209_p8) }
 0x392   : >> { %v1408_v26 = vpop.permute.xlu1 %1407  ;;  %1429 = vst [vmem:[#allocation2 + $0x40] sm:$0xff] %v1428_v59  ;;  %v1593_v6 = vpop.permute.xlu0 %1592 }
 0x393   : >> { %v1595_v27 = vmul.f32 %v1593_v6, %v3053_v41  ;;  %v1410_v8 = vmul.f32 %v1408_v26, %v1404_v24 }
 0x395   : >> { %v3139_v16 = vadd.f32 %v1595_v27, %v1590_v2  ;;  %v1411_v18 = vadd.f32 %v1410_v8, %v1387_v20  ;;  %v1530_v2 = vmul.f32 %v3133_v25, %v3129_v19  ;;  %v1701_v19 = vld [vmem:[%s3302_s9 + $0x78] sm:$0xff] (%p1209_p8)  ;;  %v1700_v25 = vld [vmem:[%s3302_s9 + $0x70] sm:$0xff] (%p1209_p8) }
 0x396   : > { %2027 = vmatprep.subr.mxu0 (%p1209_p8), %v1701_v19 }
 0x397   : >> { %v1432_v30 = vpop.permute.xlu1 %1431  ;;  %1597 = vst [vmem:[#allocation2 + $0x28] sm:$0xff] %v3139_v16  ;;  %2028 = vmatpush3.msra.mxu0 (%p1209_p8), %v1701_v19 }
 0x398   : >> { %v1434_v12 = vmul.f32 %v1432_v30, %v1428_v59  ;;  %2029 = vmatprep.subr.mxu0 (%p1209_p8), %v1700_v25 }
 0x399   : > { %2030 = vmatpush3.msra.mxu0 (%p1209_p8), %v1700_v25 }
 0x39a   : >> { %v1435_v52 = vadd.f32 %v1434_v12, %v1411_v18  ;;  %v1687_v18 = vld [vmem:[%s3302_s9 + $0x8] sm:$0xff] (%p1209_p8) }
 0x39c   : >> { %v1473_v38 = vpop.permute.xlu1 %1472  ;;  %v1459_v57 = vadd.f32 %v1458_v1, %v1435_v52 }
 0x39d   : >> { %v1475_v14 = vmul.f32 %v1473_v38, %v3053_v41  ;;  %v3191_v38 = vld [vmem:[#allocation8 + $0x10] sm:$0xff] (%p1209_p8) }
 0x39e   : > { %v1994_v17 = vmul.f32 (%p1209_p8), -1.442695, %v3191_v38 }
 0x39f   : >> { %v1476_v45 = vadd.f32 %v1475_v14, %v1470_v3  ;;  %v1992_v3 = vmul.f32 (%p1209_p8), -1.442695, %v3183_v29  ;;  %v3195_v14 = vld [vmem:[#allocation8] sm:$0xff] (%p1209_p8) }
 0x3a1   : >> { %v1497_v43 = vpop.permute.xlu1 %1496  ;;  %1477 = vst [vmem:[#allocation2 + $0x10] sm:$0xff] %v1476_v45  ;;  %2298 = vpow2.f32 (%p1209_p8), %v1992_v3 }
 0x3a2   : >> { %v1499_v7 = vmul.f32 %v1497_v43, %v3053_v41  ;;  %2300 = vpow2.f32 (%p1209_p8), %v1993_v42  ;;  %v3204_v43 = vld [vmem:[#allocation8 + $0x18] sm:$0xff] (%p1209_p8) }
 0x3a3   : > { %2302 = vpow2.f32 (%p1209_p8), %v1994_v17 }
 0x3a4   : >> { %v1500_v44 = vadd.f32 %v1499_v7, %v1494_v5  ;;  %v3201_v5 = vld [vmem:[#allocation8 + $0x8] sm:$0xff] (%p1209_p8)  ;;  %v3206_v7 = vld [vmem:[#allocation8 + $0x30] sm:$0xff] (%p1209_p8) }
 0x3a5   : > { %v1996_v46 = vmul.f32 (%p1209_p8), -1.442695, %v3201_v5  ;;  %v1998_v21 = vmul.f32 (%p1209_p8), -1.442695, %v3206_v7 }
 0x3a6   : >> { %v1480_v48 = vpop.permute.xlu1 %1479  ;;  %1501 = vst [vmem:[#allocation2 + $0x38] sm:$0xff] %v1500_v44 }
 0x3a7   : >> { %v1482_v40 = vmul.f32 %v1480_v48, %v1476_v45  ;;  %v1995_v45 = vmul.f32 (%p1209_p8), -1.442695, %v3195_v14  ;;  %v3213_v48 = vld [vmem:[#allocation8 + $0x20] sm:$0xff] (%p1209_p8) }
 0x3a8   : > { %v1999_v49 = vmul.f32 (%p1209_p8), -1.442695, %v3213_v48 }
 0x3a9   : >> { %v1483_v55 = vadd.f32 %v1482_v40, %v1459_v57  ;;  %2304 = vpow2.f32 (%p1209_p8), %v1995_v45 }
 0x3aa   : > { %2306 = vpow2.f32 (%p1209_p8), %v1996_v46 }
 0x3ab   : >> { %v1504_v62 = vpop.permute.xlu1 %1503 }
 0x3ac   : >> { %v1506_v22 = vmul.f32 %v1504_v62, %v1500_v44  ;;  %v1997_v44 = vmul.f32 (%p1209_p8), -1.442695, %v3204_v43  ;;  %v1690_v62 = vld [vmem:[%s3302_s9 + $0x20] sm:$0xff] (%p1209_p8) }
 0x3ae   : >> { %v1507_v59 = vadd.f32 %v1506_v22, %v1483_v55  ;;  %2308 = vpow2.f32 (%p1209_p8), %v1997_v44  ;;  %v2299_v4 = vpop.eup (%p1209_p8), %2298 }
 0x3af   : > { %2310 = vpow2.f32 (%p1209_p8), %v1998_v21  ;;  %v2301_v15 = vpop.eup (%p1209_p8), %2300  ;;  %v1646_v54 = vadd.f32 (%p1209_p8), 1.0, %v2299_v4 }
 0x3b0   : >> { %v1545_v10 = vpop.permute.xlu1 %1544  ;;  %v1531_v27 = vadd.f32 %v1530_v2, %v1507_v59  ;;  %2312 = vpow2.f32 (%p1209_p8), %v1999_v49  ;;  %v2303_v8 = vpop.eup (%p1209_p8), %2302 }
 0x3b1   : >> { %v1547_v61 = vmul.f32 %v1545_v10, %v3053_v41  ;;  %2314 = vrcp.f32 (%p1209_p8), %v1646_v54  ;;  %v1648_v20 = vadd.f32 (%p1209_p8), 1.0, %v2303_v8 }
 0x3b3   : >> { %v1548_v0 = vadd.f32 %v1547_v61, %v1542_v63  ;;  %v1647_v63 = vadd.f32 (%p1209_p8), 1.0, %v2301_v15  ;;  %v1816_v15 = vld [vmem:[%s2508_s30 + $0x10] sm:$0xff] (%p1209_p8) }
 0x3b5   : >> { %v1569_v36 = vpop.permute.xlu1 %1568  ;;  %1549 = vst [vmem:[#allocation2 + $0x70] sm:$0xff] %v1548_v0  ;;  %2316 = vrcp.f32 (%p1209_p8), %v1647_v63  ;;  %v1819_v63 = vld [vmem:[%s2508_s30 + $0x28] sm:$0xff] (%p1209_p8) }
 0x3b6   : >> { %v1571_v32 = vmul.f32 %v1569_v36, %v3053_v41  ;;  %v2305_v10 = vpop.eup (%p1209_p8), %2304  ;;  %2318 = vrcp.f32 (%p1209_p8), %v1648_v20  ;;  %v1686_v36 = vld [vmem:[%s3302_s9] sm:$0xff] (%p1209_p8) }
 0x3b7   : > { %v2307_v12 = vpop.eup (%p1209_p8), %2306  ;;  %v1649_v61 = vadd.f32 (%p1209_p8), 1.0, %v2305_v10 }
 0x3b8   : >> { %v1572_v24 = vadd.f32 %v1571_v32, %v1566_v34 }
 0x3b9   : > { %2320 = vrcp.f32 (%p1209_p8), %v1649_v61 }
 0x3ba   : >> { %v1552_v23 = vpop.permute.xlu1 %1551  ;;  %1573 = vst [vmem:[#allocation2 + $0x78] sm:$0xff] %v1572_v24 }
 0x3bb   : >> { %v1554_v26 = vmul.f32 %v1552_v23, %v1548_v0  ;;  %v2309_v35 = vpop.eup (%p1209_p8), %2308  ;;  %v1650_v0 = vadd.f32 (%p1209_p8), 1.0, %v2307_v12  ;;  %v1818_v12 = vld [vmem:[%s2508_s30 + $0x20] sm:$0xff] (%p1209_p8) }
 0x3bc   : > { %v2311_v34 = vpop.eup (%p1209_p8), %2310  ;;  %v1651_v52 = vadd.f32 (%p1209_p8), 1.0, %v2309_v35 }
 0x3bd   : >> { %v1555_v47 = vadd.f32 %v1554_v26, %v1531_v27  ;;  %v2313_v1 = vpop.eup (%p1209_p8), %2312  ;;  %2322 = vrcp.f32 (%p1209_p8), %v1650_v0  ;;  %v1652_v32 = vadd.f32 (%p1209_p8), 1.0, %v2311_v34  ;;  %v1821_v0 = vld [vmem:[%s2508_s30 + $0x38] sm:$0xff] (%p1209_p8) }
 0x3be   : > { %2324 = vrcp.f32 (%p1209_p8), %v1651_v52  ;;  %v1653_v40 = vadd.f32 (%p1209_p8), 1.0, %v2313_v1 }
 0x3bf   : >> { %v1576_v6 = vpop.permute.xlu1 %1575  ;;  %2326 = vrcp.f32 (%p1209_p8), %v1652_v32 }
 0x3c0   : >> { %v1578_v50 = vmul.f32 %v1576_v6, %v1572_v24  ;;  %2328 = vrcp.f32 (%p1209_p8), %v1653_v40  ;;  %v2315_v24 = vpop.eup (%p1209_p8), %2314 }
 0x3c1   : > { %v1670_v23 = vmul.f32 (%p1209_p8), %v2315_v24, %v3183_v29 }
 0x3c2   : >> { %v1579_v30 = vadd.f32 %v1578_v50, %v1555_v47  ;;  %v2317_v22 = vpop.eup (%p1209_p8), %2316 }
 0x3c3   : > { %v2319_v59 = vpop.eup (%p1209_p8), %2318  ;;  %v1671_v2 = vmul.f32 (%p1209_p8), %v2317_v22, %v3189_v37 }
 0x3c4   : >> { %v1600_v28 = vpop.permute.xlu1 %1599  ;;  %v1672_v50 = vmul.f32 (%p1209_p8), %v2319_v59, %v3191_v38 }
 0x3c5   : >> { %v1602_v41 = vmul.f32 %v1600_v28, %v3139_v16  ;;  %1211 = sbr.rel (!%p1209_p8) target bundleno = 738 (0x2e2), region = 124  ;;  %v1699_v16 = vld [vmem:[%s3302_s9 + $0x68] sm:$0xff] (%p1209_p8) }
 0x3c6   : > { %2031 = vmatprep.subr.mxu0 (%p1209_p8), %v1699_v16  ;;  %v2321_v6 = vpop.eup (%p1209_p8), %2320 }
 0x3c7   : >> { %v1603_v9 = vadd.f32 %v1602_v41, %v1579_v30  ;;  %2032 = vmatpush3.msra.mxu0 (%p1209_p8), %v1699_v16  ;;  %v1673_v41 = vmul.f32 (%p1209_p8), %v2321_v6, %v3195_v14 }
 0x3c8   : > { %2033 = vmatprep.subr.mxu0 (%p1209_p8), %v1698_v31 }
 0x3c9   : >> { %1605 = vst [vmem:[%s1604_s15] sm:$0xff] %v1603_v9  ;;  %2034 = vmatpush3.msra.mxu0 (%p1209_p8), %v1698_v31 }
 0x3ca   : > { %2035 = vmatprep.subr.mxu0 %v1697_v33  ;;  %v2323_v28 = vpop.eup %2322 }
 0x3cb   : > { %2036 = vmatpush3.msra.mxu0 %v1697_v33  ;;  %v2325_v19 = vpop.eup %2324  ;;  %v1674_v16 = vmul.f32 %v2323_v28, %v3201_v5 }
 0x3cc   : > { %2037 = vmatprep.subr.mxu0 %v1696_v39  ;;  %v2327_v31 = vpop.eup %2326  ;;  %v1675_v33 = vmul.f32 %v2325_v19, %v3204_v43  ;;  %v2000_v43 = vld [vmem:[%s3303_s10] ss:$0 sm:$0xff] }
 0x3cd   : > { %2038 = vmatpush3.msra.mxu0 %v1696_v39  ;;  %v2329_v3 = vpop.eup %2328  ;;  %v1676_v42 = vmul.f32 %v2327_v31, %v3206_v7 }
 0x3ce   : > { %2039 = vmatprep.subr.mxu0 %v1695_v11  ;;  %v1677_v39 = vmul.f32 %v2329_v3, %v3213_v48  ;;  %v1814_v48 = vld [vmem:[%s2508_s30] sm:$0xff] }
 0x3cf   : > { %2040 = vmatpush3.msra.mxu0 %v1695_v11  ;;  %v1815_v11 = vld [vmem:[%s2508_s30 + $0x8] sm:$0xff] }
 0x3d0   : > { %2041 = vmatprep.subr.mxu0 %v1694_v56  ;;  %v1614_v57 = vld [vmem:[#allocation7] sm:$0xff]  ;;  %v1615_v55 = vld [vmem:[#allocation7 + $0x8] sm:$0xff]  ;;  %v1616_v26 = vld [vmem:[#allocation7 + $0x10] sm:$0xff] }
 0x3d1   : > { %2042 = vmatpush3.msra.mxu0 %v1694_v56  ;;  %v1678_v27 = vmul.f32 %v1670_v23, %v1614_v57  ;;  %v1617_v47 = vld [vmem:[#allocation7 + $0x18] sm:$0xff]  ;;  %v1679_v30 = vmul.f32 %v1671_v2, %v1615_v55  ;;  %v1618_v9 = vld [vmem:[#allocation7 + $0x20] sm:$0xff]  ;;  %v1680_v25 = vmul.f32 %v1672_v50, %v1616_v26  ;;  %v1619_v38 = vld [vmem:[#allocation7 + $0x28] sm:$0xff] }
 0x3d2   : > { %2043 = vmatprep.subr.mxu0 %v1693_v53  ;;  %v1681_v29 = vmul.f32 %v1673_v41, %v1617_v47  ;;  %v1682_v37 = vmul.f32 %v1674_v16, %v1618_v9  ;;  %v1620_v17 = vld [vmem:[#allocation7 + $0x30] sm:$0xff]  ;;  %v1683_v14 = vmul.f32 %v1675_v33, %v1619_v38  ;;  %v1621_v5 = vld [vmem:[#allocation7 + $0x38] sm:$0xff] }
 0x3d3   : > { %2044 = vmatpush3.msra.mxu0 %v1693_v53  ;;  %2059 = vmatprep.mubr.f32.mxu0 %v1678_v27  ;;  %v1684_v45 = vmul.f32 %v1676_v42, %v1620_v17  ;;  %v1685_v46 = vmul.f32 %v1677_v39, %v1621_v5 }
 0x3d4   : > { %2045 = vmatprep.subr.mxu0 %v1692_v58 }
 0x3d5   : > { %2046 = vmatpush3.msra.mxu0 %v1692_v58  ;;  %v1817_v58 = vld [vmem:[%s2508_s30 + $0x18] sm:$0xff] }
 0x3d6   : > { %2047 = vmatprep.subr.mxu0 %v1691_v60 }
 0x3d7   : > { %2048 = vmatpush3.msra.mxu0 %v1691_v60 }
 0x3d8   : > { %2049 = vmatprep.subr.mxu0 %v1690_v62 }
 0x3d9   : > { %2050 = vmatpush3.msra.mxu0 %v1690_v62 }
 0x3da   : > { %2051 = vmatprep.subr.mxu0 %v1689_v51 }
 0x3db   : > { %2052 = vmatpush3.msra.mxu0 %v1689_v51 }
 0x3dc   : > { %2053 = vmatprep.subr.mxu0 %v1688_v13 }
 0x3dd   : > { %2054 = vmatpush3.msra.mxu0 %v1688_v13 }
 0x3de   : > { %2055 = vmatprep.subr.mxu0 %v1687_v18 }
 0x3df   : > { %2056 = vmatpush3.msra.mxu0 %v1687_v18 }
 0x3e0   : > { %2057 = vmatprep.subr.mxu0 %v1686_v36 }
 0x3e1   : > { %2058 = vmatpush3.msra.mxu0 %v1686_v36  ;;  %v1820_v36 = vld [vmem:[%s2508_s30 + $0x30] sm:$0xff] }
 0x3e2   : > { %2060 = vmatmul.mubr.f32.vlgmr.msra.gmra.mxu0 %v1679_v30 }
 0x3e3   : > { %2062 = vmatprep.mubr.f32.mxu0 %v1680_v25 }
 0x3e6   : > { %2063 = vmatmul.mubr.f32.gmra.mxu0 %v1681_v29 }
 0x3e7   : > { %2065 = vmatprep.mubr.f32.mxu0 %v1682_v37 }
 0x3ea   : > { %2066 = vmatmul.mubr.f32.gmra.mxu0 %v1683_v14 }
 0x3eb   : > { %2068 = vmatprep.mubr.f32.mxu0 %v1684_v45 }
 0x3ee   : > { %2069 = vmatmul.mubr.f32.gmra.mxu0 %v1685_v46 }
 0x4a2   : > { %v2061_v7 = vpop.f32.mrf.mxu0 }
 0x4a3   : > { %v1781_v44 = vadd.f32 %v2061_v7, %v2000_v43 }
 0x4a4   : > { %v1775_v21 = vpop.f32.mrf.mxu0 }
 0x4a5   : > { %v1823_v49 = vadd.f32 %v1815_v11, %v1781_v44  ;;  %v1776_v56 = vadd.f32 %v2000_v43, %v1775_v21 }
 0x4a6   : > { %v2064_v53 = vpop.f32.mrf.mxu0 }
 0x4a7   : > { %1831 = vst.msk [vmem:[%s2513_s14 + $0x8] sm:$0xff] %vm442_vm0, %v1823_v49  ;;  %v1822_v60 = vadd.f32 %v1814_v48, %v1776_v56  ;;  %v1791_v62 = vadd.f32 %v2064_v53, %v2000_v43 }
 0x4a8   : > { %v1785_v4 = vpop.f32.mrf.mxu0 }
 0x4a9   : > { %1830 = vst.msk [vmem:[%s2513_s14] sm:$0xff] %vm442_vm0, %v1822_v60  ;;  %v1825_v51 = vadd.f32 %v1817_v58, %v1791_v62  ;;  %v1786_v54 = vadd.f32 %v2000_v43, %v1785_v4 }
 0x4aa   : > { %v2067_v8 = vpop.f32.mrf.mxu0 }
 0x4ab   : > { %1833 = vst.msk [vmem:[%s2513_s14 + $0x18] sm:$0xff] %vm442_vm0, %v1825_v51  ;;  %v1824_v10 = vadd.f32 %v1816_v15, %v1786_v54  ;;  %v1801_v13 = vadd.f32 %v2067_v8, %v2000_v43 }
 0x4ac   : > { %v1795_v20 = vpop.f32.mrf.mxu0 }
 0x4ad   : > { %1832 = vst.msk [vmem:[%s2513_s14 + $0x10] sm:$0xff] %vm442_vm0, %v1824_v10  ;;  %v1827_v61 = vadd.f32 %v1819_v63, %v1801_v13  ;;  %v1796_v35 = vadd.f32 %v2000_v43, %v1795_v20 }
 0x4ae   : > { %v2070_v18 = vpop.f32.mrf.mxu0 }
 0x4af   : > { %1835 = vst.msk [vmem:[%s2513_s14 + $0x28] sm:$0xff] %vm442_vm0, %v1827_v61  ;;  %v1826_v34 = vadd.f32 %v1818_v12, %v1796_v35  ;;  %v1811_v52 = vadd.f32 %v2070_v18, %v2000_v43 }
 0x4b0   : > { %v1805_v1 = vpop.f32.mrf.mxu0 }
 0x4b1   : > { %1834 = vst.msk [vmem:[%s2513_s14 + $0x20] sm:$0xff] %vm442_vm0, %v1826_v34  ;;  %v1829_v32 = vadd.f32 %v1821_v0, %v1811_v52  ;;  %v1806_v40 = vadd.f32 %v2000_v43, %v1805_v1 }
 0x4b3   : > { %1837 = vst.msk [vmem:[%s2513_s14 + $0x38] sm:$0xff] %vm442_vm0, %v1829_v32  ;;  %v1828_v24 = vadd.f32 %v1820_v36, %v1806_v40 }
 0x4b5   : > { %1836 = vst.msk [vmem:[%s2513_s14 + $0x30] sm:$0xff] %vm442_vm0, %v1828_v24 }
 0x4b6 PF: > { %s21_s21 = sadd.s32 1, %s2372_s21   ;;  %s3305_s17 = smov %s2364_s19 }
 0x4b7   : > { %p18_p9 = scmp.ge.s32.totalorder %s21_s21, 6   ;;  %s3306_s18 = smov %s2368_s20 }
 0x4b8   : > { %s3307_s19 = smov %s3310_s22  ;;  %s3308_s20 = smov %s3314_s23 }
 0x4b9   :  { %20 = sbr.rel (!%p18_p9) target bundleno = 3 (0x3), region = 135 }

</bundles_post_ra>
